<compile_context>
chip_gen: v7x
topology: tpu7x:2x2x1
jax: 0.10.0
libtpu: 0.0.40
codegen_flags: <defaults>
</compile_context>

<pallas_src>
import functools

import jax
import jax.numpy as jnp
from jax import lax
from jax.experimental import pallas as pl
from jax.experimental.pallas import tpu as pltpu

EPS = 1e-5  # torch.nn.BatchNorm1d default eps
_F32 = jnp.float32
_BF16 = jnp.bfloat16


# ---------------------------------------------------------------------------
# Kernel 1: layer-1 pass A.
#   y = x @ W1 + b1 (bf16 operands, f32 accumulate), per-batch partial
#   sum / sum-of-squares of y, per-batch partial max of x (set feature).
# ---------------------------------------------------------------------------
def _fc_stats_kernel(x_ref, w_ref, b_ref, y_ref, ysum_ref, ysq_ref, xmax_ref):
    ti = pl.program_id(1)

    @pl.when(ti == 0)
    def _init():
        ysum_ref[...] = jnp.zeros_like(ysum_ref)
        ysq_ref[...] = jnp.zeros_like(ysq_ref)
        xmax_ref[...] = jnp.full_like(xmax_ref, -jnp.inf)

    x = x_ref[0]                                                   # (TN, Cin) f32
    y = jnp.dot(x.astype(_BF16), w_ref[...],                       # W pre-cast to bf16
                preferred_element_type=_F32) + b_ref[...]          # (TN, Cout) f32
    y_ref[0] = y
    ysum_ref[0] += jnp.sum(y, axis=0, keepdims=True)
    ysq_ref[0] += jnp.sum(y * y, axis=0, keepdims=True)
    xmax_ref[0] = jnp.maximum(xmax_ref[0], jnp.max(x, axis=0, keepdims=True))


# ---------------------------------------------------------------------------
# Kernel 2: pass B of the previous layer fused with pass A of the next layer.
#   h = relu((y_prev - mean) * inv_std + set_feature)          (finish prev BN)
#   y = h @ W + b (bf16/f32), partial stats of y, partial max of h.
# ---------------------------------------------------------------------------
def _norm_fc_stats_kernel(y_prev_ref, mean_ref, inv_ref, set_ref,
                          w_ref, b_ref,
                          y_ref, ysum_ref, ysq_ref, hmax_ref):
    ti = pl.program_id(1)

    @pl.when(ti == 0)
    def _init():
        ysum_ref[...] = jnp.zeros_like(ysum_ref)
        ysq_ref[...] = jnp.zeros_like(ysq_ref)
        hmax_ref[...] = jnp.full_like(hmax_ref, -jnp.inf)

    h = jnp.maximum((y_prev_ref[0] - mean_ref[...]) * inv_ref[...] + set_ref[0], 0.0)
    y = jnp.dot(h.astype(_BF16), w_ref[...],
                preferred_element_type=_F32) + b_ref[...]
    y_ref[0] = y
    ysum_ref[0] += jnp.sum(y, axis=0, keepdims=True)
    ysq_ref[0] += jnp.sum(y * y, axis=0, keepdims=True)
    hmax_ref[0] = jnp.maximum(hmax_ref[0], jnp.max(h, axis=0, keepdims=True))


# ---------------------------------------------------------------------------
# Kernel 3: pass B of layer 2 fused with the cout==1 layer-3 fc (lane-dense).
#   h = relu((y_prev - mean) * inv_std + set_feature)
#   y_row = w3_row (1,C) contracted with h (TN,C) -> (1, TN) on lanes.
# ---------------------------------------------------------------------------
def _norm_fc1_stats_kernel(y_prev_ref, mean_ref, inv_ref, set_ref,
                           w_row_ref, b_ref,
                           y_ref, ysum_ref, ysq_ref, hmax_ref):
    ti = pl.program_id(1)

    @pl.when(ti == 0)
    def _init():
        ysum_ref[...] = jnp.zeros_like(ysum_ref)
        ysq_ref[...] = jnp.zeros_like(ysq_ref)
        hmax_ref[...] = jnp.full_like(hmax_ref, -jnp.inf)

    h = jnp.maximum((y_prev_ref[0] - mean_ref[...]) * inv_ref[...] + set_ref[0], 0.0)
    # cout == 1 fc as a contraction that directly yields a lane-dense (1, TN) row
    # (avoids an N=1 MXU matmul and lane-width-1 stores; MXU is idle here anyway).
    y_row = lax.dot_general(w_row_ref[...], h,
                            dimension_numbers=(((1,), (1,)), ((), ())),
                            preferred_element_type=_F32) + b_ref[...]   # (1, TN)
    y_ref[0] = y_row
    ysum_ref[0] += jnp.sum(y_row, axis=1, keepdims=True)
    ysq_ref[0] += jnp.sum(y_row * y_row, axis=1, keepdims=True)
    hmax_ref[0] = jnp.maximum(hmax_ref[0], jnp.max(h, axis=0, keepdims=True))


# ---------------------------------------------------------------------------
# Kernel 4: finalize layer 3 (pure elementwise, lane-dense (b, 1, n) output).
# ---------------------------------------------------------------------------
def _finalize_kernel(y_ref, mean_ref, inv_ref, set_ref, o_ref):
    o_ref[0] = jnp.maximum(
        (y_ref[0] - mean_ref[...]) * inv_ref[...] + set_ref[0], 0.0)


# ---------------------------------------------------------------------------
# Glue kernel (grid-less, tiny): combine per-batch partial sums into global BN
# statistics and run the set branch fc + BN on the small (b, cout) tensor.
# ---------------------------------------------------------------------------
def _stats_setbranch_kernel(ysum_ref, ysq_ref, xmax_ref, ws_ref, bs_ref,
                            mean_ref, inv_ref, set_ref, *, n_rows):
    tot = jnp.sum(ysum_ref[:, 0, :], axis=0, keepdims=True)        # (1, Cout)
    tot2 = jnp.sum(ysq_ref[:, 0, :], axis=0, keepdims=True)
    mean = tot / n_rows
    var = tot2 / n_rows - mean * mean                              # biased variance
    mean_ref[...] = mean
    inv_ref[...] = lax.rsqrt(var + EPS)

    # Set branch: fc on the (B, Cin) set-max, then BN over the B rows.  This is
    # exactly torch's BN over the n-times-repeated rows (same mean, same biased
    # variance) without materializing the (b*n, Cout) broadcast.
    z = jnp.dot(xmax_ref[:, 0, :], ws_ref[...],
                preferred_element_type=_F32) + bs_ref[...]          # (B, Cout)
    zm = jnp.mean(z, axis=0, keepdims=True)
    zv = jnp.mean((z - zm) * (z - zm), axis=0, keepdims=True)
    set_ref[:, 0, :] = (z - zm) * lax.rsqrt(zv + EPS)


# ---------------------------------------------------------------------------
# Wrapper helpers
# ---------------------------------------------------------------------------
def _pick_row_tile(n):
    # (TN, C) blocks need TN % 8 == 0 or TN == n;
    # lane-dense (1, 1, TN) blocks need TN % 128 == 0 or TN == n.
    for t in (512, 256, 128):
        if n % t == 0:
            return t
    return n


def _tiled_params(tn, cin, cout, semantics=("parallel", "arbitrary")):
    # Size the scoped-VMEM limit to the real working set (double-buffered tiles
    # + resident weights + accumulators) with generous margin; cap under v7x's
    # 64 MiB physical VMEM.
    tile_bytes = 4 * tn * (cin + max(cout, 8))
    weight_bytes = 2 * cin * cout + 4 * cout
    need = 2 * 2 * tile_bytes + weight_bytes + (2 << 20)
    limit = int(min(max(2 * need, 16 << 20), 64 << 20))
    return pltpu.CompilerParams(dimension_semantics=semantics,
                                vmem_limit_bytes=limit)


def _bn_stats_and_set_branch(ysum, ysq, xmax, ws, bs, n_rows):
    b = ysum.shape[0]
    cout = ws.shape[1]
    return pl.pallas_call(
        functools.partial(_stats_setbranch_kernel, n_rows=float(n_rows)),
        in_specs=[pl.BlockSpec(memory_space=pltpu.MemorySpace.VMEM)] * 5,
        out_specs=(pl.BlockSpec(memory_space=pltpu.MemorySpace.VMEM),) * 3,
        out_shape=(jax.ShapeDtypeStruct((1, cout), _F32),
                   jax.ShapeDtypeStruct((1, cout), _F32),
                   jax.ShapeDtypeStruct((b, 1, cout), _F32)),
        compiler_params=pltpu.CompilerParams(vmem_limit_bytes=16 << 20),
    )(ysum, ysq, xmax, ws, bs)


# ---------------------------------------------------------------------------
# Full block forward
# ---------------------------------------------------------------------------
@jax.jit
def deepsets_block(x, params):
    b, n, c0 = x.shape
    c1 = params["w2"].shape[1]
    c2 = params["w3"].shape[1]
    assert c2 == 1, "DeepSetsBlock last channel is 1"
    tn = _pick_row_tile(n)
    nt = n // tn

    # MXU operands of the big per-element fcs pre-cast once to bf16 (f32 accumulate).
    w1 = params["w1"].astype(_BF16)
    w2 = params["w2"].astype(_BF16)
    w3_row = params["w3"].reshape(1, c1)          # (c1, 1) -> (1, c1), stays f32

    # ---- layer 1, pass A -------------------------------------------------
    y1_1, s1, q1, xmax0 = pl.pallas_call(
        _fc_stats_kernel,
        grid=(b, nt),
        in_specs=[
            pl.BlockSpec((1, tn, c0), lambda bi, ti: (bi, ti, 0)),
            pl.BlockSpec((c0, c0), lambda bi, ti: (0, 0)),
            pl.BlockSpec((1, c0), lambda bi, ti: (0, 0)),
        ],
        out_specs=(
            pl.BlockSpec((1, tn, c0), lambda bi, ti: (bi, ti, 0)),
            pl.BlockSpec((1, 1, c0), lambda bi, ti: (bi, 0, 0)),
            pl.BlockSpec((1, 1, c0), lambda bi, ti: (bi, 0, 0)),
            pl.BlockSpec((1, 1, c0), lambda bi, ti: (bi, 0, 0)),
        ),
        out_shape=(
            jax.ShapeDtypeStruct((b, n, c0), _F32),
            jax.ShapeDtypeStruct((b, 1, c0), _F32),
            jax.ShapeDtypeStruct((b, 1, c0), _F32),
            jax.ShapeDtypeStruct((b, 1, c0), _F32),
        ),
        compiler_params=_tiled_params(tn, c0, c0),
    )(x, w1, params["b1"])

    mean1, inv1, set1 = _bn_stats_and_set_branch(
        s1, q1, xmax0, params["w1s"], params["b1s"], b * n)

    # ---- layer 1 pass B fused with layer 2 pass A --------------------------
    y1_2, s2, q2, hmax1 = pl.pallas_call(
        _norm_fc_stats_kernel,
        grid=(b, nt),
        in_specs=[
            pl.BlockSpec((1, tn, c0), lambda bi, ti: (bi, ti, 0)),
            pl.BlockSpec((1, c0), lambda bi, ti: (0, 0)),
            pl.BlockSpec((1, c0), lambda bi, ti: (0, 0)),
            pl.BlockSpec((1, 1, c0), lambda bi, ti: (bi, 0, 0)),
            pl.BlockSpec((c0, c1), lambda bi, ti: (0, 0)),
            pl.BlockSpec((1, c1), lambda bi, ti: (0, 0)),
        ],
        out_specs=(
            pl.BlockSpec((1, tn, c1), lambda bi, ti: (bi, ti, 0)),
            pl.BlockSpec((1, 1, c1), lambda bi, ti: (bi, 0, 0)),
            pl.BlockSpec((1, 1, c1), lambda bi, ti: (bi, 0, 0)),
            pl.BlockSpec((1, 1, c0), lambda bi, ti: (bi, 0, 0)),
        ),
        out_shape=(
            jax.ShapeDtypeStruct((b, n, c1), _F32),
            jax.ShapeDtypeStruct((b, 1, c1), _F32),
            jax.ShapeDtypeStruct((b, 1, c1), _F32),
            jax.ShapeDtypeStruct((b, 1, c0), _F32),
        ),
        compiler_params=_tiled_params(tn, c0, c1),
    )(y1_1, mean1, inv1, set1, w2, params["b2"])

    mean2, inv2, set2 = _bn_stats_and_set_branch(
        s2, q2, hmax1, params["w2s"], params["b2s"], b * n)

    # ---- layer 2 pass B fused with layer 3 pass A (cout == 1, lane-dense) --
    # TODO(synk): the torch code does `x2.view(b, 1, self.channels[1])` in layer 3,
    # a shape bug whenever channels[1] != channels[2]; we implement the evident
    # intent: broadcast the (b, channels[2]) set feature over n.
    y1_3, s3, q3, hmax2 = pl.pallas_call(
        _norm_fc1_stats_kernel,
        grid=(b, nt),
        in_specs=[
            pl.BlockSpec((1, tn, c1), lambda bi, ti: (bi, ti, 0)),
            pl.BlockSpec((1, c1), lambda bi, ti: (0, 0)),
            pl.BlockSpec((1, c1), lambda bi, ti: (0, 0)),
            pl.BlockSpec((1, 1, c1), lambda bi, ti: (bi, 0, 0)),
            pl.BlockSpec((1, c1), lambda bi, ti: (0, 0)),
            pl.BlockSpec((1, 1), lambda bi, ti: (0, 0)),
        ],
        out_specs=(
            pl.BlockSpec((1, 1, tn), lambda bi, ti: (bi, 0, ti)),
            pl.BlockSpec((1, 1, 1), lambda bi, ti: (bi, 0, 0)),
            pl.BlockSpec((1, 1, 1), lambda bi, ti: (bi, 0, 0)),
            pl.BlockSpec((1, 1, c1), lambda bi, ti: (bi, 0, 0)),
        ),
        out_shape=(
            jax.ShapeDtypeStruct((b, 1, n), _F32),
            jax.ShapeDtypeStruct((b, 1, 1), _F32),
            jax.ShapeDtypeStruct((b, 1, 1), _F32),
            jax.ShapeDtypeStruct((b, 1, c1), _F32),
        ),
        compiler_params=_tiled_params(tn, c1, 1),
    )(y1_2, mean2, inv2, set2, w3_row, params["b3"])

    mean3, inv3, set3 = _bn_stats_and_set_branch(
        s3, q3, hmax2, params["w3s"], params["b3s"], b * n)

    # ---- layer 3 pass B (finalize), lane-dense (b, 1, n) output ------------
    out = pl.pallas_call(
        _finalize_kernel,
        grid=(b, nt),
        in_specs=[
            pl.BlockSpec((1, 1, tn), lambda bi, ti: (bi, 0, ti)),
            pl.BlockSpec((1, 1), lambda bi, ti: (0, 0)),
            pl.BlockSpec((1, 1), lambda bi, ti: (0, 0)),
            pl.BlockSpec((1, 1, 1), lambda bi, ti: (bi, 0, 0)),
        ],
        out_specs=pl.BlockSpec((1, 1, tn), lambda bi, ti: (bi, 0, ti)),
        out_shape=jax.ShapeDtypeStruct((b, 1, n), _F32),
        compiler_params=pltpu.CompilerParams(
            dimension_semantics=("parallel", "parallel"),
            vmem_limit_bytes=16 << 20),
    )(y1_3, mean3, inv3, set3)

    # reshape back to the torch (b, n, 1) convention (data order unchanged)
    return out.reshape(b, n, 1)


# ---------------------------------------------------------------------------
# Deterministic parameter init (xavier-normal weights, torch-default uniform bias)
# ---------------------------------------------------------------------------
def init_params(key, channels):
    c0, c1, c2 = channels

    def linear(key, cin, cout):
        kw, kb = jax.random.split(key)
        std = (2.0 / (cin + cout)) ** 0.5            # xavier_normal_
        w = std * jax.random.normal(kw, (cin, cout), _F32)
        bound = 1.0 / (cin ** 0.5)                   # torch Linear default bias init
        bias = jax.random.uniform(kb, (1, cout), _F32, -bound, bound)
        return w, bias

    keys = jax.random.split(key, 6)
    w1, b1 = linear(keys[0], c0, c0)
    w1s, b1s = linear(keys[1], c0, c0)
    w2, b2 = linear(keys[2], c0, c1)
    w2s, b2s = linear(keys[3], c0, c1)
    w3, b3 = linear(keys[4], c1, c2)
    w3s, b3s = linear(keys[5], c1, c2)
    return dict(w1=w1, b1=b1, w1s=w1s, b1s=b1s,
                w2=w2, b2=b2, w2s=w2s, b2s=b2s,
                w3=w3, b3=b3, w3s=w3s, b3s=b3s)


# ---------------------------------------------------------------------------
# Pure-JAX reference (same math: bf16 MXU operands on the big fcs, f32 elsewhere)
# ---------------------------------------------------------------------------
def reference(x, params):
    def bn_rows(y):
        mu = jnp.mean(y, axis=0, keepdims=True)
        var = jnp.mean((y - mu) ** 2, axis=0, keepdims=True)   # biased variance
        return (y - mu) * lax.rsqrt(var + EPS)

    def layer(h, w, b_, ws, bs_, *, bf16_fc):
        bb, nn, cin = h.shape
        cout = w.shape[1]
        h2d = h.reshape(bb * nn, cin)
        if bf16_fc:
            y1 = jnp.dot(h2d.astype(_BF16), w.astype(_BF16),
                         preferred_element_type=_F32) + b_
        else:
            y1 = jnp.dot(h2d, w, preferred_element_type=_F32) + b_
        y1 = bn_rows(y1)
        z = jnp.dot(jnp.max(h, axis=1), ws, preferred_element_type=_F32) + bs_
        z = bn_rows(z)  # BN over b rows == BN over n-times repeated rows
        return jnp.maximum(y1.reshape(bb, nn, cout) + z[:, None, :], 0.0)

    h = layer(x, params["w1"], params["b1"], params["w1s"], params["b1s"], bf16_fc=True)
    h = layer(h, params["w2"], params["b2"], params["w2s"], params["b2s"], bf16_fc=True)
    h = layer(h, params["w3"], params["b3"], params["w3s"], params["b3s"], bf16_fc=False)
    return h


if __name__ == "__main__":
    channels = (128, 64, 1)          # small analogue of the default (256, 128, 1)
    b, n = 2, 1024                   # grid = (2 batches, 2 row tiles of 512)

    key = jax.random.PRNGKey(0)
    kx, kp = jax.random.split(key)
    x = jax.random.normal(kx, (b, n, channels[0]), _F32)
    params = init_params(kp, channels)

    out = jax.block_until_ready(deepsets_block(x, params))
    ref = reference(x, params)

    assert out.shape == (b, n, channels[2]), out.shape
    # bf16 MXU operands (per perf review) + tiled f32 accumulation vs. XLA's own
    # reduction order -> allow a small tolerance.
    max_err = float(jnp.max(jnp.abs(out - ref)))
    assert jnp.allclose(out, ref, atol=5e-3, rtol=5e-3), max_err

    print("KERNEL_OK")
</pallas_src>

<mosaic_0001>
module attributes {stable_mosaic.version = 11 : i64} {
  func.func @_stats_setbranch_kernel(%arg0: memref<2x1x128xf32, #tpu.memory_space<vmem>>, %arg1: memref<2x1x128xf32, #tpu.memory_space<vmem>>, %arg2: memref<2x1x128xf32, #tpu.memory_space<vmem>>, %arg3: memref<128x128xf32, #tpu.memory_space<vmem>>, %arg4: memref<1x128xf32, #tpu.memory_space<vmem>>, %arg5: memref<1x128xf32, #tpu.memory_space<vmem>>, %arg6: memref<1x128xf32, #tpu.memory_space<vmem>>, %arg7: memref<2x1x128xf32, #tpu.memory_space<vmem>>) attributes {dimension_semantics = [], scalar_prefetch = 0 : i64, scratch_operands = 0 : i64, tpu.core_type = #tpu.core_type<tc>} {
    %c0 = arith.constant 0 : index
    %c0_0 = arith.constant 0 : index
    %c0_1 = arith.constant 0 : index
    %0 = vector.load %arg0[%c0, %c0_0, %c0_1] : memref<2x1x128xf32, #tpu.memory_space<vmem>>, vector<2x1x128xf32>
    %1 = vector.shape_cast %0 : vector<2x1x128xf32> to vector<2x128xf32>
    %cst = arith.constant dense<0.000000e+00> : vector<128xf32>
    %2 = vector.multi_reduction <add>, %1, %cst [0] : vector<2x128xf32> to vector<128xf32>
    %3 = vector.shape_cast %2 : vector<128xf32> to vector<1x128xf32>
    %c0_2 = arith.constant 0 : index
    %c0_3 = arith.constant 0 : index
    %c0_4 = arith.constant 0 : index
    %4 = vector.load %arg1[%c0_2, %c0_3, %c0_4] : memref<2x1x128xf32, #tpu.memory_space<vmem>>, vector<2x1x128xf32>
    %5 = vector.shape_cast %4 : vector<2x1x128xf32> to vector<2x128xf32>
    %cst_5 = arith.constant dense<0.000000e+00> : vector<128xf32>
    %6 = vector.multi_reduction <add>, %5, %cst_5 [0] : vector<2x128xf32> to vector<128xf32>
    %7 = vector.shape_cast %6 : vector<128xf32> to vector<1x128xf32>
    %cst_6 = arith.constant 2.048000e+03 : f32
    %8 = vector.broadcast %cst_6 : f32 to vector<1x128xf32>
    %9 = arith.divf %3, %8 : vector<1x128xf32>
    %cst_7 = arith.constant 2.048000e+03 : f32
    %10 = vector.broadcast %cst_7 : f32 to vector<1x128xf32>
    %11 = arith.divf %7, %10 : vector<1x128xf32>
    %12 = arith.mulf %9, %9 : vector<1x128xf32>
    %13 = arith.subf %11, %12 : vector<1x128xf32>
    %c0_8 = arith.constant 0 : index
    %c0_9 = arith.constant 0 : index
    %14 = vector.load %arg5[%c0_8, %c0_9] : memref<1x128xf32, #tpu.memory_space<vmem>>, vector<1x128xf32>
    tpu.vector_store %arg5[%c0_8, %c0_9], %9 {strides = array<i32>} : memref<1x128xf32, #tpu.memory_space<vmem>>, vector<1x128xf32>,
    %cst_10 = arith.constant 9.99999974E-6 : f32
    %15 = vector.broadcast %cst_10 : f32 to vector<1x128xf32>
    %16 = arith.addf %13, %15 : vector<1x128xf32>
    %17 = math.rsqrt %16 : vector<1x128xf32>
    %c0_11 = arith.constant 0 : index
    %c0_12 = arith.constant 0 : index
    %18 = vector.load %arg6[%c0_11, %c0_12] : memref<1x128xf32, #tpu.memory_space<vmem>>, vector<1x128xf32>
    tpu.vector_store %arg6[%c0_11, %c0_12], %17 {strides = array<i32>} : memref<1x128xf32, #tpu.memory_space<vmem>>, vector<1x128xf32>,
    %c0_13 = arith.constant 0 : index
    %c0_14 = arith.constant 0 : index
    %c0_15 = arith.constant 0 : index
    %19 = vector.load %arg2[%c0_13, %c0_14, %c0_15] : memref<2x1x128xf32, #tpu.memory_space<vmem>>, vector<2x1x128xf32>
    %20 = vector.shape_cast %19 : vector<2x1x128xf32> to vector<2x128xf32>
    %c0_16 = arith.constant 0 : index
    %c0_17 = arith.constant 0 : index
    %21 = vector.load %arg3[%c0_16, %c0_17] : memref<128x128xf32, #tpu.memory_space<vmem>>, vector<128x128xf32>
    %cst_18 = arith.constant dense<0.000000e+00> : vector<2x128xf32>
    %22 = tpu.matmul %20, %21, %cst_18 {dimension_numbers = #tpu.dot_dimension_numbers<[1], [0], [0], [1], [0, 0, 1, 1], [], []>} : vector<2x128xf32>, vector<128x128xf32>, vector<2x128xf32> -> vector<2x128xf32>
    %c0_19 = arith.constant 0 : index
    %c0_20 = arith.constant 0 : index
    %23 = vector.load %arg4[%c0_19, %c0_20] : memref<1x128xf32, #tpu.memory_space<vmem>>, vector<1x128xf32>
    %24 = vector.broadcast %23 : vector<1x128xf32> to vector<2x128xf32>
    %25 = arith.addf %22, %24 : vector<2x128xf32>
    %cst_21 = arith.constant dense<0.000000e+00> : vector<128xf32>
    %26 = vector.multi_reduction <add>, %25, %cst_21 [0] : vector<2x128xf32> to vector<128xf32>
    %27 = vector.shape_cast %26 : vector<128xf32> to vector<1x128xf32>
    %cst_22 = arith.constant 2.000000e+00 : f32
    %28 = vector.broadcast %cst_22 : f32 to vector<1x128xf32>
    %29 = arith.divf %27, %28 : vector<1x128xf32>
    %30 = vector.broadcast %29 : vector<1x128xf32> to vector<2x128xf32>
    %31 = arith.subf %25, %30 : vector<2x128xf32>
    %32 = vector.broadcast %29 : vector<1x128xf32> to vector<2x128xf32>
    %33 = arith.subf %25, %32 : vector<2x128xf32>
    %34 = arith.mulf %31, %33 : vector<2x128xf32>
    %cst_23 = arith.constant dense<0.000000e+00> : vector<128xf32>
    %35 = vector.multi_reduction <add>, %34, %cst_23 [0] : vector<2x128xf32> to vector<128xf32>
    %36 = vector.shape_cast %35 : vector<128xf32> to vector<1x128xf32>
    %cst_24 = arith.constant 2.000000e+00 : f32
    %37 = vector.broadcast %cst_24 : f32 to vector<1x128xf32>
    %38 = arith.divf %36, %37 : vector<1x128xf32>
    %39 = vector.broadcast %29 : vector<1x128xf32> to vector<2x128xf32>
    %40 = arith.subf %25, %39 : vector<2x128xf32>
    %cst_25 = arith.constant 9.99999974E-6 : f32
    %41 = vector.broadcast %cst_25 : f32 to vector<1x128xf32>
    %42 = arith.addf %38, %41 : vector<1x128xf32>
    %43 = math.rsqrt %42 : vector<1x128xf32>
    %44 = vector.broadcast %43 : vector<1x128xf32> to vector<2x128xf32>
    %45 = arith.mulf %40, %44 : vector<2x128xf32>
    %c0_26 = arith.constant 0 : index
    %c0_27 = arith.constant 0 : index
    %c0_28 = arith.constant 0 : index
    %46 = vector.load %arg7[%c0_26, %c0_27, %c0_28] : memref<2x1x128xf32, #tpu.memory_space<vmem>>, vector<2x1x128xf32>
    %47 = vector.shape_cast %46 : vector<2x1x128xf32> to vector<2x128xf32>
    %48 = vector.shape_cast %45 : vector<2x128xf32> to vector<2x1x128xf32>
    tpu.vector_store %arg7[%c0_26, %c0_27, %c0_28], %48 {strides = array<i32>} : memref<2x1x128xf32, #tpu.memory_space<vmem>>, vector<2x1x128xf32>,
    return
  }
}

module attributes {stable_mosaic.version = 11 : i64} {
  func.func @_fc_stats_kernel(%arg0: i32, %arg1: i32, %arg2: memref<1x512x128xf32, #tpu.memory_space<vmem>>, %arg3: memref<128x128xbf16, #tpu.memory_space<vmem>>, %arg4: memref<1x128xf32, #tpu.memory_space<vmem>>, %arg5: memref<1x512x128xf32, #tpu.memory_space<vmem>>, %arg6: memref<1x1x128xf32, #tpu.memory_space<vmem>>, %arg7: memref<1x1x128xf32, #tpu.memory_space<vmem>>, %arg8: memref<1x1x128xf32, #tpu.memory_space<vmem>>) attributes {dimension_semantics = [#tpu.dimension_semantics<parallel>, #tpu.dimension_semantics<arbitrary>], iteration_bounds = array<i64: 2, 2>, scalar_prefetch = 0 : i64, scratch_operands = 0 : i64, tpu.core_type = #tpu.core_type<tc>, window_params = [{transform_indices = @transform_0, window_bounds = array<i64: 1, 512, 128>}, {pipeline_mode = #tpu.pipeline_mode<synchronous>, transform_indices = @transform_1, window_bounds = array<i64: 128, 128>}, {pipeline_mode = #tpu.pipeline_mode<synchronous>, transform_indices = @transform_2, window_bounds = array<i64: 1, 128>}, {transform_indices = @transform_3, window_bounds = array<i64: 1, 512, 128>}, {transform_indices = @transform_4, window_bounds = array<i64: 1, 1, 128>}, {transform_indices = @transform_5, window_bounds = array<i64: 1, 1, 128>}, {transform_indices = @transform_6, window_bounds = array<i64: 1, 1, 128>}]} {
    %c0_i32 = arith.constant 0 : i32
    %0 = arith.cmpi eq, %arg1, %c0_i32 : i32
    %1 = arith.extui %0 : i1 to i32
    %c0_i32_0 = arith.constant 0 : i32
    %2 = arith.cmpi ne, %1, %c0_i32_0 : i32
    scf.if %2 {
      %cst_31 = arith.constant 0.000000e+00 : f32
      %39 = vector.broadcast %cst_31 : f32 to vector<1x1x128xf32>
      %c0_32 = arith.constant 0 : index
      %c0_33 = arith.constant 0 : index
      %c0_34 = arith.constant 0 : index
      %40 = vector.load %arg6[%c0_32, %c0_33, %c0_34] : memref<1x1x128xf32, #tpu.memory_space<vmem>>, vector<1x1x128xf32>
      tpu.vector_store %arg6[%c0_32, %c0_33, %c0_34], %39 {strides = array<i32>} : memref<1x1x128xf32, #tpu.memory_space<vmem>>, vector<1x1x128xf32>,
      %cst_35 = arith.constant 0.000000e+00 : f32
      %41 = vector.broadcast %cst_35 : f32 to vector<1x1x128xf32>
      %c0_36 = arith.constant 0 : index
      %c0_37 = arith.constant 0 : index
      %c0_38 = arith.constant 0 : index
      %42 = vector.load %arg7[%c0_36, %c0_37, %c0_38] : memref<1x1x128xf32, #tpu.memory_space<vmem>>, vector<1x1x128xf32>
      tpu.vector_store %arg7[%c0_36, %c0_37, %c0_38], %41 {strides = array<i32>} : memref<1x1x128xf32, #tpu.memory_space<vmem>>, vector<1x1x128xf32>,
      %cst_39 = arith.constant 0xFF800000 : f32
      %43 = vector.broadcast %cst_39 : f32 to vector<1x1x128xf32>
      %c0_40 = arith.constant 0 : index
      %c0_41 = arith.constant 0 : index
      %c0_42 = arith.constant 0 : index
      %44 = vector.load %arg8[%c0_40, %c0_41, %c0_42] : memref<1x1x128xf32, #tpu.memory_space<vmem>>, vector<1x1x128xf32>
      tpu.vector_store %arg8[%c0_40, %c0_41, %c0_42], %43 {strides = array<i32>} : memref<1x1x128xf32, #tpu.memory_space<vmem>>, vector<1x1x128xf32>,
    } else {
    }
    %c0 = arith.constant 0 : index
    %c0_1 = arith.constant 0 : index
    %c0_2 = arith.constant 0 : index
    %3 = vector.load %arg2[%c0, %c0_1, %c0_2] : memref<1x512x128xf32, #tpu.memory_space<vmem>>, vector<1x512x128xf32>
    %4 = vector.shape_cast %3 : vector<1x512x128xf32> to vector<512x128xf32>
    %5 = arith.truncf %4 : vector<512x128xf32> to vector<512x128xbf16>
    %c0_3 = arith.constant 0 : index
    %c0_4 = arith.constant 0 : index
    %6 = vector.load %arg3[%c0_3, %c0_4] : memref<128x128xbf16, #tpu.memory_space<vmem>>, vector<128x128xbf16>
    %cst = arith.constant dense<0.000000e+00> : vector<512x128xf32>
    %7 = tpu.matmul %5, %6, %cst {dimension_numbers = #tpu.dot_dimension_numbers<[1], [0], [0], [1], [0, 0, 1, 1], [], []>} : vector<512x128xbf16>, vector<128x128xbf16>, vector<512x128xf32> -> vector<512x128xf32>
    %c0_5 = arith.constant 0 : index
    %c0_6 = arith.constant 0 : index
    %8 = vector.load %arg4[%c0_5, %c0_6] : memref<1x128xf32, #tpu.memory_space<vmem>>, vector<1x128xf32>
    %9 = vector.broadcast %8 : vector<1x128xf32> to vector<512x128xf32>
    %10 = arith.addf %7, %9 : vector<512x128xf32>
    %c0_7 = arith.constant 0 : index
    %c0_8 = arith.constant 0 : index
    %c0_9 = arith.constant 0 : index
    %11 = vector.load %arg5[%c0_7, %c0_8, %c0_9] : memref<1x512x128xf32, #tpu.memory_space<vmem>>, vector<1x512x128xf32>
    %12 = vector.shape_cast %11 : vector<1x512x128xf32> to vector<512x128xf32>
    %13 = vector.shape_cast %10 : vector<512x128xf32> to vector<1x512x128xf32>
    tpu.vector_store %arg5[%c0_7, %c0_8, %c0_9], %13 {strides = array<i32>} : memref<1x512x128xf32, #tpu.memory_space<vmem>>, vector<1x512x128xf32>,
    %c0_10 = arith.constant 0 : index
    %c0_11 = arith.constant 0 : index
    %c0_12 = arith.constant 0 : index
    %14 = vector.load %arg6[%c0_10, %c0_11, %c0_12] : memref<1x1x128xf32, #tpu.memory_space<vmem>>, vector<1x1x128xf32>
    %15 = vector.shape_cast %14 : vector<1x1x128xf32> to vector<1x128xf32>
    %cst_13 = arith.constant dense<0.000000e+00> : vector<128xf32>
    %16 = vector.multi_reduction <add>, %10, %cst_13 [0] : vector<512x128xf32> to vector<128xf32>
    %17 = vector.shape_cast %16 : vector<128xf32> to vector<1x128xf32>
    %18 = arith.addf %15, %17 : vector<1x128xf32>
    %c0_14 = arith.constant 0 : index
    %c0_15 = arith.constant 0 : index
    %c0_16 = arith.constant 0 : index
    %19 = vector.load %arg6[%c0_14, %c0_15, %c0_16] : memref<1x1x128xf32, #tpu.memory_space<vmem>>, vector<1x1x128xf32>
    %20 = vector.shape_cast %19 : vector<1x1x128xf32> to vector<1x128xf32>
    %21 = vector.shape_cast %18 : vector<1x128xf32> to vector<1x1x128xf32>
    tpu.vector_store %arg6[%c0_14, %c0_15, %c0_16], %21 {strides = array<i32>} : memref<1x1x128xf32, #tpu.memory_space<vmem>>, vector<1x1x128xf32>,
    %c0_17 = arith.constant 0 : index
    %c0_18 = arith.constant 0 : index
    %c0_19 = arith.constant 0 : index
    %22 = vector.load %arg7[%c0_17, %c0_18, %c0_19] : memref<1x1x128xf32, #tpu.memory_space<vmem>>, vector<1x1x128xf32>
    %23 = vector.shape_cast %22 : vector<1x1x128xf32> to vector<1x128xf32>
    %24 = arith.mulf %10, %10 : vector<512x128xf32>
    %cst_20 = arith.constant dense<0.000000e+00> : vector<128xf32>
    %25 = vector.multi_reduction <add>, %24, %cst_20 [0] : vector<512x128xf32> to vector<128xf32>
    %26 = vector.shape_cast %25 : vector<128xf32> to vector<1x128xf32>
    %27 = arith.addf %23, %26 : vector<1x128xf32>
    %c0_21 = arith.constant 0 : index
    %c0_22 = arith.constant 0 : index
    %c0_23 = arith.constant 0 : index
    %28 = vector.load %arg7[%c0_21, %c0_22, %c0_23] : memref<1x1x128xf32, #tpu.memory_space<vmem>>, vector<1x1x128xf32>
    %29 = vector.shape_cast %28 : vector<1x1x128xf32> to vector<1x128xf32>
    %30 = vector.shape_cast %27 : vector<1x128xf32> to vector<1x1x128xf32>
    tpu.vector_store %arg7[%c0_21, %c0_22, %c0_23], %30 {strides = array<i32>} : memref<1x1x128xf32, #tpu.memory_space<vmem>>, vector<1x1x128xf32>,
    %c0_24 = arith.constant 0 : index
    %c0_25 = arith.constant 0 : index
    %c0_26 = arith.constant 0 : index
    %31 = vector.load %arg8[%c0_24, %c0_25, %c0_26] : memref<1x1x128xf32, #tpu.memory_space<vmem>>, vector<1x1x128xf32>
    %32 = vector.shape_cast %31 : vector<1x1x128xf32> to vector<1x128xf32>
    %cst_27 = arith.constant dense<0xFF800000> : vector<128xf32>
    %33 = vector.multi_reduction <maximumf>, %4, %cst_27 [0] : vector<512x128xf32> to vector<128xf32>
    %34 = vector.shape_cast %33 : vector<128xf32> to vector<1x128xf32>
    %35 = arith.maximumf %32, %34 : vector<1x128xf32>
    %c0_28 = arith.constant 0 : index
    %c0_29 = arith.constant 0 : index
    %c0_30 = arith.constant 0 : index
    %36 = vector.load %arg8[%c0_28, %c0_29, %c0_30] : memref<1x1x128xf32, #tpu.memory_space<vmem>>, vector<1x1x128xf32>
    %37 = vector.shape_cast %36 : vector<1x1x128xf32> to vector<1x128xf32>
    %38 = vector.shape_cast %35 : vector<1x128xf32> to vector<1x1x128xf32>
    tpu.vector_store %arg8[%c0_28, %c0_29, %c0_30], %38 {strides = array<i32>} : memref<1x1x128xf32, #tpu.memory_space<vmem>>, vector<1x1x128xf32>,
    return
  }
  func.func @transform_0(%arg0: i32, %arg1: i32) -> (i32, i32, i32) {
    %c0_i32 = arith.constant 0 : i32
    %c0_i32_0 = arith.constant 0 : i32
    return %arg0, %arg1, %c0_i32 : i32, i32, i32
  }
  func.func @transform_1(%arg0: i32, %arg1: i32) -> (i32, i32) {
    %c0_i32 = arith.constant 0 : i32
    %c0_i32_0 = arith.constant 0 : i32
    %c0_i32_1 = arith.constant 0 : i32
    return %c0_i32, %c0_i32_0 : i32, i32
  }
  func.func @transform_2(%arg0: i32, %arg1: i32) -> (i32, i32) {
    %c0_i32 = arith.constant 0 : i32
    %c0_i32_0 = arith.constant 0 : i32
    %c0_i32_1 = arith.constant 0 : i32
    return %c0_i32, %c0_i32_0 : i32, i32
  }
  func.func @transform_3(%arg0: i32, %arg1: i32) -> (i32, i32, i32) {
    %c0_i32 = arith.constant 0 : i32
    %c0_i32_0 = arith.constant 0 : i32
    return %arg0, %arg1, %c0_i32 : i32, i32, i32
  }
  func.func @transform_4(%arg0: i32, %arg1: i32) -> (i32, i32, i32) {
    %c0_i32 = arith.constant 0 : i32
    %c0_i32_0 = arith.constant 0 : i32
    %c0_i32_1 = arith.constant 0 : i32
    return %arg0, %c0_i32, %c0_i32_0 : i32, i32, i32
  }
  func.func @transform_5(%arg0: i32, %arg1: i32) -> (i32, i32, i32) {
    %c0_i32 = arith.constant 0 : i32
    %c0_i32_0 = arith.constant 0 : i32
    %c0_i32_1 = arith.constant 0 : i32
    return %arg0, %c0_i32, %c0_i32_0 : i32, i32, i32
  }
  func.func @transform_6(%arg0: i32, %arg1: i32) -> (i32, i32, i32) {
    %c0_i32 = arith.constant 0 : i32
    %c0_i32_0 = arith.constant 0 : i32
    %c0_i32_1 = arith.constant 0 : i32
    return %arg0, %c0_i32, %c0_i32_0 : i32, i32, i32
  }
}

module attributes {stable_mosaic.version = 11 : i64} {
  func.func @_norm_fc_stats_kernel(%arg0: i32, %arg1: i32, %arg2: memref<1x512x128xf32, #tpu.memory_space<vmem>>, %arg3: memref<1x128xf32, #tpu.memory_space<vmem>>, %arg4: memref<1x128xf32, #tpu.memory_space<vmem>>, %arg5: memref<1x1x128xf32, #tpu.memory_space<vmem>>, %arg6: memref<128x64xbf16, #tpu.memory_space<vmem>>, %arg7: memref<1x64xf32, #tpu.memory_space<vmem>>, %arg8: memref<1x512x64xf32, #tpu.memory_space<vmem>>, %arg9: memref<1x1x64xf32, #tpu.memory_space<vmem>>, %arg10: memref<1x1x64xf32, #tpu.memory_space<vmem>>, %arg11: memref<1x1x128xf32, #tpu.memory_space<vmem>>) attributes {dimension_semantics = [#tpu.dimension_semantics<parallel>, #tpu.dimension_semantics<arbitrary>], iteration_bounds = array<i64: 2, 2>, scalar_prefetch = 0 : i64, scratch_operands = 0 : i64, tpu.core_type = #tpu.core_type<tc>, window_params = [{transform_indices = @transform_0, window_bounds = array<i64: 1, 512, 128>}, {pipeline_mode = #tpu.pipeline_mode<synchronous>, transform_indices = @transform_1, window_bounds = array<i64: 1, 128>}, {pipeline_mode = #tpu.pipeline_mode<synchronous>, transform_indices = @transform_2, window_bounds = array<i64: 1, 128>}, {transform_indices = @transform_3, window_bounds = array<i64: 1, 1, 128>}, {pipeline_mode = #tpu.pipeline_mode<synchronous>, transform_indices = @transform_4, window_bounds = array<i64: 128, 64>}, {pipeline_mode = #tpu.pipeline_mode<synchronous>, transform_indices = @transform_5, window_bounds = array<i64: 1, 64>}, {transform_indices = @transform_6, window_bounds = array<i64: 1, 512, 64>}, {transform_indices = @transform_7, window_bounds = array<i64: 1, 1, 64>}, {transform_indices = @transform_8, window_bounds = array<i64: 1, 1, 64>}, {transform_indices = @transform_9, window_bounds = array<i64: 1, 1, 128>}]} {
    %c0_i32 = arith.constant 0 : i32
    %0 = arith.cmpi eq, %arg1, %c0_i32 : i32
    %1 = arith.extui %0 : i1 to i32
    %c0_i32_0 = arith.constant 0 : i32
    %2 = arith.cmpi ne, %1, %c0_i32_0 : i32
    scf.if %2 {
      %cst_39 = arith.constant 0.000000e+00 : f32
      %51 = vector.broadcast %cst_39 : f32 to vector<1x1x64xf32>
      %c0_40 = arith.constant 0 : index
      %c0_41 = arith.constant 0 : index
      %c0_42 = arith.constant 0 : index
      %52 = vector.load %arg9[%c0_40, %c0_41, %c0_42] : memref<1x1x64xf32, #tpu.memory_space<vmem>>, vector<1x1x64xf32>
      tpu.vector_store %arg9[%c0_40, %c0_41, %c0_42], %51 {strides = array<i32>} : memref<1x1x64xf32, #tpu.memory_space<vmem>>, vector<1x1x64xf32>,
      %cst_43 = arith.constant 0.000000e+00 : f32
      %53 = vector.broadcast %cst_43 : f32 to vector<1x1x64xf32>
      %c0_44 = arith.constant 0 : index
      %c0_45 = arith.constant 0 : index
      %c0_46 = arith.constant 0 : index
      %54 = vector.load %arg10[%c0_44, %c0_45, %c0_46] : memref<1x1x64xf32, #tpu.memory_space<vmem>>, vector<1x1x64xf32>
      tpu.vector_store %arg10[%c0_44, %c0_45, %c0_46], %53 {strides = array<i32>} : memref<1x1x64xf32, #tpu.memory_space<vmem>>, vector<1x1x64xf32>,
      %cst_47 = arith.constant 0xFF800000 : f32
      %55 = vector.broadcast %cst_47 : f32 to vector<1x1x128xf32>
      %c0_48 = arith.constant 0 : index
      %c0_49 = arith.constant 0 : index
      %c0_50 = arith.constant 0 : index
      %56 = vector.load %arg11[%c0_48, %c0_49, %c0_50] : memref<1x1x128xf32, #tpu.memory_space<vmem>>, vector<1x1x128xf32>
      tpu.vector_store %arg11[%c0_48, %c0_49, %c0_50], %55 {strides = array<i32>} : memref<1x1x128xf32, #tpu.memory_space<vmem>>, vector<1x1x128xf32>,
    } else {
    }
    %c0 = arith.constant 0 : index
    %c0_1 = arith.constant 0 : index
    %c0_2 = arith.constant 0 : index
    %3 = vector.load %arg2[%c0, %c0_1, %c0_2] : memref<1x512x128xf32, #tpu.memory_space<vmem>>, vector<1x512x128xf32>
    %4 = vector.shape_cast %3 : vector<1x512x128xf32> to vector<512x128xf32>
    %c0_3 = arith.constant 0 : index
    %c0_4 = arith.constant 0 : index
    %5 = vector.load %arg3[%c0_3, %c0_4] : memref<1x128xf32, #tpu.memory_space<vmem>>, vector<1x128xf32>
    %6 = vector.broadcast %5 : vector<1x128xf32> to vector<512x128xf32>
    %7 = arith.subf %4, %6 : vector<512x128xf32>
    %c0_5 = arith.constant 0 : index
    %c0_6 = arith.constant 0 : index
    %8 = vector.load %arg4[%c0_5, %c0_6] : memref<1x128xf32, #tpu.memory_space<vmem>>, vector<1x128xf32>
    %9 = vector.broadcast %8 : vector<1x128xf32> to vector<512x128xf32>
    %10 = arith.mulf %7, %9 : vector<512x128xf32>
    %c0_7 = arith.constant 0 : index
    %c0_8 = arith.constant 0 : index
    %c0_9 = arith.constant 0 : index
    %11 = vector.load %arg5[%c0_7, %c0_8, %c0_9] : memref<1x1x128xf32, #tpu.memory_space<vmem>>, vector<1x1x128xf32>
    %12 = vector.shape_cast %11 : vector<1x1x128xf32> to vector<1x128xf32>
    %13 = vector.broadcast %12 : vector<1x128xf32> to vector<512x128xf32>
    %14 = arith.addf %10, %13 : vector<512x128xf32>
    %cst = arith.constant 0.000000e+00 : f32
    %15 = vector.broadcast %cst : f32 to vector<512x128xf32>
    %16 = arith.maximumf %14, %15 : vector<512x128xf32>
    %17 = arith.truncf %16 : vector<512x128xf32> to vector<512x128xbf16>
    %c0_10 = arith.constant 0 : index
    %c0_11 = arith.constant 0 : index
    %18 = vector.load %arg6[%c0_10, %c0_11] : memref<128x64xbf16, #tpu.memory_space<vmem>>, vector<128x64xbf16>
    %cst_12 = arith.constant dense<0.000000e+00> : vector<512x64xf32>
    %19 = tpu.matmul %17, %18, %cst_12 {dimension_numbers = #tpu.dot_dimension_numbers<[1], [0], [0], [1], [0, 0, 1, 1], [], []>} : vector<512x128xbf16>, vector<128x64xbf16>, vector<512x64xf32> -> vector<512x64xf32>
    %c0_13 = arith.constant 0 : index
    %c0_14 = arith.constant 0 : index
    %20 = vector.load %arg7[%c0_13, %c0_14] : memref<1x64xf32, #tpu.memory_space<vmem>>, vector<1x64xf32>
    %21 = vector.broadcast %20 : vector<1x64xf32> to vector<512x64xf32>
    %22 = arith.addf %19, %21 : vector<512x64xf32>
    %c0_15 = arith.constant 0 : index
    %c0_16 = arith.constant 0 : index
    %c0_17 = arith.constant 0 : index
    %23 = vector.load %arg8[%c0_15, %c0_16, %c0_17] : memref<1x512x64xf32, #tpu.memory_space<vmem>>, vector<1x512x64xf32>
    %24 = vector.shape_cast %23 : vector<1x512x64xf32> to vector<512x64xf32>
    %25 = vector.shape_cast %22 : vector<512x64xf32> to vector<1x512x64xf32>
    tpu.vector_store %arg8[%c0_15, %c0_16, %c0_17], %25 {strides = array<i32>} : memref<1x512x64xf32, #tpu.memory_space<vmem>>, vector<1x512x64xf32>,
    %c0_18 = arith.constant 0 : index
    %c0_19 = arith.constant 0 : index
    %c0_20 = arith.constant 0 : index
    %26 = vector.load %arg9[%c0_18, %c0_19, %c0_20] : memref<1x1x64xf32, #tpu.memory_space<vmem>>, vector<1x1x64xf32>
    %27 = vector.shape_cast %26 : vector<1x1x64xf32> to vector<1x64xf32>
    %cst_21 = arith.constant dense<0.000000e+00> : vector<64xf32>
    %28 = vector.multi_reduction <add>, %22, %cst_21 [0] : vector<512x64xf32> to vector<64xf32>
    %29 = vector.shape_cast %28 : vector<64xf32> to vector<1x64xf32>
    %30 = arith.addf %27, %29 : vector<1x64xf32>
    %c0_22 = arith.constant 0 : index
    %c0_23 = arith.constant 0 : index
    %c0_24 = arith.constant 0 : index
    %31 = vector.load %arg9[%c0_22, %c0_23, %c0_24] : memref<1x1x64xf32, #tpu.memory_space<vmem>>, vector<1x1x64xf32>
    %32 = vector.shape_cast %31 : vector<1x1x64xf32> to vector<1x64xf32>
    %33 = vector.shape_cast %30 : vector<1x64xf32> to vector<1x1x64xf32>
    tpu.vector_store %arg9[%c0_22, %c0_23, %c0_24], %33 {strides = array<i32>} : memref<1x1x64xf32, #tpu.memory_space<vmem>>, vector<1x1x64xf32>,
    %c0_25 = arith.constant 0 : index
    %c0_26 = arith.constant 0 : index
    %c0_27 = arith.constant 0 : index
    %34 = vector.load %arg10[%c0_25, %c0_26, %c0_27] : memref<1x1x64xf32, #tpu.memory_space<vmem>>, vector<1x1x64xf32>
    %35 = vector.shape_cast %34 : vector<1x1x64xf32> to vector<1x64xf32>
    %36 = arith.mulf %22, %22 : vector<512x64xf32>
    %cst_28 = arith.constant dense<0.000000e+00> : vector<64xf32>
    %37 = vector.multi_reduction <add>, %36, %cst_28 [0] : vector<512x64xf32> to vector<64xf32>
    %38 = vector.shape_cast %37 : vector<64xf32> to vector<1x64xf32>
    %39 = arith.addf %35, %38 : vector<1x64xf32>
    %c0_29 = arith.constant 0 : index
    %c0_30 = arith.constant 0 : index
    %c0_31 = arith.constant 0 : index
    %40 = vector.load %arg10[%c0_29, %c0_30, %c0_31] : memref<1x1x64xf32, #tpu.memory_space<vmem>>, vector<1x1x64xf32>
    %41 = vector.shape_cast %40 : vector<1x1x64xf32> to vector<1x64xf32>
    %42 = vector.shape_cast %39 : vector<1x64xf32> to vector<1x1x64xf32>
    tpu.vector_store %arg10[%c0_29, %c0_30, %c0_31], %42 {strides = array<i32>} : memref<1x1x64xf32, #tpu.memory_space<vmem>>, vector<1x1x64xf32>,
    %c0_32 = arith.constant 0 : index
    %c0_33 = arith.constant 0 : index
    %c0_34 = arith.constant 0 : index
    %43 = vector.load %arg11[%c0_32, %c0_33, %c0_34] : memref<1x1x128xf32, #tpu.memory_space<vmem>>, vector<1x1x128xf32>
    %44 = vector.shape_cast %43 : vector<1x1x128xf32> to vector<1x128xf32>
    %cst_35 = arith.constant dense<0xFF800000> : vector<128xf32>
    %45 = vector.multi_reduction <maximumf>, %16, %cst_35 [0] : vector<512x128xf32> to vector<128xf32>
    %46 = vector.shape_cast %45 : vector<128xf32> to vector<1x128xf32>
    %47 = arith.maximumf %44, %46 : vector<1x128xf32>
    %c0_36 = arith.constant 0 : index
    %c0_37 = arith.constant 0 : index
    %c0_38 = arith.constant 0 : index
    %48 = vector.load %arg11[%c0_36, %c0_37, %c0_38] : memref<1x1x128xf32, #tpu.memory_space<vmem>>, vector<1x1x128xf32>
    %49 = vector.shape_cast %48 : vector<1x1x128xf32> to vector<1x128xf32>
    %50 = vector.shape_cast %47 : vector<1x128xf32> to vector<1x1x128xf32>
    tpu.vector_store %arg11[%c0_36, %c0_37, %c0_38], %50 {strides = array<i32>} : memref<1x1x128xf32, #tpu.memory_space<vmem>>, vector<1x1x128xf32>,
    return
  }
  func.func @transform_0(%arg0: i32, %arg1: i32) -> (i32, i32, i32) {
    %c0_i32 = arith.constant 0 : i32
    %c0_i32_0 = arith.constant 0 : i32
    return %arg0, %arg1, %c0_i32 : i32, i32, i32
  }
  func.func @transform_1(%arg0: i32, %arg1: i32) -> (i32, i32) {
    %c0_i32 = arith.constant 0 : i32
    %c0_i32_0 = arith.constant 0 : i32
    %c0_i32_1 = arith.constant 0 : i32
    return %c0_i32, %c0_i32_0 : i32, i32
  }
  func.func @transform_2(%arg0: i32, %arg1: i32) -> (i32, i32) {
    %c0_i32 = arith.constant 0 : i32
    %c0_i32_0 = arith.constant 0 : i32
    %c0_i32_1 = arith.constant 0 : i32
    return %c0_i32, %c0_i32_0 : i32, i32
  }
  func.func @transform_3(%arg0: i32, %arg1: i32) -> (i32, i32, i32) {
    %c0_i32 = arith.constant 0 : i32
    %c0_i32_0 = arith.constant 0 : i32
    %c0_i32_1 = arith.constant 0 : i32
    return %arg0, %c0_i32, %c0_i32_0 : i32, i32, i32
  }
  func.func @transform_4(%arg0: i32, %arg1: i32) -> (i32, i32) {
    %c0_i32 = arith.constant 0 : i32
    %c0_i32_0 = arith.constant 0 : i32
    %c0_i32_1 = arith.constant 0 : i32
    return %c0_i32, %c0_i32_0 : i32, i32
  }
  func.func @transform_5(%arg0: i32, %arg1: i32) -> (i32, i32) {
    %c0_i32 = arith.constant 0 : i32
    %c0_i32_0 = arith.constant 0 : i32
    %c0_i32_1 = arith.constant 0 : i32
    return %c0_i32, %c0_i32_0 : i32, i32
  }
  func.func @transform_6(%arg0: i32, %arg1: i32) -> (i32, i32, i32) {
    %c0_i32 = arith.constant 0 : i32
    %c0_i32_0 = arith.constant 0 : i32
    return %arg0, %arg1, %c0_i32 : i32, i32, i32
  }
  func.func @transform_7(%arg0: i32, %arg1: i32) -> (i32, i32, i32) {
    %c0_i32 = arith.constant 0 : i32
    %c0_i32_0 = arith.constant 0 : i32
    %c0_i32_1 = arith.constant 0 : i32
    return %arg0, %c0_i32, %c0_i32_0 : i32, i32, i32
  }
  func.func @transform_8(%arg0: i32, %arg1: i32) -> (i32, i32, i32) {
    %c0_i32 = arith.constant 0 : i32
    %c0_i32_0 = arith.constant 0 : i32
    %c0_i32_1 = arith.constant 0 : i32
    return %arg0, %c0_i32, %c0_i32_0 : i32, i32, i32
  }
  func.func @transform_9(%arg0: i32, %arg1: i32) -> (i32, i32, i32) {
    %c0_i32 = arith.constant 0 : i32
    %c0_i32_0 = arith.constant 0 : i32
    %c0_i32_1 = arith.constant 0 : i32
    return %arg0, %c0_i32, %c0_i32_0 : i32, i32, i32
  }
}

module attributes {stable_mosaic.version = 11 : i64} {
  func.func @_stats_setbranch_kernel(%arg0: memref<2x1x64xf32, #tpu.memory_space<vmem>>, %arg1: memref<2x1x64xf32, #tpu.memory_space<vmem>>, %arg2: memref<2x1x128xf32, #tpu.memory_space<vmem>>, %arg3: memref<128x64xf32, #tpu.memory_space<vmem>>, %arg4: memref<1x64xf32, #tpu.memory_space<vmem>>, %arg5: memref<1x64xf32, #tpu.memory_space<vmem>>, %arg6: memref<1x64xf32, #tpu.memory_space<vmem>>, %arg7: memref<2x1x64xf32, #tpu.memory_space<vmem>>) attributes {dimension_semantics = [], scalar_prefetch = 0 : i64, scratch_operands = 0 : i64, tpu.core_type = #tpu.core_type<tc>} {
    %c0 = arith.constant 0 : index
    %c0_0 = arith.constant 0 : index
    %c0_1 = arith.constant 0 : index
    %0 = vector.load %arg0[%c0, %c0_0, %c0_1] : memref<2x1x64xf32, #tpu.memory_space<vmem>>, vector<2x1x64xf32>
    %1 = vector.shape_cast %0 : vector<2x1x64xf32> to vector<2x64xf32>
    %cst = arith.constant dense<0.000000e+00> : vector<64xf32>
    %2 = vector.multi_reduction <add>, %1, %cst [0] : vector<2x64xf32> to vector<64xf32>
    %3 = vector.shape_cast %2 : vector<64xf32> to vector<1x64xf32>
    %c0_2 = arith.constant 0 : index
    %c0_3 = arith.constant 0 : index
    %c0_4 = arith.constant 0 : index
    %4 = vector.load %arg1[%c0_2, %c0_3, %c0_4] : memref<2x1x64xf32, #tpu.memory_space<vmem>>, vector<2x1x64xf32>
    %5 = vector.shape_cast %4 : vector<2x1x64xf32> to vector<2x64xf32>
    %cst_5 = arith.constant dense<0.000000e+00> : vector<64xf32>
    %6 = vector.multi_reduction <add>, %5, %cst_5 [0] : vector<2x64xf32> to vector<64xf32>
    %7 = vector.shape_cast %6 : vector<64xf32> to vector<1x64xf32>
    %cst_6 = arith.constant 2.048000e+03 : f32
    %8 = vector.broadcast %cst_6 : f32 to vector<1x64xf32>
    %9 = arith.divf %3, %8 : vector<1x64xf32>
    %cst_7 = arith.constant 2.048000e+03 : f32
    %10 = vector.broadcast %cst_7 : f32 to vector<1x64xf32>
    %11 = arith.divf %7, %10 : vector<1x64xf32>
    %12 = arith.mulf %9, %9 : vector<1x64xf32>
    %13 = arith.subf %11, %12 : vector<1x64xf32>
    %c0_8 = arith.constant 0 : index
    %c0_9 = arith.constant 0 : index
    %14 = vector.load %arg5[%c0_8, %c0_9] : memref<1x64xf32, #tpu.memory_space<vmem>>, vector<1x64xf32>
    tpu.vector_store %arg5[%c0_8, %c0_9], %9 {strides = array<i32>} : memref<1x64xf32, #tpu.memory_space<vmem>>, vector<1x64xf32>,
    %cst_10 = arith.constant 9.99999974E-6 : f32
    %15 = vector.broadcast %cst_10 : f32 to vector<1x64xf32>
    %16 = arith.addf %13, %15 : vector<1x64xf32>
    %17 = math.rsqrt %16 : vector<1x64xf32>
    %c0_11 = arith.constant 0 : index
    %c0_12 = arith.constant 0 : index
    %18 = vector.load %arg6[%c0_11, %c0_12] : memref<1x64xf32, #tpu.memory_space<vmem>>, vector<1x64xf32>
    tpu.vector_store %arg6[%c0_11, %c0_12], %17 {strides = array<i32>} : memref<1x64xf32, #tpu.memory_space<vmem>>, vector<1x64xf32>,
    %c0_13 = arith.constant 0 : index
    %c0_14 = arith.constant 0 : index
    %c0_15 = arith.constant 0 : index
    %19 = vector.load %arg2[%c0_13, %c0_14, %c0_15] : memref<2x1x128xf32, #tpu.memory_space<vmem>>, vector<2x1x128xf32>
    %20 = vector.shape_cast %19 : vector<2x1x128xf32> to vector<2x128xf32>
    %c0_16 = arith.constant 0 : index
    %c0_17 = arith.constant 0 : index
    %21 = vector.load %arg3[%c0_16, %c0_17] : memref<128x64xf32, #tpu.memory_space<vmem>>, vector<128x64xf32>
    %cst_18 = arith.constant dense<0.000000e+00> : vector<2x64xf32>
    %22 = tpu.matmul %20, %21, %cst_18 {dimension_numbers = #tpu.dot_dimension_numbers<[1], [0], [0], [1], [0, 0, 1, 1], [], []>} : vector<2x128xf32>, vector<128x64xf32>, vector<2x64xf32> -> vector<2x64xf32>
    %c0_19 = arith.constant 0 : index
    %c0_20 = arith.constant 0 : index
    %23 = vector.load %arg4[%c0_19, %c0_20] : memref<1x64xf32, #tpu.memory_space<vmem>>, vector<1x64xf32>
    %24 = vector.broadcast %23 : vector<1x64xf32> to vector<2x64xf32>
    %25 = arith.addf %22, %24 : vector<2x64xf32>
    %cst_21 = arith.constant dense<0.000000e+00> : vector<64xf32>
    %26 = vector.multi_reduction <add>, %25, %cst_21 [0] : vector<2x64xf32> to vector<64xf32>
    %27 = vector.shape_cast %26 : vector<64xf32> to vector<1x64xf32>
    %cst_22 = arith.constant 2.000000e+00 : f32
    %28 = vector.broadcast %cst_22 : f32 to vector<1x64xf32>
    %29 = arith.divf %27, %28 : vector<1x64xf32>
    %30 = vector.broadcast %29 : vector<1x64xf32> to vector<2x64xf32>
    %31 = arith.subf %25, %30 : vector<2x64xf32>
    %32 = vector.broadcast %29 : vector<1x64xf32> to vector<2x64xf32>
    %33 = arith.subf %25, %32 : vector<2x64xf32>
    %34 = arith.mulf %31, %33 : vector<2x64xf32>
    %cst_23 = arith.constant dense<0.000000e+00> : vector<64xf32>
    %35 = vector.multi_reduction <add>, %34, %cst_23 [0] : vector<2x64xf32> to vector<64xf32>
    %36 = vector.shape_cast %35 : vector<64xf32> to vector<1x64xf32>
    %cst_24 = arith.constant 2.000000e+00 : f32
    %37 = vector.broadcast %cst_24 : f32 to vector<1x64xf32>
    %38 = arith.divf %36, %37 : vector<1x64xf32>
    %39 = vector.broadcast %29 : vector<1x64xf32> to vector<2x64xf32>
    %40 = arith.subf %25, %39 : vector<2x64xf32>
    %cst_25 = arith.constant 9.99999974E-6 : f32
    %41 = vector.broadcast %cst_25 : f32 to vector<1x64xf32>
    %42 = arith.addf %38, %41 : vector<1x64xf32>
    %43 = math.rsqrt %42 : vector<1x64xf32>
    %44 = vector.broadcast %43 : vector<1x64xf32> to vector<2x64xf32>
    %45 = arith.mulf %40, %44 : vector<2x64xf32>
    %c0_26 = arith.constant 0 : index
    %c0_27 = arith.constant 0 : index
    %c0_28 = arith.constant 0 : index
    %46 = vector.load %arg7[%c0_26, %c0_27, %c0_28] : memref<2x1x64xf32, #tpu.memory_space<vmem>>, vector<2x1x64xf32>
    %47 = vector.shape_cast %46 : vector<2x1x64xf32> to vector<2x64xf32>
    %48 = vector.shape_cast %45 : vector<2x64xf32> to vector<2x1x64xf32>
    tpu.vector_store %arg7[%c0_26, %c0_27, %c0_28], %48 {strides = array<i32>} : memref<2x1x64xf32, #tpu.memory_space<vmem>>, vector<2x1x64xf32>,
    return
  }
}

module attributes {stable_mosaic.version = 11 : i64} {
  func.func @_norm_fc1_stats_kernel(%arg0: i32, %arg1: i32, %arg2: memref<1x512x64xf32, #tpu.memory_space<vmem>>, %arg3: memref<1x64xf32, #tpu.memory_space<vmem>>, %arg4: memref<1x64xf32, #tpu.memory_space<vmem>>, %arg5: memref<1x1x64xf32, #tpu.memory_space<vmem>>, %arg6: memref<1x64xf32, #tpu.memory_space<vmem>>, %arg7: memref<1x1xf32, #tpu.memory_space<vmem>>, %arg8: memref<1x1x512xf32, #tpu.memory_space<vmem>>, %arg9: memref<1x1x1xf32, #tpu.memory_space<vmem>>, %arg10: memref<1x1x1xf32, #tpu.memory_space<vmem>>, %arg11: memref<1x1x64xf32, #tpu.memory_space<vmem>>) attributes {dimension_semantics = [#tpu.dimension_semantics<parallel>, #tpu.dimension_semantics<arbitrary>], iteration_bounds = array<i64: 2, 2>, scalar_prefetch = 0 : i64, scratch_operands = 0 : i64, tpu.core_type = #tpu.core_type<tc>, window_params = [{transform_indices = @transform_0, window_bounds = array<i64: 1, 512, 64>}, {pipeline_mode = #tpu.pipeline_mode<synchronous>, transform_indices = @transform_1, window_bounds = array<i64: 1, 64>}, {pipeline_mode = #tpu.pipeline_mode<synchronous>, transform_indices = @transform_2, window_bounds = array<i64: 1, 64>}, {transform_indices = @transform_3, window_bounds = array<i64: 1, 1, 64>}, {pipeline_mode = #tpu.pipeline_mode<synchronous>, transform_indices = @transform_4, window_bounds = array<i64: 1, 64>}, {pipeline_mode = #tpu.pipeline_mode<synchronous>, transform_indices = @transform_5, window_bounds = array<i64: 1, 1>}, {transform_indices = @transform_6, window_bounds = array<i64: 1, 1, 512>}, {transform_indices = @transform_7, window_bounds = array<i64: 1, 1, 1>}, {transform_indices = @transform_8, window_bounds = array<i64: 1, 1, 1>}, {transform_indices = @transform_9, window_bounds = array<i64: 1, 1, 64>}]} {
    %c0_i32 = arith.constant 0 : i32
    %0 = arith.cmpi eq, %arg1, %c0_i32 : i32
    %1 = arith.extui %0 : i1 to i32
    %c0_i32_0 = arith.constant 0 : i32
    %2 = arith.cmpi ne, %1, %c0_i32_0 : i32
    scf.if %2 {
      %cst_39 = arith.constant 0.000000e+00 : f32
      %50 = vector.broadcast %cst_39 : f32 to vector<1x1x1xf32>
      %c0_40 = arith.constant 0 : index
      %c0_41 = arith.constant 0 : index
      %c0_42 = arith.constant 0 : index
      %51 = vector.load %arg9[%c0_40, %c0_41, %c0_42] : memref<1x1x1xf32, #tpu.memory_space<vmem>>, vector<1x1x1xf32>
      tpu.vector_store %arg9[%c0_40, %c0_41, %c0_42], %50 {strides = array<i32>} : memref<1x1x1xf32, #tpu.memory_space<vmem>>, vector<1x1x1xf32>,
      %cst_43 = arith.constant 0.000000e+00 : f32
      %52 = vector.broadcast %cst_43 : f32 to vector<1x1x1xf32>
      %c0_44 = arith.constant 0 : index
      %c0_45 = arith.constant 0 : index
      %c0_46 = arith.constant 0 : index
      %53 = vector.load %arg10[%c0_44, %c0_45, %c0_46] : memref<1x1x1xf32, #tpu.memory_space<vmem>>, vector<1x1x1xf32>
      tpu.vector_store %arg10[%c0_44, %c0_45, %c0_46], %52 {strides = array<i32>} : memref<1x1x1xf32, #tpu.memory_space<vmem>>, vector<1x1x1xf32>,
      %cst_47 = arith.constant 0xFF800000 : f32
      %54 = vector.broadcast %cst_47 : f32 to vector<1x1x64xf32>
      %c0_48 = arith.constant 0 : index
      %c0_49 = arith.constant 0 : index
      %c0_50 = arith.constant 0 : index
      %55 = vector.load %arg11[%c0_48, %c0_49, %c0_50] : memref<1x1x64xf32, #tpu.memory_space<vmem>>, vector<1x1x64xf32>
      tpu.vector_store %arg11[%c0_48, %c0_49, %c0_50], %54 {strides = array<i32>} : memref<1x1x64xf32, #tpu.memory_space<vmem>>, vector<1x1x64xf32>,
    } else {
    }
    %c0 = arith.constant 0 : index
    %c0_1 = arith.constant 0 : index
    %c0_2 = arith.constant 0 : index
    %3 = vector.load %arg2[%c0, %c0_1, %c0_2] : memref<1x512x64xf32, #tpu.memory_space<vmem>>, vector<1x512x64xf32>
    %4 = vector.shape_cast %3 : vector<1x512x64xf32> to vector<512x64xf32>
    %c0_3 = arith.constant 0 : index
    %c0_4 = arith.constant 0 : index
    %5 = vector.load %arg3[%c0_3, %c0_4] : memref<1x64xf32, #tpu.memory_space<vmem>>, vector<1x64xf32>
    %6 = vector.broadcast %5 : vector<1x64xf32> to vector<512x64xf32>
    %7 = arith.subf %4, %6 : vector<512x64xf32>
    %c0_5 = arith.constant 0 : index
    %c0_6 = arith.constant 0 : index
    %8 = vector.load %arg4[%c0_5, %c0_6] : memref<1x64xf32, #tpu.memory_space<vmem>>, vector<1x64xf32>
    %9 = vector.broadcast %8 : vector<1x64xf32> to vector<512x64xf32>
    %10 = arith.mulf %7, %9 : vector<512x64xf32>
    %c0_7 = arith.constant 0 : index
    %c0_8 = arith.constant 0 : index
    %c0_9 = arith.constant 0 : index
    %11 = vector.load %arg5[%c0_7, %c0_8, %c0_9] : memref<1x1x64xf32, #tpu.memory_space<vmem>>, vector<1x1x64xf32>
    %12 = vector.shape_cast %11 : vector<1x1x64xf32> to vector<1x64xf32>
    %13 = vector.broadcast %12 : vector<1x64xf32> to vector<512x64xf32>
    %14 = arith.addf %10, %13 : vector<512x64xf32>
    %cst = arith.constant 0.000000e+00 : f32
    %15 = vector.broadcast %cst : f32 to vector<512x64xf32>
    %16 = arith.maximumf %14, %15 : vector<512x64xf32>
    %c0_10 = arith.constant 0 : index
    %c0_11 = arith.constant 0 : index
    %17 = vector.load %arg6[%c0_10, %c0_11] : memref<1x64xf32, #tpu.memory_space<vmem>>, vector<1x64xf32>
    %cst_12 = arith.constant dense<0.000000e+00> : vector<1x512xf32>
    %18 = tpu.matmul %17, %16, %cst_12 {dimension_numbers = #tpu.dot_dimension_numbers<[1], [1], [0], [0], [0, 0, 1, 0], [], []>} : vector<1x64xf32>, vector<512x64xf32>, vector<1x512xf32> -> vector<1x512xf32>
    %c0_13 = arith.constant 0 : index
    %c0_14 = arith.constant 0 : index
    %19 = vector.load %arg7[%c0_13, %c0_14] : memref<1x1xf32, #tpu.memory_space<vmem>>, vector<1x1xf32>
    %20 = vector.broadcast %19 : vector<1x1xf32> to vector<1x512xf32>
    %21 = arith.addf %18, %20 : vector<1x512xf32>
    %c0_15 = arith.constant 0 : index
    %c0_16 = arith.constant 0 : index
    %c0_17 = arith.constant 0 : index
    %22 = vector.load %arg8[%c0_15, %c0_16, %c0_17] : memref<1x1x512xf32, #tpu.memory_space<vmem>>, vector<1x1x512xf32>
    %23 = vector.shape_cast %22 : vector<1x1x512xf32> to vector<1x512xf32>
    %24 = vector.shape_cast %21 : vector<1x512xf32> to vector<1x1x512xf32>
    tpu.vector_store %arg8[%c0_15, %c0_16, %c0_17], %24 {strides = array<i32>} : memref<1x1x512xf32, #tpu.memory_space<vmem>>, vector<1x1x512xf32>,
    %c0_18 = arith.constant 0 : index
    %c0_19 = arith.constant 0 : index
    %c0_20 = arith.constant 0 : index
    %25 = vector.load %arg9[%c0_18, %c0_19, %c0_20] : memref<1x1x1xf32, #tpu.memory_space<vmem>>, vector<1x1x1xf32>
    %26 = vector.shape_cast %25 : vector<1x1x1xf32> to vector<1x1xf32>
    %cst_21 = arith.constant dense<0.000000e+00> : vector<1xf32>
    %27 = vector.multi_reduction <add>, %21, %cst_21 [1] : vector<1x512xf32> to vector<1xf32>
    %28 = vector.shape_cast %27 : vector<1xf32> to vector<1x1xf32>
    %29 = arith.addf %26, %28 : vector<1x1xf32>
    %c0_22 = arith.constant 0 : index
    %c0_23 = arith.constant 0 : index
    %c0_24 = arith.constant 0 : index
    %30 = vector.load %arg9[%c0_22, %c0_23, %c0_24] : memref<1x1x1xf32, #tpu.memory_space<vmem>>, vector<1x1x1xf32>
    %31 = vector.shape_cast %30 : vector<1x1x1xf32> to vector<1x1xf32>
    %32 = vector.shape_cast %29 : vector<1x1xf32> to vector<1x1x1xf32>
    tpu.vector_store %arg9[%c0_22, %c0_23, %c0_24], %32 {strides = array<i32>} : memref<1x1x1xf32, #tpu.memory_space<vmem>>, vector<1x1x1xf32>,
    %c0_25 = arith.constant 0 : index
    %c0_26 = arith.constant 0 : index
    %c0_27 = arith.constant 0 : index
    %33 = vector.load %arg10[%c0_25, %c0_26, %c0_27] : memref<1x1x1xf32, #tpu.memory_space<vmem>>, vector<1x1x1xf32>
    %34 = vector.shape_cast %33 : vector<1x1x1xf32> to vector<1x1xf32>
    %35 = arith.mulf %21, %21 : vector<1x512xf32>
    %cst_28 = arith.constant dense<0.000000e+00> : vector<1xf32>
    %36 = vector.multi_reduction <add>, %35, %cst_28 [1] : vector<1x512xf32> to vector<1xf32>
    %37 = vector.shape_cast %36 : vector<1xf32> to vector<1x1xf32>
    %38 = arith.addf %34, %37 : vector<1x1xf32>
    %c0_29 = arith.constant 0 : index
    %c0_30 = arith.constant 0 : index
    %c0_31 = arith.constant 0 : index
    %39 = vector.load %arg10[%c0_29, %c0_30, %c0_31] : memref<1x1x1xf32, #tpu.memory_space<vmem>>, vector<1x1x1xf32>
    %40 = vector.shape_cast %39 : vector<1x1x1xf32> to vector<1x1xf32>
    %41 = vector.shape_cast %38 : vector<1x1xf32> to vector<1x1x1xf32>
    tpu.vector_store %arg10[%c0_29, %c0_30, %c0_31], %41 {strides = array<i32>} : memref<1x1x1xf32, #tpu.memory_space<vmem>>, vector<1x1x1xf32>,
    %c0_32 = arith.constant 0 : index
    %c0_33 = arith.constant 0 : index
    %c0_34 = arith.constant 0 : index
    %42 = vector.load %arg11[%c0_32, %c0_33, %c0_34] : memref<1x1x64xf32, #tpu.memory_space<vmem>>, vector<1x1x64xf32>
    %43 = vector.shape_cast %42 : vector<1x1x64xf32> to vector<1x64xf32>
    %cst_35 = arith.constant dense<0xFF800000> : vector<64xf32>
    %44 = vector.multi_reduction <maximumf>, %16, %cst_35 [0] : vector<512x64xf32> to vector<64xf32>
    %45 = vector.shape_cast %44 : vector<64xf32> to vector<1x64xf32>
    %46 = arith.maximumf %43, %45 : vector<1x64xf32>
    %c0_36 = arith.constant 0 : index
    %c0_37 = arith.constant 0 : index
    %c0_38 = arith.constant 0 : index
    %47 = vector.load %arg11[%c0_36, %c0_37, %c0_38] : memref<1x1x64xf32, #tpu.memory_space<vmem>>, vector<1x1x64xf32>
    %48 = vector.shape_cast %47 : vector<1x1x64xf32> to vector<1x64xf32>
    %49 = vector.shape_cast %46 : vector<1x64xf32> to vector<1x1x64xf32>
    tpu.vector_store %arg11[%c0_36, %c0_37, %c0_38], %49 {strides = array<i32>} : memref<1x1x64xf32, #tpu.memory_space<vmem>>, vector<1x1x64xf32>,
    return
  }
  func.func @transform_0(%arg0: i32, %arg1: i32) -> (i32, i32, i32) {
    %c0_i32 = arith.constant 0 : i32
    %c0_i32_0 = arith.constant 0 : i32
    return %arg0, %arg1, %c0_i32 : i32, i32, i32
  }
  func.func @transform_1(%arg0: i32, %arg1: i32) -> (i32, i32) {
    %c0_i32 = arith.constant 0 : i32
    %c0_i32_0 = arith.constant 0 : i32
    %c0_i32_1 = arith.constant 0 : i32
    return %c0_i32, %c0_i32_0 : i32, i32
  }
  func.func @transform_2(%arg0: i32, %arg1: i32) -> (i32, i32) {
    %c0_i32 = arith.constant 0 : i32
    %c0_i32_0 = arith.constant 0 : i32
    %c0_i32_1 = arith.constant 0 : i32
    return %c0_i32, %c0_i32_0 : i32, i32
  }
  func.func @transform_3(%arg0: i32, %arg1: i32) -> (i32, i32, i32) {
    %c0_i32 = arith.constant 0 : i32
    %c0_i32_0 = arith.constant 0 : i32
    %c0_i32_1 = arith.constant 0 : i32
    return %arg0, %c0_i32, %c0_i32_0 : i32, i32, i32
  }
  func.func @transform_4(%arg0: i32, %arg1: i32) -> (i32, i32) {
    %c0_i32 = arith.constant 0 : i32
    %c0_i32_0 = arith.constant 0 : i32
    %c0_i32_1 = arith.constant 0 : i32
    return %c0_i32, %c0_i32_0 : i32, i32
  }
  func.func @transform_5(%arg0: i32, %arg1: i32) -> (i32, i32) {
    %c0_i32 = arith.constant 0 : i32
    %c0_i32_0 = arith.constant 0 : i32
    %c0_i32_1 = arith.constant 0 : i32
    return %c0_i32, %c0_i32_0 : i32, i32
  }
  func.func @transform_6(%arg0: i32, %arg1: i32) -> (i32, i32, i32) {
    %c0_i32 = arith.constant 0 : i32
    %c0_i32_0 = arith.constant 0 : i32
    return %arg0, %c0_i32, %arg1 : i32, i32, i32
  }
  func.func @transform_7(%arg0: i32, %arg1: i32) -> (i32, i32, i32) {
    %c0_i32 = arith.constant 0 : i32
    %c0_i32_0 = arith.constant 0 : i32
    %c0_i32_1 = arith.constant 0 : i32
    return %arg0, %c0_i32, %c0_i32_0 : i32, i32, i32
  }
  func.func @transform_8(%arg0: i32, %arg1: i32) -> (i32, i32, i32) {
    %c0_i32 = arith.constant 0 : i32
    %c0_i32_0 = arith.constant 0 : i32
    %c0_i32_1 = arith.constant 0 : i32
    return %arg0, %c0_i32, %c0_i32_0 : i32, i32, i32
  }
  func.func @transform_9(%arg0: i32, %arg1: i32) -> (i32, i32, i32) {
    %c0_i32 = arith.constant 0 : i32
    %c0_i32_0 = arith.constant 0 : i32
    %c0_i32_1 = arith.constant 0 : i32
    return %arg0, %c0_i32, %c0_i32_0 : i32, i32, i32
  }
}

module attributes {stable_mosaic.version = 11 : i64} {
  func.func @_stats_setbranch_kernel(%arg0: memref<2x1x1xf32, #tpu.memory_space<vmem>>, %arg1: memref<2x1x1xf32, #tpu.memory_space<vmem>>, %arg2: memref<2x1x64xf32, #tpu.memory_space<vmem>>, %arg3: memref<64x1xf32, #tpu.memory_space<vmem>>, %arg4: memref<1x1xf32, #tpu.memory_space<vmem>>, %arg5: memref<1x1xf32, #tpu.memory_space<vmem>>, %arg6: memref<1x1xf32, #tpu.memory_space<vmem>>, %arg7: memref<2x1x1xf32, #tpu.memory_space<vmem>>) attributes {dimension_semantics = [], scalar_prefetch = 0 : i64, scratch_operands = 0 : i64, tpu.core_type = #tpu.core_type<tc>} {
    %c0 = arith.constant 0 : index
    %c0_0 = arith.constant 0 : index
    %c0_1 = arith.constant 0 : index
    %0 = vector.load %arg0[%c0, %c0_0, %c0_1] : memref<2x1x1xf32, #tpu.memory_space<vmem>>, vector<2x1x1xf32>
    %1 = vector.shape_cast %0 : vector<2x1x1xf32> to vector<2x1xf32>
    %cst = arith.constant dense<0.000000e+00> : vector<1xf32>
    %2 = vector.multi_reduction <add>, %1, %cst [0] : vector<2x1xf32> to vector<1xf32>
    %3 = vector.shape_cast %2 : vector<1xf32> to vector<1x1xf32>
    %c0_2 = arith.constant 0 : index
    %c0_3 = arith.constant 0 : index
    %c0_4 = arith.constant 0 : index
    %4 = vector.load %arg1[%c0_2, %c0_3, %c0_4] : memref<2x1x1xf32, #tpu.memory_space<vmem>>, vector<2x1x1xf32>
    %5 = vector.shape_cast %4 : vector<2x1x1xf32> to vector<2x1xf32>
    %cst_5 = arith.constant dense<0.000000e+00> : vector<1xf32>
    %6 = vector.multi_reduction <add>, %5, %cst_5 [0] : vector<2x1xf32> to vector<1xf32>
    %7 = vector.shape_cast %6 : vector<1xf32> to vector<1x1xf32>
    %cst_6 = arith.constant 2.048000e+03 : f32
    %8 = vector.broadcast %cst_6 : f32 to vector<1x1xf32>
    %9 = arith.divf %3, %8 : vector<1x1xf32>
    %cst_7 = arith.constant 2.048000e+03 : f32
    %10 = vector.broadcast %cst_7 : f32 to vector<1x1xf32>
    %11 = arith.divf %7, %10 : vector<1x1xf32>
    %12 = arith.mulf %9, %9 : vector<1x1xf32>
    %13 = arith.subf %11, %12 : vector<1x1xf32>
    %c0_8 = arith.constant 0 : index
    %c0_9 = arith.constant 0 : index
    %14 = vector.load %arg5[%c0_8, %c0_9] : memref<1x1xf32, #tpu.memory_space<vmem>>, vector<1x1xf32>
    tpu.vector_store %arg5[%c0_8, %c0_9], %9 {strides = array<i32>} : memref<1x1xf32, #tpu.memory_space<vmem>>, vector<1x1xf32>,
    %cst_10 = arith.constant 9.99999974E-6 : f32
    %15 = vector.broadcast %cst_10 : f32 to vector<1x1xf32>
    %16 = arith.addf %13, %15 : vector<1x1xf32>
    %17 = math.rsqrt %16 : vector<1x1xf32>
    %c0_11 = arith.constant 0 : index
    %c0_12 = arith.constant 0 : index
    %18 = vector.load %arg6[%c0_11, %c0_12] : memref<1x1xf32, #tpu.memory_space<vmem>>, vector<1x1xf32>
    tpu.vector_store %arg6[%c0_11, %c0_12], %17 {strides = array<i32>} : memref<1x1xf32, #tpu.memory_space<vmem>>, vector<1x1xf32>,
    %c0_13 = arith.constant 0 : index
    %c0_14 = arith.constant 0 : index
    %c0_15 = arith.constant 0 : index
    %19 = vector.load %arg2[%c0_13, %c0_14, %c0_15] : memref<2x1x64xf32, #tpu.memory_space<vmem>>, vector<2x1x64xf32>
    %20 = vector.shape_cast %19 : vector<2x1x64xf32> to vector<2x64xf32>
    %c0_16 = arith.constant 0 : index
    %c0_17 = arith.constant 0 : index
    %21 = vector.load %arg3[%c0_16, %c0_17] : memref<64x1xf32, #tpu.memory_space<vmem>>, vector<64x1xf32>
    %cst_18 = arith.constant dense<0.000000e+00> : vector<2x1xf32>
    %22 = tpu.matmul %20, %21, %cst_18 {dimension_numbers = #tpu.dot_dimension_numbers<[1], [0], [0], [1], [0, 0, 1, 1], [], []>} : vector<2x64xf32>, vector<64x1xf32>, vector<2x1xf32> -> vector<2x1xf32>
    %c0_19 = arith.constant 0 : index
    %c0_20 = arith.constant 0 : index
    %23 = vector.load %arg4[%c0_19, %c0_20] : memref<1x1xf32, #tpu.memory_space<vmem>>, vector<1x1xf32>
    %24 = vector.broadcast %23 : vector<1x1xf32> to vector<2x1xf32>
    %25 = arith.addf %22, %24 : vector<2x1xf32>
    %cst_21 = arith.constant dense<0.000000e+00> : vector<1xf32>
    %26 = vector.multi_reduction <add>, %25, %cst_21 [0] : vector<2x1xf32> to vector<1xf32>
    %27 = vector.shape_cast %26 : vector<1xf32> to vector<1x1xf32>
    %cst_22 = arith.constant 2.000000e+00 : f32
    %28 = vector.broadcast %cst_22 : f32 to vector<1x1xf32>
    %29 = arith.divf %27, %28 : vector<1x1xf32>
    %30 = vector.broadcast %29 : vector<1x1xf32> to vector<2x1xf32>
    %31 = arith.subf %25, %30 : vector<2x1xf32>
    %32 = vector.broadcast %29 : vector<1x1xf32> to vector<2x1xf32>
    %33 = arith.subf %25, %32 : vector<2x1xf32>
    %34 = arith.mulf %31, %33 : vector<2x1xf32>
    %cst_23 = arith.constant dense<0.000000e+00> : vector<1xf32>
    %35 = vector.multi_reduction <add>, %34, %cst_23 [0] : vector<2x1xf32> to vector<1xf32>
    %36 = vector.shape_cast %35 : vector<1xf32> to vector<1x1xf32>
    %cst_24 = arith.constant 2.000000e+00 : f32
    %37 = vector.broadcast %cst_24 : f32 to vector<1x1xf32>
    %38 = arith.divf %36, %37 : vector<1x1xf32>
    %39 = vector.broadcast %29 : vector<1x1xf32> to vector<2x1xf32>
    %40 = arith.subf %25, %39 : vector<2x1xf32>
    %cst_25 = arith.constant 9.99999974E-6 : f32
    %41 = vector.broadcast %cst_25 : f32 to vector<1x1xf32>
    %42 = arith.addf %38, %41 : vector<1x1xf32>
    %43 = math.rsqrt %42 : vector<1x1xf32>
    %44 = vector.broadcast %43 : vector<1x1xf32> to vector<2x1xf32>
    %45 = arith.mulf %40, %44 : vector<2x1xf32>
    %c0_26 = arith.constant 0 : index
    %c0_27 = arith.constant 0 : index
    %c0_28 = arith.constant 0 : index
    %46 = vector.load %arg7[%c0_26, %c0_27, %c0_28] : memref<2x1x1xf32, #tpu.memory_space<vmem>>, vector<2x1x1xf32>
    %47 = vector.shape_cast %46 : vector<2x1x1xf32> to vector<2x1xf32>
    %48 = vector.shape_cast %45 : vector<2x1xf32> to vector<2x1x1xf32>
    tpu.vector_store %arg7[%c0_26, %c0_27, %c0_28], %48 {strides = array<i32>} : memref<2x1x1xf32, #tpu.memory_space<vmem>>, vector<2x1x1xf32>,
    return
  }
}

module attributes {stable_mosaic.version = 11 : i64} {
  func.func @_finalize_kernel(%arg0: i32, %arg1: i32, %arg2: memref<1x1x512xf32, #tpu.memory_space<vmem>>, %arg3: memref<1x1xf32, #tpu.memory_space<vmem>>, %arg4: memref<1x1xf32, #tpu.memory_space<vmem>>, %arg5: memref<1x1x1xf32, #tpu.memory_space<vmem>>, %arg6: memref<1x1x512xf32, #tpu.memory_space<vmem>>) attributes {dimension_semantics = [#tpu.dimension_semantics<parallel>, #tpu.dimension_semantics<parallel>], iteration_bounds = array<i64: 2, 2>, scalar_prefetch = 0 : i64, scratch_operands = 0 : i64, tpu.core_type = #tpu.core_type<tc>, window_params = [{transform_indices = @transform_0, window_bounds = array<i64: 1, 1, 512>}, {pipeline_mode = #tpu.pipeline_mode<synchronous>, transform_indices = @transform_1, window_bounds = array<i64: 1, 1>}, {pipeline_mode = #tpu.pipeline_mode<synchronous>, transform_indices = @transform_2, window_bounds = array<i64: 1, 1>}, {transform_indices = @transform_3, window_bounds = array<i64: 1, 1, 1>}, {transform_indices = @transform_4, window_bounds = array<i64: 1, 1, 512>}]} {
    %c0 = arith.constant 0 : index
    %c0_0 = arith.constant 0 : index
    %c0_1 = arith.constant 0 : index
    %0 = vector.load %arg2[%c0, %c0_0, %c0_1] : memref<1x1x512xf32, #tpu.memory_space<vmem>>, vector<1x1x512xf32>
    %1 = vector.shape_cast %0 : vector<1x1x512xf32> to vector<1x512xf32>
    %c0_2 = arith.constant 0 : index
    %c0_3 = arith.constant 0 : index
    %2 = vector.load %arg3[%c0_2, %c0_3] : memref<1x1xf32, #tpu.memory_space<vmem>>, vector<1x1xf32>
    %3 = vector.broadcast %2 : vector<1x1xf32> to vector<1x512xf32>
    %4 = arith.subf %1, %3 : vector<1x512xf32>
    %c0_4 = arith.constant 0 : index
    %c0_5 = arith.constant 0 : index
    %5 = vector.load %arg4[%c0_4, %c0_5] : memref<1x1xf32, #tpu.memory_space<vmem>>, vector<1x1xf32>
    %6 = vector.broadcast %5 : vector<1x1xf32> to vector<1x512xf32>
    %7 = arith.mulf %4, %6 : vector<1x512xf32>
    %c0_6 = arith.constant 0 : index
    %c0_7 = arith.constant 0 : index
    %c0_8 = arith.constant 0 : index
    %8 = vector.load %arg5[%c0_6, %c0_7, %c0_8] : memref<1x1x1xf32, #tpu.memory_space<vmem>>, vector<1x1x1xf32>
    %9 = vector.shape_cast %8 : vector<1x1x1xf32> to vector<1x1xf32>
    %10 = vector.broadcast %9 : vector<1x1xf32> to vector<1x512xf32>
    %11 = arith.addf %7, %10 : vector<1x512xf32>
    %cst = arith.constant 0.000000e+00 : f32
    %12 = vector.broadcast %cst : f32 to vector<1x512xf32>
    %13 = arith.maximumf %11, %12 : vector<1x512xf32>
    %c0_9 = arith.constant 0 : index
    %c0_10 = arith.constant 0 : index
    %c0_11 = arith.constant 0 : index
    %14 = vector.load %arg6[%c0_9, %c0_10, %c0_11] : memref<1x1x512xf32, #tpu.memory_space<vmem>>, vector<1x1x512xf32>
    %15 = vector.shape_cast %14 : vector<1x1x512xf32> to vector<1x512xf32>
    %16 = vector.shape_cast %13 : vector<1x512xf32> to vector<1x1x512xf32>
    tpu.vector_store %arg6[%c0_9, %c0_10, %c0_11], %16 {strides = array<i32>} : memref<1x1x512xf32, #tpu.memory_space<vmem>>, vector<1x1x512xf32>,
    return
  }
  func.func @transform_0(%arg0: i32, %arg1: i32) -> (i32, i32, i32) {
    %c0_i32 = arith.constant 0 : i32
    %c0_i32_0 = arith.constant 0 : i32
    return %arg0, %c0_i32, %arg1 : i32, i32, i32
  }
  func.func @transform_1(%arg0: i32, %arg1: i32) -> (i32, i32) {
    %c0_i32 = arith.constant 0 : i32
    %c0_i32_0 = arith.constant 0 : i32
    %c0_i32_1 = arith.constant 0 : i32
    return %c0_i32, %c0_i32_0 : i32, i32
  }
  func.func @transform_2(%arg0: i32, %arg1: i32) -> (i32, i32) {
    %c0_i32 = arith.constant 0 : i32
    %c0_i32_0 = arith.constant 0 : i32
    %c0_i32_1 = arith.constant 0 : i32
    return %c0_i32, %c0_i32_0 : i32, i32
  }
  func.func @transform_3(%arg0: i32, %arg1: i32) -> (i32, i32, i32) {
    %c0_i32 = arith.constant 0 : i32
    %c0_i32_0 = arith.constant 0 : i32
    %c0_i32_1 = arith.constant 0 : i32
    return %arg0, %c0_i32, %c0_i32_0 : i32, i32, i32
  }
  func.func @transform_4(%arg0: i32, %arg1: i32) -> (i32, i32, i32) {
    %c0_i32 = arith.constant 0 : i32
    %c0_i32_0 = arith.constant 0 : i32
    return %arg0, %c0_i32, %arg1 : i32, i32, i32
  }
}

</mosaic_0001>

<bundles_post_ra>
// kernel: deepsets_block.8
= control target key start
LH: loop header
LB: loop body
LE: loop exit
PB: predicated region body
PF: predicated region fallthrough
CT: control target
= control target key end

     0   :  { %v348_v0 = vmov 0.0|0.0   ;;  %vm349_vm0 = vmmov 0   ;;  %v350_v4 = vmov 0.0   ;;  %v351_v5 = vmov 1966171168   ;;  %s494_s3 = inlined_call_operand.vmem [shape: f32[128,128], index: 3, kind: input, shape index: {}]   ;;  %s495_s0 = inlined_call_operand.vmem [shape: f32[2,1,128], index: 0, kind: input, shape index: {}]   ;;  %s496_s1 = inlined_call_operand.vmem [shape: f32[2,1,128], index: 1, kind: input, shape index: {}]   ;;  %s497_s2 = inlined_call_operand.vmem [shape: f32[2,1,128], index: 2, kind: input, shape index: {}]   ;;  %s498_s5 = inlined_call_operand.vmem [shape: f32[1,128], index: 5, kind: output, shape index: {0}]   ;;  %s499_s6 = inlined_call_operand.vmem [shape: f32[1,128], index: 6, kind: output, shape index: {1}]   ;;  %s500_s4 = inlined_call_operand.vmem [shape: f32[1,128], index: 4, kind: input, shape index: {}]   ;;  %s501_s7 = inlined_call_operand.vmem [shape: f32[2,1,128], index: 7, kind: output, shape index: {2}]  }
   0x1   :  { %316 = vmatprep.subr.bf16.mxu0 %v348_v0  ;;  %v89_v1 = vld [vmem:[%s494_s3] sm:$0xff]  ;;  %v90_v2 = vld [vmem:[%s494_s3 + $0x8] sm:$0xff]  ;;  %v91_v3 = vld [vmem:[%s494_s3 + $0x10] sm:$0xff]  ;;  %313 = vmatprep.mubr.msk.f32.mxu0 %vm349_vm0, %v350_v4  ;;  %v29_v6 = vunpack.c.l.s4 %v351_v5  ;;  %v31_v7 = vlaneseq  ;;  %vm43_vm1 = vcmask 1041408  }
   0x2   :  { %v317_v8 = vpack.c.bf16 %v90_v2, %v89_v1  ;;  %v92_v9 = vld [vmem:[%s494_s3 + $0x18] sm:$0xff]  ;;  %v93_v13 = vld [vmem:[%s494_s3 + $0x20] sm:$0xff]  ;;  %v94_v14 = vld [vmem:[%s494_s3 + $0x28] sm:$0xff] }
   0x3   :  { %v320_v10 = vpack.c.bf16 %v92_v9, %v91_v3  ;;  %v30_v11 = vunpack.c.0.s8 %v29_v6  ;;  %v32_v12 = vshrl.u32 %v31_v7, 7  ;;  %v23_v15 = vld [vmem:[%s495_s0] sm:$0x1]  ;;  %v24_v16 = vld [vmem:[%s495_s0 + $0x1] sm:$0x1]  ;;  %v323_v18 = vpack.c.bf16 %v94_v14, %v93_v13  ;;  %v95_v22 = vld [vmem:[%s494_s3 + $0x30] sm:$0xff] }
   0x4   :  { %318 = vmatpush3.bf16.msra.mxu0 %v317_v8  ;;  %v51_v17 = vld [vmem:[%s496_s1] sm:$0x1]  ;;  %v27_v20 = vcombine.low %v23_v15, %v24_v16  ;;  %v52_v21 = vld [vmem:[%s496_s1 + $0x1] sm:$0x1]  ;;  %v96_v23 = vld [vmem:[%s494_s3 + $0x38] sm:$0xff] }
   0x5   :  { %319 = vmatprep.subr.bf16.mxu0 %v348_v0  ;;  %v421_v19 = vsub.s32 %v30_v11, %v32_v12  ;;  %v55_v24 = vcombine.low %v51_v17, %v52_v21  ;;  %v326_v27 = vpack.c.bf16 %v96_v23, %v95_v22  ;;  %v97_v29 = vld [vmem:[%s494_s3 + $0x40] sm:$0xff]  ;;  %v98_v30 = vld [vmem:[%s494_s3 + $0x48] sm:$0xff]  ;;  %v99_v37 = vld [vmem:[%s494_s3 + $0x50] sm:$0xff] }
   0x6   :  { %v329_v35 = vpack.c.bf16 %v98_v30, %v97_v29  ;;  %v100_v38 = vld [vmem:[%s494_s3 + $0x58] sm:$0xff]  ;;  %v87_v43 = vld [vmem:[%s497_s2] sm:$0x1]  ;;  %v88_v44 = vld [vmem:[%s497_s2 + $0x1] sm:$0x1] }
   0x7   :  { %v34_v25 = vrot.slane %v27_v20, %v421_v19  ;;  %v62_v26 = vrot.slane %v55_v24, %v421_v19  ;;  %v332_v42 = vpack.c.bf16 %v100_v38, %v99_v37  ;;  %v101_v46 = vld [vmem:[%s494_s3 + $0x60] sm:$0xff]  ;;  %v102_v47 = vld [vmem:[%s494_s3 + $0x68] sm:$0xff]  ;;  %v114_v50 = vcombine.low %v87_v43, %v88_v44  ;;  %v103_v54 = vld [vmem:[%s494_s3 + $0x70] sm:$0xff] }
   0x8   :  { %321 = vmatpush3.bf16.msra.mxu0 %v320_v10  ;;  %v335_v52 = vpack.c.bf16 %v102_v47, %v101_v46  ;;  %v104_v55 = vld [vmem:[%s494_s3 + $0x78] sm:$0xff] }
   0x9   :  { %322 = vmatprep.subr.bf16.mxu0 %v348_v0  ;;  %v41_v28 = vrot.slane %v34_v25, %v421_v19  ;;  %v69_v31 = vrot.slane %v62_v26, %v421_v19  ;;  %v121_v58 = vrot.slane %v114_v50, %v421_v19  ;;  %v338_v60 = vpack.c.bf16 %v104_v55, %v103_v54 }
   0xb   :  { %v44_v32 = vsel %vm43_vm1, %v41_v28, 0.0  ;;  %v71_v34 = vsel %vm43_vm1, %v69_v31, 0.0  ;;  %v128_v63 = vrot.slane %v121_v58, %v421_v19 }
   0xc   :  { %324 = vmatpush3.bf16.msra.mxu0 %v323_v18  ;;  %v45_v33 = vrot.slane %v44_v32, 4  ;;  %v72_v36 = vrot.slane %v71_v34, 4 }
   0xd   :  { %325 = vmatprep.subr.bf16.mxu0 %v348_v0 }
   0xe   :  { %v46_v39 = vadd.f32 %v45_v33, %v44_v32  ;;  %v73_v40 = vadd.f32 %v72_v36, %v71_v34 }
  0x10   :  { %327 = vmatpush3.bf16.msra.mxu0 %v326_v27  ;;  %v47_v41 = vrot.slane %v46_v39, 2  ;;  %v74_v45 = vrot.slane %v73_v40, 2 }
  0x11   :  { %328 = vmatprep.subr.bf16.mxu0 %v348_v0 }
  0x12   :  { %v48_v48 = vadd.f32 %v47_v41, %v46_v39  ;;  %v75_v49 = vadd.f32 %v74_v45, %v73_v40 }
  0x14   :  { %330 = vmatpush3.bf16.msra.mxu0 %v329_v35  ;;  %v49_v51 = vrot.slane %v48_v48, 1  ;;  %v76_v53 = vrot.slane %v75_v49, 1 }
  0x15   :  { %331 = vmatprep.subr.bf16.mxu0 %v348_v0 }
  0x16   :  { %v50_v56 = vadd.f32 %v49_v51, %v48_v48  ;;  %v77_v57 = vadd.f32 %v76_v53, %v75_v49 }
  0x18   :  { %333 = vmatpush3.bf16.msra.mxu0 %v332_v42  ;;  %v79_v59 = vmul.f32 0.00048828125, %v50_v56  ;;  %v80_v61 = vmul.f32 0.00048828125, %v77_v57 }
  0x19   :  { %334 = vmatprep.subr.bf16.mxu0 %v348_v0 }
  0x1a   :  { %v81_v62 = vmul.f32 %v79_v59, %v79_v59  ;;  %83 = vst [vmem:[%s498_s5] sm:$0x1] %v79_v59 }
  0x1c   :  { %336 = vmatpush3.bf16.msra.mxu0 %v335_v52  ;;  %v82_v1 = vsub.f32 %v80_v61, %v81_v62 }
  0x1d   :  { %337 = vmatprep.subr.bf16.mxu0 %v348_v0  ;;  %v261_v0 = vld [vmem:[%s500_s4] ss:$0 sm:$0xff] }
  0x1e   :  { %v84_v2 = vadd.f32 1e-05, %v82_v1 }
  0x20   :  { %339 = vmatpush3.bf16.msra.mxu0 %v338_v60  ;;  %344 = vrsqrt.f32 %v84_v2 }
  0x23   :  { %314 = vmatmul.mubr.f32.vlgmr.msra.gmra.mrb[0].mxu0 %v128_v63 }
  0x2a   :  { %v345_v3 = vpop.eup %344 }
  0x2b   :  { %86 = vst [vmem:[%s499_s6] sm:$0x1] %v345_v3 }
  0xf6   :  { %v196_v4 = vpop.f32.mrb[0].mxu0 }
  0xf7   :  { %v197_v5 = vadd.f32 %v261_v0, %v196_v4  ;;  %v315_v6 = vpop.f32.mrb[1].mxu0 }
  0xf9   :  { %v200_v7 = vsel %vm43_vm1, %v197_v5, 0.0 }
  0xfa   :  { %v201_v8 = vrot.slane %v200_v7, 4 }
  0xfc   :  { %v202_v9 = vadd.f32 %v201_v8, %v200_v7 }
  0xfe   :  { %v203_v10 = vrot.slane %v202_v9, 2 }
 0x100   :  { %v204_v11 = vadd.f32 %v203_v10, %v202_v9 }
 0x102   :  { %v205_v12 = vrot.slane %v204_v11, 1 }
 0x104   :  { %v206_v13 = vadd.f32 %v205_v12, %v204_v11 }
 0x106   :  { %v208_v14 = vmul.f32 0.5, %v206_v13 }
 0x108   :  { %v209_v15 = vsub.f32 %v197_v5, %v208_v14 }
 0x10a   :  { %v210_v16 = vmul.f32 %v209_v15, %v209_v15 }
 0x10c   :  { %v211_v17 = vsel %vm43_vm1, %v210_v16, 0.0 }
 0x10d   :  { %v212_v18 = vrot.slane %v211_v17, 4 }
 0x10f   :  { %v213_v20 = vadd.f32 %v212_v18, %v211_v17 }
 0x111   :  { %v214_v21 = vrot.slane %v213_v20, 2 }
 0x113   :  { %v215_v22 = vadd.f32 %v214_v21, %v213_v20 }
 0x115   :  { %v216_v23 = vrot.slane %v215_v22, 1 }
 0x117   :  { %v217_v24 = vadd.f32 %v216_v23, %v215_v22 }
 0x119   :  { %v218_v25 = vmul.f32 0.5, %v217_v24 }
 0x11b   :  { %v219_v26 = vadd.f32 1e-05, %v218_v25 }
 0x11d   :  { %346 = vrsqrt.f32 %v219_v26 }
 0x127   :  { %v347_v27 = vpop.eup %346 }
 0x128   :  { %v221_v28 = vmul.f32 %v347_v27, %v209_v15 }
 0x12a   :  { %v229_v29 = vrot.slane %v221_v28, %v421_v19 }
 0x12c   :  { %v230_v30 = vcombine.high %v229_v29, %v229_v29  ;;  %262 = vst.sshfl [vmem:[%s501_s7] sm:$0x1 pattern:$0x73625140] %v229_v29 }
 0x12e   :  { %263 = vst.sshfl [vmem:[%s501_s7 + $0x1] sm:$0x1 pattern:$0x73625140] %v230_v30 }

// kernel: deepsets_block.7
= control target key start
LH: loop header
LB: loop body
LE: loop exit
PB: predicated region body
PF: predicated region fallthrough
CT: control target
= control target key end

     0   :  { %s2513_s0 = inlined_call_operand.hbm [shape: f32[2,1024,128], index: 0, kind: input, shape index: {}]   ;;  %s2514_s1 = inlined_call_operand.vmem [shape: bf16[128,128], index: 1, kind: input, shape index: {}]   ;;  %s2515_s2 = inlined_call_operand.vmem [shape: f32[1,128], index: 2, kind: input, shape index: {}]   ;;  %s2516_s3 = inlined_call_operand.vmem [shape: f32[2,1024,128], index: 3, kind: output, shape index: {0}]   ;;  %s2517_s4 = inlined_call_operand.vmem [shape: f32[2,1,128], index: 4, kind: output, shape index: {1}]   ;;  %s2518_s5 = inlined_call_operand.vmem [shape: f32[2,1,128], index: 5, kind: output, shape index: {2}]   ;;  %s2519_s6 = inlined_call_operand.vmem [shape: f32[2,1,128], index: 6, kind: output, shape index: {3}]  }
   0x1   :  { %2522 = sst [smem:[#allocation7_spill]] %s2515_s2 }
   0x2   :  { %12 = vsyncpa [#allocation3], 0 }
   0x3   :  { %14 = vsyncpa [#allocation3 + $0x1], 0  ;;  %s1688_s21 = smov 0   ;;  %s1690_s22 = smov 0  }
   0x4   :  { %s1692_s23 = smov 0   ;;  %s1694_s24 = smov 0  }
   0x5   :  { %s1696_s25 = smov 0   ;;  %s1698_s26 = smov 0  }
   0x6   :  { %s1700_s27 = smov 0   ;;  %s1702_s28 = smov 0  }
   0x7 LB: > { %s1306_s29 = sadd.s32 4294967295, %s1646_s28   ;;  %s29_s30 = sadd.s32 1, %s1638_s26  ;;  %s1646_s28 = sphi %s1702_s28, %s20_s28   ;;  %s1642_s27 = sphi %s1700_s27, %s2539_s27   ;;  %s1638_s26 = sphi %s1698_s26, %s2538_s26   ;;  %s1634_s25 = sphi %s1696_s25, %s2537_s25   ;;  %s1630_s24 = sphi %s1694_s24, %s2536_s24   ;;  %s1626_s23 = sphi %s1692_s23, %s2535_s23   ;;  %s1622_s22 = sphi %s1690_s22, %s2534_s22   ;;  %s1618_s21 = sphi %s1688_s21, %s2533_s21  }
   0x8   : > { %p30_p0 = scmp.ge.s32.totalorder %s29_s30, 2  ;;  %s32_s7 = sadd.s32 1, %s1642_s27 }
   0x9   : > { %s41_s8 = sadd.s32 1, %s1626_s23  ;;  %p48_p1 = scmp.ne.s32.totalorder %s1626_s23, %s1622_s22 }
   0xa   : > { %s2541_s30 = smov (%p30_p0, %s29_s30), 0  ;;  %s2543_s7 = smov (!%p30_p0, %s32_s7), %s1642_s27 }
   0xb   : > { %2523 = sst [smem:[#allocation5_spill]] %s2541_s30  ;;  %s37_s9 = ssub.s32 %s1638_s26, %s2541_s30 }
   0xc   : > { %p49_p2 = scmp.eq.s32.totalorder %s1646_s28, 0  ;;  %p34_p3 = scmp.ge.s32.totalorder %s2543_s7, 2 }
   0xd   : > { %p54_p4 = scmp.ne.s32.totalorder %s1622_s22, %s1618_s21  ;;  %p55_p6 = scmp.eq.s32.totalorder %s1306_s29, 0 }
   0xe   : > { %p1739_p5 = por %p49_p2, %p48_p1  ;;  %s2545_s7 = smov (%p34_p3, %s2543_s7), 0 }
   0xf   : > { %2525 = sst [smem:[#allocation6_spill]] %s2545_s7  ;;  %p1745_p7 = por %p55_p6, %p54_p4 }
  0x10   : > { %s36_s12 = ssub.s32 %s1642_s27, %s2545_s7  ;;  %p1473_p8 = scmp.lt.s32.totalorder %s1646_s28, 4 }
  0x11   : > { %s38_s13 = sor.u32 %s37_s9, %s36_s12  ;;  %s232_s14 = sand.u32 1, %s1626_s23  }
  0x12   : > { %p39_p9 = scmp.eq.s32.totalorder %s38_s13, 0  ;;  %s1310_s15 = sshll.u32 %s232_s14, 9 }
  0x13   : > { %s1311_s16 = sshll.u32 %s1638_s26, 6  ;;  %s1312_s18 = sshll.u32 %s1642_s27, 7 }
  0x14   : > { %s1755_s17 = scalar_select %p39_p9, %s1626_s23, %s41_s8  }
  0x15   : > { %s242_s19 = sadd.s32 %s1312_s18, %s1311_s16  ;;  %s236_s20 = scalar_lea.vmem [#allocation2], %s1310_s15 }
  0x16   : > { %s245_s21 = sshll.u32 %s236_s20, 4  ;;  %s1313_s29 = sshll.u32 %s242_s19, 7  ;;  %s1758_s21 = int_to_ptr.vmem [resolvable:$true] %s245_s21 }
  0x17   : > { %s1763_s7 = scalar_lea.hbm %s2513_s0, %s1313_s29  ;;  %p1769_p10 = pnand %p1473_p8, %p1739_p5 }
  0x18   : > { %s1774_s9 = scalar_lea.sflag [#allocation3], %s232_s14  ;;  %s1550_s12 = scalar_lea.hbm %s1763_s7, 8192 }
  0x19   : > { %p1551_p12 = scmp.ne.s32.totalorder %s1763_s7, %s1550_s12  ;;  %p1552_p13 = pneg %p1769_p10 }
  0x1a   : > { %s1555_s10 = scalar_lea.hbm %s2513_s0, 32768  ;;  %p1556_p2 = scmp.lt.u32.totalorder %s1763_s7, %s2513_s0 }
  0x1b   : > { %p1553_p0 = pnand %p1552_p13, %p1551_p12  ;;  %p1557_p3 = scmp.lt.u32.totalorder %s1555_s10, %s1550_s12 }
  0x1c   : > { %p1559_p5 = scmp.lt.u32.totalorder %s1550_s12, %s1763_s7 }
  0x1d   : > { %p1554_p1 = pneg %p1553_p0  ;;  %p1558_p4 = por %p1557_p3, %p1556_p2 }
  0x1f   : > { %p1560_p6 = por %p1559_p5, %p1558_p4 }
  0x21   : > { %p1561_p8 = pnand %p1560_p6, %p1554_p1 }
  0x23   : > { %1564 = shalt.err (!%p1561_p8)
}
  0x24   : > { %s1565_s14 = scalar_lea.vmem %s1758_s21, 8192  ;;  %s1648_s16 = smov [#allocation2]  }
  0x25   : > { %p1566_p9 = scmp.ne.s32.totalorder %s1758_s21, %s1565_s14  ;;  %s1570_s18 = sshll.u32 %s1648_s16, 4  ;;  %s1571_s18 = int_to_ptr.vmem [resolvable:$false] %s1570_s18 }
  0x26   : > { %s1572_s19 = scalar_lea.vmem %s1571_s18, 16384  ;;  %p1573_p11 = scmp.lt.s32.totalorder %s1758_s21, %s1571_s18 }
  0x27   : > { %p1568_p12 = pnand %p1566_p9, %p1552_p13  ;;  %p1574_p2 = scmp.lt.s32.totalorder %s1572_s19, %s1565_s14 }
  0x29   : > { %p1569_p0 = pneg %p1568_p12  ;;  %p1575_p3 = por %p1574_p2, %p1573_p11 }
  0x2b   : > { %p1576_p4 = pnand %p1575_p3, %p1569_p0 }
  0x2d   : > { %1579 = shalt.err (!%p1576_p4)
}
  0x2e   : > { %s1649_s20 = smov 128   ;;  %s1650_s29 = smov 8  }
  0x2f   : > { %1472 = dma.hbm_to_vmem [thread:$0]  (!%p1769_p10), %s1763_s7, 8192, %s1758_s21, %s1774_s9, %s1649_s20, %s1649_s20, %s1650_s29  }
  0x30   : > { %p253_p13 = scmp.lt.s32.totalorder %s1646_s28, 5  ;;  %p2528_p1 = scmp.ge.s32.totalorder %s1646_s28, 1 }
  0x32   : > { %p254_p5 = pnand %p2528_p1, %p253_p13 }
  0x33   : > { %s259_s12 = sand.u32 (!%p254_p5), 1, %s1622_s22  }
  0x34   : > { %257 = sbr.rel (%p254_p5) target bundleno = 467 (0x1d3), region = 32  ;;  %s1315_s2 = sshll.u32 (!%p254_p5), %s259_s12, 9 }
  0x35   : > { %s260_s30 = scalar_lea.sflag (!%p254_p5), [#allocation3], %s259_s12  ;;  %s1806_s10 = scalar_lea.vmem (!%p254_p5), [#allocation2], %s1315_s2 }
  0x3b   : > { %1613 = dma.done.wait (%p1745_p7), %s260_s30, 8192  }
  0x3c   : > { %1615 = vsyncadd (%p1745_p7), %s260_s30, 4294959104  ;;  %s1316_s7 = sshll.u32 %s1630_s24, 6  ;;  %p307_p10 = scmp.lt.s32.totalorder %s1634_s25, 1 }
  0x3d   : > { %p309_p11 = scmp.lt.s32.totalorder %s1316_s7, 127  ;;  %p1319_p7 = scmp.ne.s32.totalorder %s1630_s24, 0 }
  0x3e   : > { %s2547_s25 = smov (!%p307_p10, %s1634_s25), 1  ;;  %v1651_v0 = vmov (!%p1319_p7), 0.0   ;;  %v1652_v1 = vmov (!%p1319_p7), -inf  }
  0x3f   : > { %s2549_s7 = smov (!%p309_p11, %s1316_s7), 127  ;;  %s1317_s21 = sshll.u32 %s2547_s25, 7 }
  0x40   : > { %s1818_s13 = scalar_lea.vmem %s2517_s4, %s2547_s25  ;;  %s312_s15 = sadd.s32 %s1317_s21, %s2549_s7 }
  0x41   : > { %s1823_s11 = scalar_lea.vmem %s2518_s5, %s2547_s25  ;;  %s1318_s18 = sshll.u32 %s312_s15, 3  ;;  %330 = vst [vmem:[%s1818_s13] sm:$0x1] (!%p1319_p7), %v1651_v0 }
  0x42   : > { %s1828_s29 = scalar_lea.vmem %s2519_s6, %s2547_s25  ;;  %s1833_s30 = scalar_lea.vmem %s2516_s3, %s1318_s18  ;;  %331 = vst [vmem:[%s1823_s11] sm:$0x1] (!%p1319_p7), %v1651_v0 }
  0x43   : > { %329 = sbr.rel (%p1319_p7) target bundleno = 74 (0x4a), region = 40  ;;  %332 = vst [vmem:[%s1828_s29] sm:$0x1] (!%p1319_p7), %v1652_v1 }
  0x4a PF: > { %v1542_v2 = vld [vmem:[%s2514_s1] sm:$0xff]   ;;  %v1543_v3 = vld [vmem:[%s2514_s1 + $0x8] sm:$0xff]   ;;  %v1544_v4 = vld [vmem:[%s2514_s1 + $0x10] sm:$0xff]   ;;  %s2530_s21 = sld [smem:[#allocation7_spill]] }
  0x4b   : > { %1371 = vmatprep.subr.bf16.mxu0 %v1542_v2  ;;  %1451 = vmatprep.subr.bf16.mxu1 %v1542_v2  ;;  %v1545_v5 = vld [vmem:[%s2514_s1 + $0x18] sm:$0xff]   ;;  %v333_v6 = vld [vmem:[%s1806_s10] sm:$0xff]  ;;  %v334_v7 = vld [vmem:[%s1806_s10 + $0x8] sm:$0xff] }
  0x4c   : > { %1372 = vmatpush3.bf16.msra.mxu0 %v1542_v2  ;;  %1459 = vmatpush3.bf16.msra.mxu1 %v1542_v2  ;;  %v1854_v8 = vld [vmem:[%s1806_s10 + $0x20] sm:$0xff]  ;;  %v1857_v9 = vld [vmem:[%s1806_s10 + $0x28] sm:$0xff]  ;;  %v397_v10 = vpack.c.bf16 %v334_v7, %v333_v6  ;;  %v1865_v14 = vld [vmem:[%s1806_s10 + $0x10] sm:$0xff] }
  0x4d   : > { %1373 = vmatprep.subr.bf16.mxu0 %v1543_v3  ;;  %1452 = vmatprep.subr.bf16.mxu1 %v1543_v3  ;;  %v1062_v11 = vmax.f32 %v333_v6, %v1854_v8  ;;  %v1861_v12 = vld [vmem:[%s1806_s10 + $0x40] sm:$0xff]  ;;  %v1063_v13 = vmax.f32 %v334_v7, %v1857_v9  ;;  %v1868_v15 = vld [vmem:[%s1806_s10 + $0x30] sm:$0xff]  ;;  %v1871_v16 = vld [vmem:[%s1806_s10 + $0x48] sm:$0xff] }
  0x4e   : > { %1387 = vmatprep.mubr.bf16.mxu0 %v397_v10  ;;  %v1875_v18 = vld [vmem:[%s1806_s10 + $0x18] sm:$0xff]  ;;  %v1064_v20 = vmax.f32 %v1865_v14, %v1868_v15  ;;  %v1546_v21 = vld [vmem:[%s2514_s1 + $0x20] sm:$0xff]   ;;  %v1889_v24 = vld [vmem:[%s1806_s10 + $0x50] sm:$0xff] }
  0x4f   : > { %v1066_v17 = vmax.f32 %v1062_v11, %v1861_v12  ;;  %v1878_v19 = vld [vmem:[%s1806_s10 + $0x38] sm:$0xff]  ;;  %v1067_v22 = vmax.f32 %v1063_v13, %v1871_v16  ;;  %v1892_v25 = vld [vmem:[%s1806_s10 + $0x60] sm:$0xff]  ;;  %v1899_v28 = vld [vmem:[%s1806_s10 + $0x68] sm:$0xff] }
  0x50   : > { %1374 = vmatpush3.bf16.msra.mxu0 %v1543_v3  ;;  %1460 = vmatpush3.bf16.msra.mxu1 %v1543_v3  ;;  %v1065_v23 = vmax.f32 %v1875_v18, %v1878_v19  ;;  %v1895_v26 = vld [vmem:[%s1806_s10 + $0x58] sm:$0xff]  ;;  %v1068_v27 = vmax.f32 %v1064_v20, %v1889_v24  ;;  %v1905_v32 = vld [vmem:[%s1806_s10 + $0x70] sm:$0xff]  ;;  %v1908_v33 = vld [vmem:[%s1806_s10 + $0x80] sm:$0xff] }
  0x51   : > { %1375 = vmatprep.subr.bf16.mxu0 %v1544_v4  ;;  %1453 = vmatprep.subr.bf16.mxu1 %v1544_v4  ;;  %v1070_v29 = vmax.f32 %v1066_v17, %v1892_v25  ;;  %v1071_v31 = vmax.f32 %v1067_v22, %v1899_v28  ;;  %v1547_v34 = vld [vmem:[%s2514_s1 + $0x28] sm:$0xff]   ;;  %v1914_v35 = vld [vmem:[%s1806_s10 + $0x78] sm:$0xff]  ;;  %v1924_v41 = vld [vmem:[%s1806_s10 + $0x90] sm:$0xff] }
  0x52   : > { %v1069_v30 = vmax.f32 %v1065_v23, %v1895_v26  ;;  %v1072_v36 = vmax.f32 %v1068_v27, %v1905_v32  ;;  %v1918_v37 = vld [vmem:[%s1806_s10 + $0x88] sm:$0xff]  ;;  %v1927_v42 = vld [vmem:[%s1806_s10 + $0x98] sm:$0xff]  ;;  %v1930_v43 = vld [vmem:[%s1806_s10 + $0xa0] sm:$0xff] }
  0x53   : > { %v1074_v38 = vmax.f32 %v1070_v29, %v1908_v33  ;;  %v1075_v40 = vmax.f32 %v1071_v31, %v1918_v37  ;;  %v1934_v45 = vld [vmem:[%s1806_s10 + $0xa8] sm:$0xff]  ;;  %v1938_v47 = vld [vmem:[%s1806_s10 + $0xb0] sm:$0xff]  ;;  %v1941_v48 = vld [vmem:[%s1806_s10 + $0xc0] sm:$0xff] }
  0x54   : > { %1376 = vmatpush3.bf16.msra.mxu0 %v1544_v4  ;;  %1461 = vmatpush3.bf16.msra.mxu1 %v1544_v4  ;;  %v1073_v39 = vmax.f32 %v1069_v30, %v1914_v35  ;;  %v1076_v44 = vmax.f32 %v1072_v36, %v1924_v41  ;;  %v1946_v51 = vld [vmem:[%s1806_s10 + $0xf0] sm:$0xff]  ;;  %v1949_v52 = vld [vmem:[%s1806_s10 + $0xf8] sm:$0xff]  ;;  %v365_v53 = vld [vmem:[%s1806_s10 + $0x100] sm:$0xff] }
  0x55   : > { %1377 = vmatprep.subr.bf16.mxu0 %v1545_v5  ;;  %1454 = vmatprep.subr.bf16.mxu1 %v1545_v5  ;;  %v1078_v46 = vmax.f32 %v1074_v38, %v1930_v43  ;;  %v1079_v50 = vmax.f32 %v1075_v40, %v1934_v45  ;;  %v1953_v54 = vld [vmem:[%s1806_s10 + $0xb8] sm:$0xff]  ;;  %v1957_v56 = vld [vmem:[%s1806_s10 + $0xc8] sm:$0xff]  ;;  %v1548_v60 = vld [vmem:[%s2514_s1 + $0x30] sm:$0xff]  }
  0x56   : > { %v1077_v49 = vmax.f32 %v1073_v39, %v1927_v42  ;;  %v1080_v55 = vmax.f32 %v1076_v44, %v1938_v47  ;;  %v366_v58 = vld [vmem:[%s1806_s10 + $0x108] sm:$0xff]  ;;  %v1968_v62 = vld [vmem:[%s1806_s10 + $0xd0] sm:$0xff]  ;;  %v1971_v63 = vld [vmem:[%s1806_s10 + $0xe0] sm:$0xff] }
  0x57   : > { %v1082_v59 = vmax.f32 %v1078_v46, %v1941_v48  ;;  %v413_v0 = vpack.c.bf16 %v366_v58, %v365_v53  ;;  %v1083_v1 = vmax.f32 %v1079_v50, %v1957_v56  ;;  %v1975_v2 = vld [vmem:[%s1806_s10 + $0xd8] sm:$0xff]  ;;  %v1979_v4 = vld [vmem:[%s1806_s10 + $0xe8] sm:$0xff]  ;;  %v1990_v20 = vld [vmem:[%s1806_s10 + $0x120] sm:$0xff] }
  0x58   : > { %1378 = vmatpush3.bf16.msra.mxu0 %v1545_v5  ;;  %1462 = vmatpush3.bf16.msra.mxu1 %v1545_v5  ;;  %v1081_v61 = vmax.f32 %v1077_v49, %v1953_v54  ;;  %v1084_v3 = vmax.f32 %v1080_v55, %v1968_v62  ;;  %v1549_v13 = vld [vmem:[%s2514_s1 + $0x38] sm:$0xff]   ;;  %v367_v22 = vld [vmem:[%s1806_s10 + $0x110] sm:$0xff]  ;;  %v370_v23 = vld [vmem:[%s1806_s10 + $0x128] sm:$0xff] }
  0x59   : > { %1379 = vmatprep.subr.bf16.mxu0 %v1546_v21  ;;  %1455 = vmatprep.subr.bf16.mxu1 %v1546_v21  ;;  %v1086_v5 = vmax.f32 %v1082_v59, %v1971_v63  ;;  %v1087_v7 = vmax.f32 %v1083_v1, %v1979_v4  ;;  %v368_v29 = vld [vmem:[%s1806_s10 + $0x118] sm:$0xff]  ;;  %v1997_v38 = vld [vmem:[%s1806_s10 + $0x130] sm:$0xff]  ;;  %v2000_v39 = vld [vmem:[%s1806_s10 + $0x140] sm:$0xff]  ;;  %v398_v1 = vpack.c.bf16 %v1875_v18, %v1865_v14 }
  0x5a   : > { %v1085_v6 = vmax.f32 %v1081_v61, %v1975_v2  ;;  %1419 = vmatprep.mubr.bf16.mxu1 %v413_v0  ;;  %v1088_v10 = vmax.f32 %v1084_v3, %v1946_v51  ;;  %v2003_v40 = vld [vmem:[%s1806_s10 + $0x138] sm:$0xff]  ;;  %v2007_v44 = vld [vmem:[%s1806_s10 + $0x148] sm:$0xff]  ;;  %v2016_v55 = vld [vmem:[%s1806_s10 + $0x160] sm:$0xff] }
  0x5b   : > { %v1090_v11 = vmax.f32 %v1086_v5, %v365_v53  ;;  %v2013_v53 = vld [vmem:[%s1806_s10 + $0x150] sm:$0xff]  ;;  %v2023_v61 = vld [vmem:[%s1806_s10 + $0x168] sm:$0xff] }
  0x5c   : > { %1380 = vmatpush3.bf16.msra.mxu0 %v1546_v21  ;;  %1463 = vmatpush3.bf16.msra.mxu1 %v1546_v21  ;;  %v1089_v17 = vmax.f32 %v1085_v6, %v1949_v52  ;;  %v1091_v21 = vmax.f32 %v1087_v7, %v366_v58  ;;  %v1092_v30 = vmax.f32 %v1088_v10, %v367_v22  ;;  %v2019_v58 = vld [vmem:[%s1806_s10 + $0x158] sm:$0xff]  ;;  %v2034_v6 = vld [vmem:[%s1806_s10 + $0x180] sm:$0xff]  ;;  %v2043_v18 = vld [vmem:[%s1806_s10 + $0x188] sm:$0xff] }
  0x5d   : > { %1381 = vmatprep.subr.bf16.mxu0 %v1547_v34  ;;  %1456 = vmatprep.subr.bf16.mxu1 %v1547_v34  ;;  %v1094_v27 = vmax.f32 %v1090_v11, %v1990_v20  ;;  %v399_v7 = vpack.c.bf16 %v1857_v9, %v1854_v8  ;;  %v2039_v10 = vld [vmem:[%s1806_s10 + $0x178] sm:$0xff]  ;;  %v2052_v8 = vld [vmem:[%s1806_s10 + $0x1a0] sm:$0xff]  ;;  %v415_v9 = vpack.c.bf16 %v370_v23, %v1990_v20 }
  0x5e   : > { %v1095_v31 = vmax.f32 %v1091_v21, %v370_v23  ;;  %v1093_v36 = vmax.f32 %v1089_v17, %v368_v29  ;;  %v414_v17 = vpack.c.bf16 %v368_v29, %v367_v22  ;;  %v2069_v20 = vld [vmem:[%s1806_s10 + $0x1c0] sm:$0xff]  ;;  %v2072_v23 = vld [vmem:[%s1806_s10 + $0x1b8] sm:$0xff] }
  0x5f   : > { %v1098_v46 = vmax.f32 %v1094_v27, %v2000_v39 }
  0x60   : > { %1382 = vmatpush3.bf16.msra.mxu0 %v1547_v34  ;;  %1464 = vmatpush3.bf16.msra.mxu1 %v1547_v34  ;;  %v1096_v34 = vmax.f32 %v1092_v30, %v1997_v38  ;;  %v1097_v49 = vmax.f32 %v1093_v36, %v2003_v40  ;;  %v1099_v50 = vmax.f32 %v1095_v31, %v2007_v44  ;;  %v2049_v30 = vld [vmem:[%s1806_s10 + $0x190] sm:$0xff]  ;;  %v2056_v31 = vld [vmem:[%s1806_s10 + $0x198] sm:$0xff] }
  0x61   : > { %1383 = vmatprep.subr.bf16.mxu0 %v1548_v60  ;;  %1457 = vmatprep.subr.bf16.mxu1 %v1548_v60  ;;  %v1102_v0 = vmax.f32 %v1098_v46, %v2016_v55 }
  0x62   : > { %v1100_v59 = vmax.f32 %v1096_v34, %v2013_v53  ;;  %v1101_v3 = vmax.f32 %v1097_v49, %v2019_v58  ;;  %v1103_v5 = vmax.f32 %v1099_v50, %v2023_v61  ;;  %v2060_v34 = vld [vmem:[%s1806_s10 + $0x1a8] sm:$0xff] }
  0x63   : > { %v1106_v11 = vmax.f32 %v1102_v0, %v2034_v6  ;;  %v2076_v50 = vld [vmem:[%s1806_s10 + $0x1c8] sm:$0xff] }
  0x64   : > { %1384 = vmatpush3.bf16.msra.mxu0 %v1548_v60  ;;  %1465 = vmatpush3.bf16.msra.mxu1 %v1548_v60  ;;  %v2031_v60 = vld [vmem:[%s1806_s10 + $0x170] sm:$0xff]  ;;  %v1105_v21 = vmax.f32 %v1101_v3, %v2039_v10  ;;  %v1107_v27 = vmax.f32 %v1103_v5, %v2043_v18  ;;  %v2085_v5 = vld [vmem:[%s1806_s10 + $0x1e0] sm:$0xff] }
  0x65   : > { %1385 = vmatprep.subr.bf16.mxu0 %v1549_v13  ;;  %1458 = vmatprep.subr.bf16.mxu1 %v1549_v13  ;;  %v1104_v14 = vmax.f32 %v1100_v59, %v2031_v60  ;;  %v1110_v22 = vmax.f32 %v1106_v11, %v2052_v8  ;;  %v2082_v3 = vld [vmem:[%s1806_s10 + $0x1d0] sm:$0xff]  ;;  %v2092_v11 = vld [vmem:[%s1806_s10 + $0x1e8] sm:$0xff] }
  0x66   : > { %v1109_v29 = vmax.f32 %v1105_v21, %v2056_v31  ;;  %v1111_v46 = vmax.f32 %v1107_v27, %v2060_v34 }
  0x67   : > { %v1108_v36 = vmax.f32 %v1104_v14, %v2049_v30  ;;  %v1114_v59 = vmax.f32 %v1110_v22, %v2069_v20  ;;  %v2100_v22 = vld [vmem:[%s1806_s10 + $0x1f0] sm:$0xff] }
  0x68   : > { %1386 = vmatpush3.bf16.msra.mxu0 %v1549_v13  ;;  %1466 = vmatpush3.bf16.msra.mxu1 %v1549_v13  ;;  %v2066_v13 = vld [vmem:[%s1806_s10 + $0x1b0] sm:$0xff]  ;;  %v1113_v0 = vmax.f32 %v1109_v29, %v2072_v23  ;;  %v2105_v29 = vld [vmem:[%s1806_s10 + $0x1f8] sm:$0xff] }
  0x69   : > { %v1112_v49 = vmax.f32 %v1108_v36, %v2066_v13  ;;  %v1118_v21 = vmax.f32 %v1114_v59, %v2085_v5 }
  0x6b   : > { %1388 = vmatmul.mubr.bf16.vlgmr.msra.gmra.mrb[0].mxu0 %v398_v1  ;;  %1420 = vmatmul.mubr.bf16.vlgmr.msra.gmra.mrb[0].mxu1 %v414_v17  ;;  %v1115_v1 = vmax.f32 %v1111_v46, %v2076_v50  ;;  %v1116_v14 = vmax.f32 %v1112_v49, %v2082_v3  ;;  %v400_v17 = vpack.c.bf16 %v1878_v19, %v1868_v15 }
  0x6c   : > { %1391 = vmatprep.mubr.bf16.mxu0 %v399_v7  ;;  %1423 = vmatprep.mubr.bf16.mxu1 %v415_v9  ;;  %v2088_v7 = vld [vmem:[%s1806_s10 + $0x1d8] sm:$0xff]  ;;  %v401_v9 = vpack.c.bf16 %v1871_v16, %v1861_v12  ;;  %v416_v49 = vpack.c.bf16 %v2003_v40, %v1997_v38  ;;  %v417_v15 = vpack.c.bf16 %v2007_v44, %v2000_v39 }
  0x6d   : > { %v1117_v27 = vmax.f32 %v1113_v0, %v2088_v7  ;;  %v1119_v36 = vmax.f32 %v1115_v1, %v2092_v11  ;;  %v1120_v46 = vmax.f32 %v1116_v14, %v2100_v22  ;;  %v402_v12 = vpack.c.bf16 %v1895_v26, %v1889_v24 }
  0x6e   : > { %v403_v38 = vpack.c.bf16 %v1899_v28, %v1892_v25  ;;  %v418_v40 = vpack.c.bf16 %v2019_v58, %v2013_v53  ;;  %v419_v39 = vpack.c.bf16 %v2023_v61, %v2016_v55  ;;  %v404_v24 = vpack.c.bf16 %v1914_v35, %v1905_v32  ;;  %v1061_v28 = vld [vmem:[%s1828_s29] sm:$0x1] }
  0x6f   : > { %v1122_v59 = vmax.f32 %v1118_v21, %v1119_v36  ;;  %v1121_v57 = vmax.f32 %v1117_v27, %v2105_v29  ;;  %v405_v25 = vpack.c.bf16 %v1918_v37, %v1908_v33  ;;  %v420_v53 = vpack.c.bf16 %v2039_v10, %v2031_v60 }
  0x70   : > { %v421_v55 = vpack.c.bf16 %v2043_v18, %v2034_v6  ;;  %v406_v32 = vpack.c.bf16 %v1927_v42, %v1924_v41  ;;  %v407_v33 = vpack.c.bf16 %v1934_v45, %v1930_v43  ;;  %v422_v35 = vpack.c.bf16 %v2056_v31, %v2049_v30 }
  0x71   : > { %v1123_v19 = vmax.f32 %v1120_v46, %v1121_v57  ;;  %v423_v37 = vpack.c.bf16 %v2060_v34, %v2052_v8  ;;  %v408_v60 = vpack.c.bf16 %v1953_v54, %v1938_v47  ;;  %v409_v6 = vpack.c.bf16 %v1957_v56, %v1941_v48 }
  0x72   : > { %v424_v41 = vpack.c.bf16 %v2072_v23, %v2066_v13  ;;  %v425_v42 = vpack.c.bf16 %v2076_v50, %v2069_v20  ;;  %v410_v43 = vpack.c.bf16 %v1975_v2, %v1968_v62  ;;  %v411_v45 = vpack.c.bf16 %v1979_v4, %v1971_v63  ;;  %v2163_v62 = vld [vmem:[%s2530_s21] ss:$0 sm:$0xff] }
  0x73   : > { %1392 = vmatmul.mubr.bf16.gmra.mrb[4].mxu0 %v400_v17  ;;  %1424 = vmatmul.mubr.bf16.gmra.mrb[4].mxu1 %v416_v49  ;;  %v1124_v0 = vmax.f32 %v1122_v59, %v1123_v19  ;;  %v426_v47 = vpack.c.bf16 %v2088_v7, %v2082_v3  ;;  %v427_v48 = vpack.c.bf16 %v2092_v11, %v2085_v5 }
  0x74   : > { %1395 = vmatprep.mubr.bf16.mxu0 %v401_v9  ;;  %1427 = vmatprep.mubr.bf16.mxu1 %v417_v15  ;;  %v428_v54 = vpack.c.bf16 %v2105_v29, %v2100_v22  ;;  %v2529_v56 = vpack.c.bf16 %v1949_v52, %v1946_v51 }
  0x75   : > { %v1125_v16 = vrot.slane %v1124_v0, 4 }
  0x77   : > { %v1126_v1 = vmax.f32 %v1124_v0, %v1125_v16 }
  0x79   : > { %v1127_v57 = vrot.slane %v1126_v1, 2 }
  0x7b   : > { %1396 = vmatmul.mubr.bf16.gmra.mrb[8].mxu0 %v402_v12  ;;  %1428 = vmatmul.mubr.bf16.gmra.mrb[8].mxu1 %v418_v40  ;;  %v1128_v44 = vmax.f32 %v1126_v1, %v1127_v57 }
  0x7c   : > { %1399 = vmatprep.mubr.bf16.mxu0 %v403_v38  ;;  %1431 = vmatprep.mubr.bf16.mxu1 %v419_v39 }
  0x7d   : > { %v1129_v26 = vrot.slane %v1128_v44, 1 }
  0x7f   : > { %v1130_v58 = vmax.f32 %v1128_v44, %v1129_v26 }
  0x81   : > { %v1131_v61 = vmax.f32 %v1061_v28, %v1130_v58 }
  0x83   : > { %1400 = vmatmul.mubr.bf16.gmra.mrb[12].mxu0 %v404_v24  ;;  %1432 = vmatmul.mubr.bf16.gmra.mrb[12].mxu1 %v420_v53  ;;  %1132 = vst [vmem:[%s1828_s29] sm:$0x1] %v1131_v61 }
  0x84   : > { %1403 = vmatprep.mubr.bf16.mxu0 %v405_v25  ;;  %1435 = vmatprep.mubr.bf16.mxu1 %v421_v55 }
  0x8b   : > { %1404 = vmatmul.mubr.bf16.gmra.mrb[16].mxu0 %v406_v32  ;;  %1436 = vmatmul.mubr.bf16.gmra.mrb[16].mxu1 %v422_v35 }
  0x8c   : > { %1407 = vmatprep.mubr.bf16.mxu0 %v407_v33  ;;  %1439 = vmatprep.mubr.bf16.mxu1 %v423_v37 }
  0x93   : > { %1408 = vmatmul.mubr.bf16.gmra.mrb[20].mxu0 %v408_v60  ;;  %1440 = vmatmul.mubr.bf16.gmra.mrb[20].mxu1 %v424_v41 }
  0x94   : > { %1411 = vmatprep.mubr.bf16.mxu0 %v409_v6  ;;  %1443 = vmatprep.mubr.bf16.mxu1 %v425_v42 }
  0x9b   : > { %1412 = vmatmul.mubr.bf16.gmra.mrb[24].mxu0 %v410_v43  ;;  %1444 = vmatmul.mubr.bf16.gmra.mrb[24].mxu1 %v426_v47 }
  0x9c   : > { %1415 = vmatprep.mubr.bf16.mxu0 %v411_v45  ;;  %1447 = vmatprep.mubr.bf16.mxu1 %v427_v48 }
  0xa3   : > { %1416 = vmatmul.mubr.bf16.gmra.mrb[28].mxu0 %v2529_v56  ;;  %1448 = vmatmul.mubr.bf16.gmra.mrb[28].mxu1 %v428_v54 }
 0x13e   : > { %v1389_v63 = vpop.f32.mrb[0].mxu0  ;;  %v1421_v30 = vpop.f32.mrb[0].mxu1 }
 0x13f   : > { %v543_v2 = vadd.f32 %v1389_v63, %v2163_v62  ;;  %v534_v4 = vpop.f32.mrb[1].mxu0  ;;  %v2170_v8 = vadd.f32 %v1421_v30, %v2163_v62  ;;  %v662_v31 = vpop.f32.mrb[1].mxu1 }
 0x140   : > { %v535_v10 = vadd.f32 %v2163_v62, %v534_v4  ;;  %v1390_v18 = vpop.f32.mrb[2].mxu0  ;;  %v2175_v13 = vadd.f32 %v2163_v62, %v662_v31  ;;  %v1422_v20 = vpop.f32.mrb[2].mxu1 }
 0x141   : > { %791 = vst [vmem:[%s1833_s30 + $0x10] sm:$0xff] %v543_v2  ;;  %v546_v51 = vadd.f32 %v1390_v18, %v2163_v62  ;;  %v537_v52 = vpop.f32.mrb[3].mxu0  ;;  %823 = vst [vmem:[%s1833_s30 + $0x110] sm:$0xff] %v2170_v8  ;;  %v2181_v23 = vadd.f32 %v1422_v20, %v2163_v62  ;;  %v665_v50 = vpop.f32.mrb[3].mxu1  ;;  %v928_v11 = vmul.f32 %v543_v2, %v543_v2 }
 0x142   : > { %789 = vst [vmem:[%s1833_s30] sm:$0xff] %v535_v10  ;;  %v538_v34 = vadd.f32 %v2163_v62, %v537_v52  ;;  %v926_v3 = vmul.f32 %v535_v10, %v535_v10  ;;  %821 = vst [vmem:[%s1833_s30 + $0x100] sm:$0xff] %v2175_v13  ;;  %v2187_v14 = vadd.f32 %v2163_v62, %v665_v50 }
 0x143   : > { %792 = vst [vmem:[%s1833_s30 + $0x18] sm:$0xff] %v546_v51  ;;  %824 = vst [vmem:[%s1833_s30 + $0x118] sm:$0xff] %v2181_v23  ;;  %v929_v9 = vmul.f32 %v546_v51, %v546_v51 }
 0x144   : > { %790 = vst [vmem:[%s1833_s30 + $0x8] sm:$0xff] %v538_v34  ;;  %v854_v5 = vadd.f32 %v538_v34, %v535_v10  ;;  %v927_v7 = vmul.f32 %v538_v34, %v538_v34  ;;  %822 = vst [vmem:[%s1833_s30 + $0x108] sm:$0xff] %v2187_v14 }
 0x146   : > { %v855_v21 = vadd.f32 %v854_v5, %v543_v2  ;;  %v990_v17 = vadd.f32 %v927_v7, %v926_v3  ;;  %v1393_v27 = vpop.f32.mrb[4].mxu0  ;;  %v1425_v15 = vpop.f32.mrb[4].mxu1 }
 0x147   : > { %v559_v36 = vadd.f32 %v1393_v27, %v2163_v62  ;;  %v550_v22 = vpop.f32.mrb[5].mxu0  ;;  %v2198_v12 = vadd.f32 %v1425_v15, %v2163_v62  ;;  %v678_v16 = vpop.f32.mrb[5].mxu1 }
 0x148   : > { %v991_v29 = vadd.f32 %v990_v17, %v928_v11  ;;  %v551_v46 = vadd.f32 %v2163_v62, %v550_v22  ;;  %v856_v49 = vadd.f32 %v855_v21, %v546_v51  ;;  %v1394_v59 = vpop.f32.mrb[6].mxu0  ;;  %v1426_v57 = vpop.f32.mrb[6].mxu1  ;;  %v2206_v44 = vadd.f32 %v2163_v62, %v678_v16 }
 0x149   : > { %795 = vst [vmem:[%s1833_s30 + $0x30] sm:$0xff] %v559_v36  ;;  %v562_v19 = vadd.f32 %v1394_v59, %v2163_v62  ;;  %v553_v0 = vpop.f32.mrb[7].mxu0  ;;  %827 = vst [vmem:[%s1833_s30 + $0x130] sm:$0xff] %v2198_v12  ;;  %v2209_v24 = vadd.f32 %v1426_v57, %v2163_v62  ;;  %v681_v26 = vpop.f32.mrb[7].mxu1  ;;  %v932_v55 = vmul.f32 %v559_v36, %v559_v36 }
 0x14a   : > { %793 = vst [vmem:[%s1833_s30 + $0x20] sm:$0xff] %v551_v46  ;;  %v857_v38 = vadd.f32 %v856_v49, %v551_v46  ;;  %v930_v40 = vmul.f32 %v551_v46, %v551_v46  ;;  %v992_v1 = vadd.f32 %v991_v29, %v929_v9  ;;  %v554_v39 = vadd.f32 %v2163_v62, %v553_v0 }
 0x14b   : > { %796 = vst [vmem:[%s1833_s30 + $0x38] sm:$0xff] %v562_v19  ;;  %v2213_v58 = vadd.f32 %v2163_v62, %v681_v26  ;;  %825 = vst [vmem:[%s1833_s30 + $0x120] sm:$0xff] %v2206_v44  ;;  %v933_v60 = vmul.f32 %v562_v19, %v562_v19 }
 0x14c   : > { %v993_v25 = vadd.f32 %v992_v1, %v930_v40  ;;  %794 = vst [vmem:[%s1833_s30 + $0x28] sm:$0xff] %v554_v39  ;;  %v858_v28 = vadd.f32 %v857_v38, %v554_v39  ;;  %v931_v53 = vmul.f32 %v554_v39, %v554_v39  ;;  %828 = vst [vmem:[%s1833_s30 + $0x138] sm:$0xff] %v2209_v24 }
 0x14d   : > { %826 = vst [vmem:[%s1833_s30 + $0x128] sm:$0xff] %v2213_v58 }
 0x14e   : > { %v859_v61 = vadd.f32 %v858_v28, %v559_v36  ;;  %v994_v32 = vadd.f32 %v993_v25, %v931_v53  ;;  %v1397_v33 = vpop.f32.mrb[8].mxu0  ;;  %v1429_v45 = vpop.f32.mrb[8].mxu1 }
 0x14f   : > { %v575_v35 = vadd.f32 %v1397_v33, %v2163_v62  ;;  %v566_v37 = vpop.f32.mrb[9].mxu0  ;;  %v2226_v54 = vadd.f32 %v1429_v45, %v2163_v62  ;;  %v694_v56 = vpop.f32.mrb[9].mxu1 }
 0x150   : > { %v995_v6 = vadd.f32 %v994_v32, %v932_v55  ;;  %v567_v41 = vadd.f32 %v2163_v62, %v566_v37  ;;  %v860_v42 = vadd.f32 %v859_v61, %v562_v19  ;;  %v1398_v43 = vpop.f32.mrb[10].mxu0  ;;  %v1430_v18 = vpop.f32.mrb[10].mxu1  ;;  %v2234_v30 = vadd.f32 %v2163_v62, %v694_v56 }
 0x151   : > { %799 = vst [vmem:[%s1833_s30 + $0x50] sm:$0xff] %v575_v35  ;;  %v578_v47 = vadd.f32 %v1398_v43, %v2163_v62  ;;  %v569_v48 = vpop.f32.mrb[11].mxu0  ;;  %831 = vst [vmem:[%s1833_s30 + $0x150] sm:$0xff] %v2226_v54  ;;  %v2237_v51 = vadd.f32 %v1430_v18, %v2163_v62  ;;  %v697_v52 = vpop.f32.mrb[11].mxu1  ;;  %v936_v3 = vmul.f32 %v575_v35, %v575_v35 }
 0x152   : > { %797 = vst [vmem:[%s1833_s30 + $0x40] sm:$0xff] %v567_v41  ;;  %v861_v63 = vadd.f32 %v860_v42, %v567_v41  ;;  %v934_v2 = vmul.f32 %v567_v41, %v567_v41  ;;  %v996_v4 = vadd.f32 %v995_v6, %v933_v60  ;;  %v570_v10 = vadd.f32 %v2163_v62, %v569_v48 }
 0x153   : > { %800 = vst [vmem:[%s1833_s30 + $0x58] sm:$0xff] %v578_v47  ;;  %v2241_v50 = vadd.f32 %v2163_v62, %v697_v52  ;;  %829 = vst [vmem:[%s1833_s30 + $0x140] sm:$0xff] %v2234_v30  ;;  %v937_v27 = vmul.f32 %v578_v47, %v578_v47 }
 0x154   : > { %v997_v31 = vadd.f32 %v996_v4, %v934_v2  ;;  %798 = vst [vmem:[%s1833_s30 + $0x48] sm:$0xff] %v570_v10  ;;  %v862_v34 = vadd.f32 %v861_v63, %v570_v10  ;;  %v935_v20 = vmul.f32 %v570_v10, %v570_v10  ;;  %832 = vst [vmem:[%s1833_s30 + $0x158] sm:$0xff] %v2237_v51 }
 0x155   : > { %830 = vst [vmem:[%s1833_s30 + $0x148] sm:$0xff] %v2241_v50 }
 0x156   : > { %v863_v5 = vadd.f32 %v862_v34, %v575_v35  ;;  %v998_v7 = vadd.f32 %v997_v31, %v935_v20  ;;  %v1401_v11 = vpop.f32.mrb[12].mxu0  ;;  %v1433_v46 = vpop.f32.mrb[12].mxu1 }
 0x157   : > { %v591_v21 = vadd.f32 %v1401_v11, %v2163_v62  ;;  %v582_v17 = vpop.f32.mrb[13].mxu0  ;;  %v2254_v15 = vadd.f32 %v1433_v46, %v2163_v62  ;;  %v710_v19 = vpop.f32.mrb[13].mxu1 }
 0x158   : > { %v999_v36 = vadd.f32 %v998_v7, %v936_v3  ;;  %v583_v22 = vadd.f32 %v2163_v62, %v582_v17  ;;  %v864_v9 = vadd.f32 %v863_v5, %v578_v47  ;;  %v1402_v29 = vpop.f32.mrb[14].mxu0  ;;  %v1434_v1 = vpop.f32.mrb[14].mxu1  ;;  %v2262_v39 = vadd.f32 %v2163_v62, %v710_v19 }
 0x159   : > { %803 = vst [vmem:[%s1833_s30 + $0x70] sm:$0xff] %v591_v21  ;;  %v594_v49 = vadd.f32 %v1402_v29, %v2163_v62  ;;  %v585_v59 = vpop.f32.mrb[15].mxu0  ;;  %835 = vst [vmem:[%s1833_s30 + $0x170] sm:$0xff] %v2254_v15  ;;  %v2265_v57 = vadd.f32 %v1434_v1, %v2163_v62  ;;  %v713_v26 = vpop.f32.mrb[15].mxu1  ;;  %v940_v61 = vmul.f32 %v591_v21, %v591_v21 }
 0x15a   : > { %801 = vst [vmem:[%s1833_s30 + $0x60] sm:$0xff] %v583_v22  ;;  %v865_v0 = vadd.f32 %v864_v9, %v583_v22  ;;  %v938_v16 = vmul.f32 %v583_v22, %v583_v22  ;;  %v1000_v38 = vadd.f32 %v999_v36, %v937_v27  ;;  %v586_v40 = vadd.f32 %v2163_v62, %v585_v59 }
 0x15b   : > { %804 = vst [vmem:[%s1833_s30 + $0x78] sm:$0xff] %v594_v49  ;;  %v2269_v55 = vadd.f32 %v2163_v62, %v713_v26  ;;  %833 = vst [vmem:[%s1833_s30 + $0x160] sm:$0xff] %v2262_v39  ;;  %v941_v6 = vmul.f32 %v594_v49, %v594_v49 }
 0x15c   : > { %v1001_v25 = vadd.f32 %v1000_v38, %v938_v16  ;;  %802 = vst [vmem:[%s1833_s30 + $0x68] sm:$0xff] %v586_v40  ;;  %v866_v28 = vadd.f32 %v865_v0, %v586_v40  ;;  %v939_v53 = vmul.f32 %v586_v40, %v586_v40  ;;  %836 = vst [vmem:[%s1833_s30 + $0x178] sm:$0xff] %v2265_v57 }
 0x15d   : > { %834 = vst [vmem:[%s1833_s30 + $0x168] sm:$0xff] %v2269_v55 }
 0x15e   : > { %v867_v32 = vadd.f32 %v866_v28, %v591_v21  ;;  %v1002_v33 = vadd.f32 %v1001_v25, %v939_v53  ;;  %v1405_v35 = vpop.f32.mrb[16].mxu0  ;;  %v1437_v47 = vpop.f32.mrb[16].mxu1 }
 0x15f   : > { %v607_v37 = vadd.f32 %v1405_v35, %v2163_v62  ;;  %v598_v60 = vpop.f32.mrb[17].mxu0  ;;  %v2282_v63 = vadd.f32 %v1437_v47, %v2163_v62  ;;  %v726_v2 = vpop.f32.mrb[17].mxu1 }
 0x160   : > { %v1003_v41 = vadd.f32 %v1002_v33, %v940_v61  ;;  %v599_v42 = vadd.f32 %v2163_v62, %v598_v60  ;;  %v868_v43 = vadd.f32 %v867_v32, %v594_v49  ;;  %v1406_v45 = vpop.f32.mrb[18].mxu0  ;;  %v1438_v31 = vpop.f32.mrb[18].mxu1  ;;  %v2290_v34 = vadd.f32 %v2163_v62, %v726_v2 }
 0x161   : > { %807 = vst [vmem:[%s1833_s30 + $0x90] sm:$0xff] %v607_v37  ;;  %v610_v48 = vadd.f32 %v1406_v45, %v2163_v62  ;;  %v601_v56 = vpop.f32.mrb[19].mxu0  ;;  %839 = vst [vmem:[%s1833_s30 + $0x190] sm:$0xff] %v2282_v63  ;;  %v2293_v20 = vadd.f32 %v1438_v31, %v2163_v62  ;;  %v729_v3 = vpop.f32.mrb[19].mxu1  ;;  %v944_v17 = vmul.f32 %v607_v37, %v607_v37 }
 0x162   : > { %805 = vst [vmem:[%s1833_s30 + $0x80] sm:$0xff] %v599_v42  ;;  %v869_v4 = vadd.f32 %v868_v43, %v599_v42  ;;  %v942_v10 = vmul.f32 %v599_v42, %v599_v42  ;;  %v1004_v18 = vadd.f32 %v1003_v41, %v941_v6  ;;  %v602_v52 = vadd.f32 %v2163_v62, %v601_v56 }
 0x163   : > { %808 = vst [vmem:[%s1833_s30 + $0x98] sm:$0xff] %v610_v48  ;;  %v2297_v21 = vadd.f32 %v2163_v62, %v729_v3  ;;  %837 = vst [vmem:[%s1833_s30 + $0x180] sm:$0xff] %v2290_v34  ;;  %v945_v46 = vmul.f32 %v610_v48, %v610_v48 }
 0x164   : > { %v1005_v5 = vadd.f32 %v1004_v18, %v942_v10  ;;  %806 = vst [vmem:[%s1833_s30 + $0x88] sm:$0xff] %v602_v52  ;;  %v870_v7 = vadd.f32 %v869_v4, %v602_v52  ;;  %v943_v11 = vmul.f32 %v602_v52, %v602_v52  ;;  %840 = vst [vmem:[%s1833_s30 + $0x198] sm:$0xff] %v2293_v20 }
 0x165   : > { %838 = vst [vmem:[%s1833_s30 + $0x188] sm:$0xff] %v2297_v21 }
 0x166   : > { %v871_v27 = vadd.f32 %v870_v7, %v607_v37  ;;  %v1006_v36 = vadd.f32 %v1005_v5, %v943_v11  ;;  %v1409_v22 = vpop.f32.mrb[20].mxu0  ;;  %v1441_v16 = vpop.f32.mrb[20].mxu1 }
 0x167   : > { %v623_v9 = vadd.f32 %v1409_v22, %v2163_v62  ;;  %v614_v29 = vpop.f32.mrb[21].mxu0  ;;  %v2310_v1 = vadd.f32 %v1441_v16, %v2163_v62  ;;  %v742_v26 = vpop.f32.mrb[21].mxu1 }
 0x168   : > { %v1007_v49 = vadd.f32 %v1006_v36, %v944_v17  ;;  %v615_v59 = vadd.f32 %v2163_v62, %v614_v29  ;;  %v872_v19 = vadd.f32 %v871_v27, %v610_v48  ;;  %v1410_v0 = vpop.f32.mrb[22].mxu0  ;;  %v1442_v32 = vpop.f32.mrb[22].mxu1  ;;  %v2318_v33 = vadd.f32 %v2163_v62, %v742_v26 }
 0x169   : > { %811 = vst [vmem:[%s1833_s30 + $0xb0] sm:$0xff] %v623_v9  ;;  %v626_v38 = vadd.f32 %v1410_v0, %v2163_v62  ;;  %v617_v40 = vpop.f32.mrb[23].mxu0  ;;  %843 = vst [vmem:[%s1833_s30 + $0x1b0] sm:$0xff] %v2310_v1  ;;  %v2321_v35 = vadd.f32 %v1442_v32, %v2163_v62  ;;  %v745_v37 = vpop.f32.mrb[23].mxu1  ;;  %v948_v43 = vmul.f32 %v623_v9, %v623_v9 }
 0x16a   : > { %809 = vst [vmem:[%s1833_s30 + $0xa0] sm:$0xff] %v615_v59  ;;  %v873_v25 = vadd.f32 %v872_v19, %v615_v59  ;;  %v946_v28 = vmul.f32 %v615_v59, %v615_v59  ;;  %v1008_v53 = vadd.f32 %v1007_v49, %v945_v46  ;;  %v618_v61 = vadd.f32 %v2163_v62, %v617_v40 }
 0x16b   : > { %812 = vst [vmem:[%s1833_s30 + $0xb8] sm:$0xff] %v626_v38  ;;  %v2325_v42 = vadd.f32 %v2163_v62, %v745_v37  ;;  %841 = vst [vmem:[%s1833_s30 + $0x1a0] sm:$0xff] %v2318_v33  ;;  %v949_v4 = vmul.f32 %v626_v38, %v626_v38 }
 0x16c   : > { %v1009_v60 = vadd.f32 %v1008_v53, %v946_v28  ;;  %810 = vst [vmem:[%s1833_s30 + $0xa8] sm:$0xff] %v618_v61  ;;  %v874_v6 = vadd.f32 %v873_v25, %v618_v61  ;;  %v947_v41 = vmul.f32 %v618_v61, %v618_v61  ;;  %844 = vst [vmem:[%s1833_s30 + $0x1b8] sm:$0xff] %v2321_v35 }
 0x16d   : > { %842 = vst [vmem:[%s1833_s30 + $0x1a8] sm:$0xff] %v2325_v42 }
 0x16e   : > { %v875_v45 = vadd.f32 %v874_v6, %v623_v9  ;;  %v1010_v47 = vadd.f32 %v1009_v60, %v947_v41  ;;  %v1413_v48 = vpop.f32.mrb[24].mxu0  ;;  %v1445_v3 = vpop.f32.mrb[24].mxu1 }
 0x16f   : > { %v639_v56 = vadd.f32 %v1413_v48, %v2163_v62  ;;  %v630_v2 = vpop.f32.mrb[25].mxu0  ;;  %v2338_v11 = vadd.f32 %v1445_v3, %v2163_v62  ;;  %v758_v17 = vpop.f32.mrb[25].mxu1 }
 0x170   : > { %v1011_v10 = vadd.f32 %v1010_v47, %v948_v43  ;;  %v631_v18 = vadd.f32 %v2163_v62, %v630_v2  ;;  %v876_v52 = vadd.f32 %v875_v45, %v626_v38  ;;  %v1414_v31 = vpop.f32.mrb[26].mxu0  ;;  %v1446_v29 = vpop.f32.mrb[26].mxu1  ;;  %v2346_v46 = vadd.f32 %v2163_v62, %v758_v17 }
 0x171   : > { %815 = vst [vmem:[%s1833_s30 + $0xd0] sm:$0xff] %v639_v56  ;;  %v642_v5 = vadd.f32 %v1414_v31, %v2163_v62  ;;  %v633_v7 = vpop.f32.mrb[27].mxu0  ;;  %847 = vst [vmem:[%s1833_s30 + $0x1d0] sm:$0xff] %v2338_v11  ;;  %v2349_v49 = vadd.f32 %v1446_v29, %v2163_v62  ;;  %v761_v59 = vpop.f32.mrb[27].mxu1  ;;  %v952_v40 = vmul.f32 %v639_v56, %v639_v56 }
 0x172   : > { %813 = vst [vmem:[%s1833_s30 + $0xc0] sm:$0xff] %v631_v18  ;;  %v877_v27 = vadd.f32 %v876_v52, %v631_v18  ;;  %v950_v36 = vmul.f32 %v631_v18, %v631_v18  ;;  %v1012_v22 = vadd.f32 %v1011_v10, %v949_v4  ;;  %v634_v9 = vadd.f32 %v2163_v62, %v633_v7 }
 0x173   : > { %816 = vst [vmem:[%s1833_s30 + $0xd8] sm:$0xff] %v642_v5  ;;  %v2353_v38 = vadd.f32 %v2163_v62, %v761_v59  ;;  %845 = vst [vmem:[%s1833_s30 + $0x1c0] sm:$0xff] %v2346_v46  ;;  %v953_v32 = vmul.f32 %v642_v5, %v642_v5 }
 0x174   : > { %v1013_v19 = vadd.f32 %v1012_v22, %v950_v36  ;;  %814 = vst [vmem:[%s1833_s30 + $0xc8] sm:$0xff] %v634_v9  ;;  %v878_v0 = vadd.f32 %v877_v27, %v634_v9  ;;  %v951_v16 = vmul.f32 %v634_v9, %v634_v9  ;;  %848 = vst [vmem:[%s1833_s30 + $0x1d8] sm:$0xff] %v2349_v49 }
 0x175   : > { %846 = vst [vmem:[%s1833_s30 + $0x1c8] sm:$0xff] %v2353_v38 }
 0x176   : > { %v879_v26 = vadd.f32 %v878_v0, %v639_v56  ;;  %v1014_v25 = vadd.f32 %v1013_v19, %v951_v16  ;;  %v1417_v28 = vpop.f32.mrb[28].mxu0  ;;  %v1449_v43 = vpop.f32.mrb[28].mxu1  ;;  %v958_v16 = vmul.f32 %v2175_v13, %v2175_v13 }
 0x177   : > { %v655_v53 = vadd.f32 %v1417_v28, %v2163_v62  ;;  %v646_v61 = vpop.f32.mrb[29].mxu0  ;;  %v2366_v48 = vadd.f32 %v1449_v43, %v2163_v62  ;;  %v774_v56 = vpop.f32.mrb[29].mxu1  ;;  %v959_v28 = vmul.f32 %v2187_v14, %v2187_v14 }
 0x178   : > { %v1015_v37 = vadd.f32 %v1014_v25, %v952_v40  ;;  %v647_v60 = vadd.f32 %v2163_v62, %v646_v61  ;;  %v880_v6 = vadd.f32 %v879_v26, %v642_v5  ;;  %v1418_v41 = vpop.f32.mrb[30].mxu0  ;;  %v1450_v52 = vpop.f32.mrb[30].mxu1  ;;  %v2374_v31 = vadd.f32 %v2163_v62, %v774_v56 }
 0x179   : > { %819 = vst [vmem:[%s1833_s30 + $0xf0] sm:$0xff] %v655_v53  ;;  %v658_v45 = vadd.f32 %v1418_v41, %v2163_v62  ;;  %v649_v47 = vpop.f32.mrb[31].mxu0  ;;  %851 = vst [vmem:[%s1833_s30 + $0x1f0] sm:$0xff] %v2366_v48  ;;  %v2377_v3 = vadd.f32 %v1450_v52, %v2163_v62  ;;  %v777_v5 = vpop.f32.mrb[31].mxu1  ;;  %v956_v22 = vmul.f32 %v655_v53, %v655_v53 }
 0x17a   : > { %817 = vst [vmem:[%s1833_s30 + $0xe0] sm:$0xff] %v647_v60  ;;  %v881_v2 = vadd.f32 %v880_v6, %v647_v60  ;;  %v954_v4 = vmul.f32 %v647_v60, %v647_v60  ;;  %v1016_v10 = vadd.f32 %v1015_v37, %v953_v32  ;;  %v650_v18 = vadd.f32 %v2163_v62, %v649_v47 }
 0x17b   : > { %820 = vst [vmem:[%s1833_s30 + $0xf8] sm:$0xff] %v658_v45  ;;  %v2381_v36 = vadd.f32 %v2163_v62, %v777_v5  ;;  %849 = vst [vmem:[%s1833_s30 + $0x1e0] sm:$0xff] %v2374_v31  ;;  %v957_v59 = vmul.f32 %v658_v45, %v658_v45  ;;  %v961_v37 = vmul.f32 %v2181_v23, %v2181_v23 }
 0x17c   : > { %v1017_v7 = vadd.f32 %v1016_v10, %v954_v4  ;;  %818 = vst [vmem:[%s1833_s30 + $0xe8] sm:$0xff] %v650_v18  ;;  %v882_v17 = vadd.f32 %v881_v2, %v650_v18  ;;  %v955_v27 = vmul.f32 %v650_v18, %v650_v18  ;;  %852 = vst [vmem:[%s1833_s30 + $0x1f8] sm:$0xff] %v2377_v3 }
 0x17d   : > { %850 = vst [vmem:[%s1833_s30 + $0x1e8] sm:$0xff] %v2381_v36  ;;  %v963_v47 = vmul.f32 %v2213_v58, %v2213_v58 }
 0x17e   : > { %v883_v9 = vadd.f32 %v882_v17, %v655_v53  ;;  %v1018_v29 = vadd.f32 %v1017_v7, %v955_v27  ;;  %v960_v53 = vmul.f32 %v2170_v8, %v2170_v8  ;;  %v967_v7 = vmul.f32 %v2241_v50, %v2241_v50 }
 0x180   : > { %v1019_v19 = vadd.f32 %v1018_v29, %v956_v22  ;;  %v884_v0 = vadd.f32 %v883_v9, %v658_v45 }
 0x182   : > { %v885_v40 = vadd.f32 %v884_v0, %v2175_v13  ;;  %v1020_v26 = vadd.f32 %v1019_v19, %v957_v59  ;;  %v962_v13 = vmul.f32 %v2206_v44, %v2206_v44  ;;  %v971_v0 = vmul.f32 %v2269_v55, %v2269_v55 }
 0x184   : > { %v1021_v62 = vadd.f32 %v1020_v26, %v958_v16  ;;  %v886_v25 = vadd.f32 %v885_v40, %v2187_v14 }
 0x186   : > { %v887_v61 = vadd.f32 %v886_v25, %v2170_v8  ;;  %v1022_v32 = vadd.f32 %v1021_v62, %v959_v28  ;;  %v964_v8 = vmul.f32 %v2198_v12, %v2198_v12 }
 0x188   : > { %v1023_v60 = vadd.f32 %v1022_v32, %v960_v53  ;;  %v888_v6 = vadd.f32 %v887_v61, %v2181_v23  ;;  %v965_v23 = vmul.f32 %v2209_v24, %v2209_v24  ;;  %v975_v61 = vmul.f32 %v2297_v21, %v2297_v21 }
 0x18a   : > { %v889_v41 = vadd.f32 %v888_v6, %v2206_v44  ;;  %v1024_v43 = vadd.f32 %v1023_v60, %v961_v37  ;;  %v966_v44 = vmul.f32 %v2234_v30, %v2234_v30 }
 0x18c   : > { %v1025_v45 = vadd.f32 %v1024_v43, %v962_v13  ;;  %v890_v14 = vadd.f32 %v889_v41, %v2213_v58 }
 0x18e   : > { %v891_v56 = vadd.f32 %v890_v14, %v2198_v12  ;;  %v1026_v2 = vadd.f32 %v1025_v45, %v963_v47  ;;  %v968_v12 = vmul.f32 %v2226_v54, %v2226_v54  ;;  %v979_v45 = vmul.f32 %v2325_v42, %v2325_v42 }
 0x190   : > { %v1027_v4 = vadd.f32 %v1026_v2, %v964_v8  ;;  %v892_v10 = vadd.f32 %v891_v56, %v2209_v24  ;;  %v969_v24 = vmul.f32 %v2237_v51, %v2237_v51 }
 0x192   : > { %v893_v18 = vadd.f32 %v892_v10, %v2234_v30  ;;  %v1028_v52 = vadd.f32 %v1027_v4, %v965_v23  ;;  %v970_v30 = vmul.f32 %v2262_v39, %v2262_v39  ;;  %v983_v10 = vmul.f32 %v2353_v38, %v2353_v38 }
 0x194   : > { %v1029_v5 = vadd.f32 %v1028_v52, %v966_v44  ;;  %v894_v58 = vadd.f32 %v893_v18, %v2241_v50 }
 0x196   : > { %v895_v17 = vadd.f32 %v894_v58, %v2226_v54  ;;  %v1030_v27 = vadd.f32 %v1029_v5, %v967_v7  ;;  %v972_v54 = vmul.f32 %v2254_v15, %v2254_v15 }
 0x198   : > { %v1031_v22 = vadd.f32 %v1030_v27, %v968_v12  ;;  %v896_v9 = vadd.f32 %v895_v17, %v2237_v51  ;;  %v973_v51 = vmul.f32 %v2265_v57, %v2265_v57  ;;  %v987_v17 = vmul.f32 %v2381_v36, %v2381_v36 }
 0x19a   : > { %v897_v29 = vadd.f32 %v896_v9, %v2262_v39  ;;  %v1032_v59 = vadd.f32 %v1031_v22, %v969_v24  ;;  %v974_v39 = vmul.f32 %v2290_v34, %v2290_v34 }
 0x19c   : > { %v1033_v19 = vadd.f32 %v1032_v59, %v970_v30  ;;  %v898_v50 = vadd.f32 %v897_v29, %v2269_v55 }
 0x19e   : > { %v899_v16 = vadd.f32 %v898_v50, %v2254_v15  ;;  %v1034_v40 = vadd.f32 %v1033_v19, %v971_v0  ;;  %v976_v15 = vmul.f32 %v2282_v63, %v2282_v63 }
 0x1a0   : > { %v1035_v26 = vadd.f32 %v1034_v40, %v972_v54  ;;  %v900_v62 = vadd.f32 %v899_v16, %v2265_v57  ;;  %v977_v57 = vmul.f32 %v2293_v20, %v2293_v20  ;;  %v853_v16 = vld [vmem:[%s1818_s13] sm:$0x1] }
 0x1a2   : > { %v901_v25 = vadd.f32 %v900_v62, %v2290_v34  ;;  %v1036_v28 = vadd.f32 %v1035_v26, %v973_v51  ;;  %v978_v34 = vmul.f32 %v2318_v33, %v2318_v33  ;;  %v925_v26 = vld [vmem:[%s1823_s11] sm:$0x1] }
 0x1a4   : > { %v1037_v53 = vadd.f32 %v1036_v28, %v974_v39  ;;  %v902_v55 = vadd.f32 %v901_v25, %v2297_v21 }
 0x1a6   : > { %v903_v32 = vadd.f32 %v902_v55, %v2282_v63  ;;  %v1038_v37 = vadd.f32 %v1037_v53, %v975_v61  ;;  %v980_v63 = vmul.f32 %v2310_v1, %v2310_v1 }
 0x1a8   : > { %v1039_v60 = vadd.f32 %v1038_v37, %v976_v15  ;;  %v904_v6 = vadd.f32 %v903_v32, %v2293_v20  ;;  %v981_v20 = vmul.f32 %v2321_v35, %v2321_v35 }
 0x1aa   : > { %v905_v13 = vadd.f32 %v904_v6, %v2318_v33  ;;  %v1040_v41 = vadd.f32 %v1039_v60, %v977_v57  ;;  %v982_v33 = vmul.f32 %v2346_v46, %v2346_v46 }
 0x1ac   : > { %v1041_v43 = vadd.f32 %v1040_v41, %v978_v34  ;;  %v906_v21 = vadd.f32 %v905_v13, %v2325_v42 }
 0x1ae   : > { %v907_v14 = vadd.f32 %v906_v21, %v2310_v1  ;;  %v1042_v47 = vadd.f32 %v1041_v43, %v979_v45  ;;  %v984_v1 = vmul.f32 %v2338_v11, %v2338_v11 }
 0x1b0   : > { %v1043_v8 = vadd.f32 %v1042_v47, %v980_v63  ;;  %v908_v56 = vadd.f32 %v907_v14, %v2321_v35  ;;  %v985_v35 = vmul.f32 %v2349_v49, %v2349_v49 }
 0x1b2   : > { %v909_v2 = vadd.f32 %v908_v56, %v2346_v46  ;;  %v1044_v23 = vadd.f32 %v1043_v8, %v981_v20  ;;  %v986_v46 = vmul.f32 %v2374_v31, %v2374_v31 }
 0x1b4   : > { %v1045_v4 = vadd.f32 %v1044_v23, %v982_v33  ;;  %v910_v42 = vadd.f32 %v909_v2, %v2353_v38 }
 0x1b6   : > { %v911_v44 = vadd.f32 %v910_v42, %v2338_v11  ;;  %v1046_v18 = vadd.f32 %v1045_v4, %v983_v10  ;;  %v988_v11 = vmul.f32 %v2366_v48, %v2366_v48 }
 0x1b8   : > { %v1047_v52 = vadd.f32 %v1046_v18, %v984_v1  ;;  %v912_v5 = vadd.f32 %v911_v44, %v2349_v49  ;;  %v989_v49 = vmul.f32 %v2377_v3, %v2377_v3 }
 0x1ba   : > { %v913_v58 = vadd.f32 %v912_v5, %v2374_v31  ;;  %v1048_v7 = vadd.f32 %v1047_v52, %v985_v35 }
 0x1bc   : > { %v1049_v12 = vadd.f32 %v1048_v7, %v986_v46  ;;  %v914_v38 = vadd.f32 %v913_v58, %v2381_v36 }
 0x1be   : > { %v915_v27 = vadd.f32 %v914_v38, %v2366_v48  ;;  %v1050_v24 = vadd.f32 %v1049_v12, %v987_v17 }
 0x1c0   : > { %v916_v31 = vadd.f32 %v915_v27, %v2377_v3  ;;  %v1051_v22 = vadd.f32 %v1050_v24, %v988_v11 }
 0x1c2   : > { %v917_v9 = vrot.slane %v916_v31, 4  ;;  %v1052_v30 = vadd.f32 %v1051_v22, %v989_v49 }
 0x1c4   : > { %v918_v29 = vadd.f32 %v917_v9, %v916_v31  ;;  %v1053_v36 = vrot.slane %v1052_v30, 4 }
 0x1c6   : > { %v919_v59 = vrot.slane %v918_v29, 2  ;;  %v1054_v19 = vadd.f32 %v1053_v36, %v1052_v30 }
 0x1c8   : > { %v920_v50 = vadd.f32 %v919_v59, %v918_v29  ;;  %v1055_v0 = vrot.slane %v1054_v19, 2 }
 0x1ca   : > { %v921_v54 = vrot.slane %v920_v50, 1  ;;  %v1056_v48 = vadd.f32 %v1055_v0, %v1054_v19 }
 0x1cc   : > { %v922_v40 = vadd.f32 %v921_v54, %v920_v50  ;;  %v1057_v51 = vrot.slane %v1056_v48, 1 }
 0x1ce   : > { %v923_v62 = vadd.f32 %v922_v40, %v853_v16  ;;  %v1058_v39 = vadd.f32 %v1057_v51, %v1056_v48 }
 0x1d0   : > { %924 = vst [vmem:[%s1818_s13] sm:$0x1] %v923_v62  ;;  %v1059_v3 = vadd.f32 %v1058_v39, %v925_v26 }
 0x1d2   : > { %1060 = vst [vmem:[%s1823_s11] sm:$0x1] %v1059_v3 }
 0x1d3 PF: > { %s20_s28 = sadd.s32 1, %s1646_s28   ;;  %s2531_s30 = sld [smem:[#allocation5_spill]] }
 0x1d4   : > { %p17_p6 = scmp.ge.s32.totalorder %s20_s28, 6   ;;  %s2532_s8 = sld [smem:[#allocation6_spill]] }
 0x1d5   : > { %s2533_s21 = smov %s1622_s22  ;;  %s2534_s22 = smov %s1626_s23 }
 0x1d6   : > { %s2535_s23 = smov %s1755_s17  ;;  %s2536_s24 = smov %s1638_s26 }
 0x1d7   : > { %s2537_s25 = smov %s1642_s27  ;;  %19 = sbr.rel (!%p17_p6) target bundleno = 7 (0x7), region = 112 }
 0x1d9   : > { %s2538_s26 = smov %s2531_s30 }
 0x1da   : > { %s2539_s27 = smov %s2532_s8 }
 0x1de   :  { %1199 = vsyncpa [#allocation3], 1 }
 0x1df   :  { %1201 = vsyncpa [#allocation3 + $0x1], 1 }

// kernel: deepsets_block.10
= control target key start
LH: loop header
LB: loop body
LE: loop exit
PB: predicated region body
PF: predicated region fallthrough
CT: control target
= control target key end

     0   :  { %v347_v0 = vmov 0.0|0.0   ;;  %vm348_vm0 = vmmov 0   ;;  %v349_v4 = vmov 0.0   ;;  %v350_v5 = vmov 1966171168   ;;  %s499_s3 = inlined_call_operand.vmem [shape: f32[128,64], index: 3, kind: input, shape index: {}]   ;;  %s500_s0 = inlined_call_operand.vmem [shape: f32[2,1,64], index: 0, kind: input, shape index: {}]   ;;  %s501_s1 = inlined_call_operand.vmem [shape: f32[2,1,64], index: 1, kind: input, shape index: {}]   ;;  %s502_s2 = inlined_call_operand.vmem [shape: f32[2,1,128], index: 2, kind: input, shape index: {}]   ;;  %s503_s5 = inlined_call_operand.vmem [shape: f32[1,64], index: 5, kind: output, shape index: {0}]   ;;  %s504_s6 = inlined_call_operand.vmem [shape: f32[1,64], index: 6, kind: output, shape index: {1}]   ;;  %s505_s4 = inlined_call_operand.vmem [shape: f32[1,64], index: 4, kind: input, shape index: {}]   ;;  %s506_s7 = inlined_call_operand.vmem [shape: f32[2,1,64], index: 7, kind: output, shape index: {2}]  }
   0x1   :  { %315 = vmatprep.subr.bf16.mxu0 %v347_v0  ;;  %v90_v1 = vld [vmem:[%s499_s3] sm:$0xff]  ;;  %v91_v2 = vld [vmem:[%s499_s3 + $0x8] sm:$0xff]  ;;  %v92_v3 = vld [vmem:[%s499_s3 + $0x10] sm:$0xff]  ;;  %312 = vmatprep.mubr.msk.f32.mxu0 %vm348_vm0, %v349_v4  ;;  %v29_v6 = vunpack.c.l.s4 %v350_v5  ;;  %v31_v7 = vlaneseq  ;;  %vm43_vm1 = vcmask 517120   ;;  %vm83_vm2 = vcmask 516096  }
   0x2   :  { %v316_v8 = vpack.c.bf16 %v91_v2, %v90_v1  ;;  %v93_v9 = vld [vmem:[%s499_s3 + $0x18] sm:$0xff]  ;;  %v94_v13 = vld [vmem:[%s499_s3 + $0x20] sm:$0xff]  ;;  %v95_v14 = vld [vmem:[%s499_s3 + $0x28] sm:$0xff] }
   0x3   :  { %v319_v10 = vpack.c.bf16 %v93_v9, %v92_v3  ;;  %v30_v11 = vunpack.c.0.s8 %v29_v6  ;;  %v32_v12 = vshrl.u32 %v31_v7, 7  ;;  %v23_v15 = vld [vmem:[%s500_s0] sm:$0x1]  ;;  %v24_v16 = vld [vmem:[%s500_s0 + $0x1] sm:$0x1]  ;;  %v322_v18 = vpack.c.bf16 %v95_v14, %v94_v13  ;;  %v96_v22 = vld [vmem:[%s499_s3 + $0x30] sm:$0xff] }
   0x4   :  { %317 = vmatpush3.bf16.msra.mxu0 %v316_v8  ;;  %v51_v17 = vld [vmem:[%s501_s1] sm:$0x1]  ;;  %v27_v20 = vcombine.low %v23_v15, %v24_v16  ;;  %v52_v21 = vld [vmem:[%s501_s1 + $0x1] sm:$0x1]  ;;  %v97_v23 = vld [vmem:[%s499_s3 + $0x38] sm:$0xff] }
   0x5   :  { %318 = vmatprep.subr.bf16.mxu0 %v347_v0  ;;  %v420_v19 = vsub.s32 %v30_v11, %v32_v12  ;;  %v55_v24 = vcombine.low %v51_v17, %v52_v21  ;;  %v325_v27 = vpack.c.bf16 %v97_v23, %v96_v22  ;;  %v98_v29 = vld [vmem:[%s499_s3 + $0x40] sm:$0xff]  ;;  %v99_v30 = vld [vmem:[%s499_s3 + $0x48] sm:$0xff]  ;;  %v100_v37 = vld [vmem:[%s499_s3 + $0x50] sm:$0xff] }
   0x6   :  { %v328_v35 = vpack.c.bf16 %v99_v30, %v98_v29  ;;  %v101_v38 = vld [vmem:[%s499_s3 + $0x58] sm:$0xff]  ;;  %v88_v43 = vld [vmem:[%s502_s2] sm:$0x1]  ;;  %v89_v44 = vld [vmem:[%s502_s2 + $0x1] sm:$0x1] }
   0x7   :  { %v34_v25 = vrot.slane %v27_v20, %v420_v19  ;;  %v62_v26 = vrot.slane %v55_v24, %v420_v19  ;;  %v331_v42 = vpack.c.bf16 %v101_v38, %v100_v37  ;;  %v102_v46 = vld [vmem:[%s499_s3 + $0x60] sm:$0xff]  ;;  %v103_v47 = vld [vmem:[%s499_s3 + $0x68] sm:$0xff]  ;;  %v115_v50 = vcombine.low %v88_v43, %v89_v44  ;;  %v104_v54 = vld [vmem:[%s499_s3 + $0x70] sm:$0xff] }
   0x8   :  { %320 = vmatpush3.bf16.msra.mxu0 %v319_v10  ;;  %v334_v52 = vpack.c.bf16 %v103_v47, %v102_v46  ;;  %v105_v55 = vld [vmem:[%s499_s3 + $0x78] sm:$0xff] }
   0x9   :  { %321 = vmatprep.subr.bf16.mxu0 %v347_v0  ;;  %v41_v28 = vrot.slane %v34_v25, %v420_v19  ;;  %v69_v31 = vrot.slane %v62_v26, %v420_v19  ;;  %v122_v58 = vrot.slane %v115_v50, %v420_v19  ;;  %v337_v60 = vpack.c.bf16 %v105_v55, %v104_v54 }
   0xb   :  { %v44_v32 = vsel %vm43_vm1, %v41_v28, 0.0  ;;  %v71_v34 = vsel %vm43_vm1, %v69_v31, 0.0  ;;  %v129_v63 = vrot.slane %v122_v58, %v420_v19 }
   0xc   :  { %323 = vmatpush3.bf16.msra.mxu0 %v322_v18  ;;  %v45_v33 = vrot.slane %v44_v32, 4  ;;  %v72_v36 = vrot.slane %v71_v34, 4 }
   0xd   :  { %324 = vmatprep.subr.bf16.mxu0 %v347_v0 }
   0xe   :  { %v46_v39 = vadd.f32 %v45_v33, %v44_v32  ;;  %v73_v40 = vadd.f32 %v72_v36, %v71_v34 }
  0x10   :  { %326 = vmatpush3.bf16.msra.mxu0 %v325_v27  ;;  %v47_v41 = vrot.slane %v46_v39, 2  ;;  %v74_v45 = vrot.slane %v73_v40, 2 }
  0x11   :  { %327 = vmatprep.subr.bf16.mxu0 %v347_v0 }
  0x12   :  { %v48_v48 = vadd.f32 %v47_v41, %v46_v39  ;;  %v75_v49 = vadd.f32 %v74_v45, %v73_v40 }
  0x14   :  { %329 = vmatpush3.bf16.msra.mxu0 %v328_v35  ;;  %v49_v51 = vrot.slane %v48_v48, 1  ;;  %v76_v53 = vrot.slane %v75_v49, 1 }
  0x15   :  { %330 = vmatprep.subr.bf16.mxu0 %v347_v0 }
  0x16   :  { %v50_v56 = vadd.f32 %v49_v51, %v48_v48  ;;  %v77_v57 = vadd.f32 %v76_v53, %v75_v49 }
  0x18   :  { %332 = vmatpush3.bf16.msra.mxu0 %v331_v42  ;;  %v79_v59 = vmul.f32 0.00048828125, %v50_v56  ;;  %v80_v61 = vmul.f32 0.00048828125, %v77_v57 }
  0x19   :  { %333 = vmatprep.subr.bf16.mxu0 %v347_v0 }
  0x1a   :  { %v81_v62 = vmul.f32 %v79_v59, %v79_v59  ;;  %84 = vst.msk [vmem:[%s503_s5] sm:$0x1] %vm83_vm2, %v79_v59 }
  0x1c   :  { %335 = vmatpush3.bf16.msra.mxu0 %v334_v52  ;;  %v82_v1 = vsub.f32 %v80_v61, %v81_v62 }
  0x1d   :  { %336 = vmatprep.subr.bf16.mxu0 %v347_v0  ;;  %v262_v0 = vld [vmem:[%s505_s4] ss:$0 sm:$0xff] }
  0x1e   :  { %v85_v2 = vadd.f32 1e-05, %v82_v1 }
  0x20   :  { %338 = vmatpush3.bf16.msra.mxu0 %v337_v60  ;;  %343 = vrsqrt.f32 %v85_v2 }
  0x23   :  { %313 = vmatmul.mubr.f32.vlgmr.msra.gmra.mrb[0].mxu0 %v129_v63 }
  0x2a   :  { %v344_v3 = vpop.eup %343 }
  0x2b   :  { %87 = vst.msk [vmem:[%s504_s6] sm:$0x1] %vm83_vm2, %v344_v3 }
  0xf6   :  { %v197_v4 = vpop.f32.mrb[0].mxu0 }
  0xf7   :  { %v198_v5 = vadd.f32 %v262_v0, %v197_v4  ;;  %v314_v6 = vpop.f32.mrb[1].mxu0 }
  0xf9   :  { %v201_v7 = vsel %vm43_vm1, %v198_v5, 0.0 }
  0xfa   :  { %v202_v8 = vrot.slane %v201_v7, 4 }
  0xfc   :  { %v203_v9 = vadd.f32 %v202_v8, %v201_v7 }
  0xfe   :  { %v204_v10 = vrot.slane %v203_v9, 2 }
 0x100   :  { %v205_v11 = vadd.f32 %v204_v10, %v203_v9 }
 0x102   :  { %v206_v12 = vrot.slane %v205_v11, 1 }
 0x104   :  { %v207_v13 = vadd.f32 %v206_v12, %v205_v11 }
 0x106   :  { %v209_v14 = vmul.f32 0.5, %v207_v13 }
 0x108   :  { %v210_v15 = vsub.f32 %v198_v5, %v209_v14 }
 0x10a   :  { %v211_v16 = vmul.f32 %v210_v15, %v210_v15 }
 0x10c   :  { %v212_v17 = vsel %vm43_vm1, %v211_v16, 0.0 }
 0x10d   :  { %v213_v18 = vrot.slane %v212_v17, 4 }
 0x10f   :  { %v214_v20 = vadd.f32 %v213_v18, %v212_v17 }
 0x111   :  { %v215_v21 = vrot.slane %v214_v20, 2 }
 0x113   :  { %v216_v22 = vadd.f32 %v215_v21, %v214_v20 }
 0x115   :  { %v217_v23 = vrot.slane %v216_v22, 1 }
 0x117   :  { %v218_v24 = vadd.f32 %v217_v23, %v216_v22 }
 0x119   :  { %v219_v25 = vmul.f32 0.5, %v218_v24 }
 0x11b   :  { %v220_v26 = vadd.f32 1e-05, %v219_v25 }
 0x11d   :  { %345 = vrsqrt.f32 %v220_v26 }
 0x127   :  { %v346_v27 = vpop.eup %345 }
 0x128   :  { %v222_v28 = vmul.f32 %v346_v27, %v210_v15 }
 0x12a   :  { %v230_v29 = vrot.slane %v222_v28, %v420_v19 }
 0x12c   :  { %v231_v30 = vcombine.high %v230_v29, %v230_v29  ;;  %v238_v31 = vrot.slane %v230_v29, %v420_v19 }
 0x12e   :  { %v245_v32 = vrot.slane %v231_v30, %v420_v19  ;;  %248 = vst.msk [vmem:[%s506_s7] sm:$0x1] %vm83_vm2, %v238_v31 }
 0x130   :  { %249 = vst.msk [vmem:[%s506_s7 + $0x1] sm:$0x1] %vm83_vm2, %v245_v32 }

// kernel: deepsets_block.9
= control target key start
LH: loop header
LB: loop body
LE: loop exit
PB: predicated region body
PF: predicated region fallthrough
CT: control target
= control target key end

     0   :  { %s2105_s30 = smov 0   ;;  %s2107_s10 = smov 0   ;;  %s3131_s0 = inlined_call_operand.vmem [shape: f32[2,1024,128], index: 0, kind: input, shape index: {}]   ;;  %s3132_s1 = inlined_call_operand.vmem [shape: f32[1,128], index: 1, kind: input, shape index: {}]   ;;  %s3133_s2 = inlined_call_operand.vmem [shape: f32[1,128], index: 2, kind: input, shape index: {}]   ;;  %s3134_s3 = inlined_call_operand.vmem [shape: f32[2,1,128], index: 3, kind: input, shape index: {}]   ;;  %s3135_s4 = inlined_call_operand.vmem [shape: bf16[128,64], index: 4, kind: input, shape index: {}]   ;;  %s3136_s5 = inlined_call_operand.vmem [shape: f32[1,64], index: 5, kind: input, shape index: {}]   ;;  %s3137_s6 = inlined_call_operand.vmem [shape: f32[2,1024,64], index: 6, kind: output, shape index: {0}]   ;;  %s3138_s7 = inlined_call_operand.vmem [shape: f32[2,1,64], index: 7, kind: output, shape index: {1}]   ;;  %s3139_s8 = inlined_call_operand.vmem [shape: f32[2,1,64], index: 8, kind: output, shape index: {2}]   ;;  %s3140_s9 = inlined_call_operand.vmem [shape: f32[2,1,128], index: 9, kind: output, shape index: {3}]  }
   0x1   :  { %s2109_s11 = smov 0   ;;  %s2111_s12 = smov 0  }
   0x2   :  { %s2113_s13 = smov 0  }
   0x3 LB: > { %3142 = sst [smem:[#allocation2_spill]] %s2047_s12  ;;  %s29_s14 = sadd.s32 1, %s2043_s11  ;;  %s2051_s13 = sphi %s2113_s13, %s20_s13   ;;  %s2047_s12 = sphi %s2111_s12, %s3147_s12   ;;  %s2043_s11 = sphi %s2109_s11, %s3149_s11   ;;  %s2039_s10 = sphi %s2107_s10, %s3145_s10   ;;  %s2035_s30 = sphi %s2105_s30, %s3148_s30  }
   0x4   : > { %s32_s15 = sadd.s32 1, %s2047_s12  ;;  %p30_p0 = scmp.ge.s32.totalorder %s29_s14, 2 }
   0x5   : > { %p1805_p1 = scmp.ge.s32.totalorder %s2051_s13, 1  ;;  %p323_p2 = scmp.lt.s32.totalorder %s2051_s13, 5 }
   0x6   : > { %s3151_s14 = smov (%p30_p0, %s29_s14), 0  ;;  %s3153_s15 = smov (!%p30_p0, %s32_s15), %s2047_s12 }
   0x7   : > { %3143 = sst [smem:[#allocation3_spill]] %s3151_s14  ;;  %p324_p3 = pnand %p1805_p1, %p323_p2 }
   0x8   : > { %p34_p4 = scmp.ge.s32.totalorder %s3153_s15, 2  ;;  %s1806_s16 = sshll.u32 (!%p324_p3), %s2035_s30, 6 }
   0x9   : > { %327 = sbr.rel (%p324_p3) target bundleno = 422 (0x1a6), region = 44  ;;  %p380_p5 = scmp.lt.s32.totalorder (!%p324_p3), %s2039_s10, 1 }
   0xa   : > { %s3155_s15 = smov (%p34_p4, %s3153_s15), 0  ;;  %p382_p6 = scmp.lt.s32.totalorder (!%p324_p3), %s1806_s16, 127 }
   0xb   : > { %3144 = sst [smem:[#allocation4_spill]] %s3155_s15  ;;  %p1812_p7 = scmp.ne.s32.totalorder (!%p324_p3), %s2035_s30, 0 }
  0x10   : > { %s3157_s10 = smov (!%p380_p5, %s2039_s10), 1  ;;  %s3159_s16 = smov (!%p382_p6, %s1806_s16), 127 }
  0x11   : > { %s1807_s17 = sshll.u32 %s3157_s10, 7  ;;  %s391_s20 = scalar_lea.vmem %s3134_s3, %s3157_s10  ;;  %vm416_vm0 = vcmask (!%p1812_p7), 516096   ;;  %v2053_v0 = vmov (!%p1812_p7), 0.0   ;;  %v2054_v1 = vmov (!%p1812_p7), -inf  }
  0x12   : > { %s385_s21 = sadd.s32 %s1807_s17, %s3159_s16  ;;  %s2149_s24 = scalar_lea.vmem %s3138_s7, %s3157_s10 }
  0x13   : > { %s1808_s25 = sshll.u32 %s385_s21, 3  ;;  %s2155_s28 = scalar_lea.vmem %s3139_s8, %s3157_s10  ;;  %417 = vst.msk [vmem:[%s2149_s24] sm:$0x1] (!%p1812_p7), %vm416_vm0, %v2053_v0 }
  0x14   : > { %s2160_s14 = scalar_lea.vmem %s3131_s0, %s1808_s25  ;;  %s2165_s16 = scalar_lea.vmem %s3137_s6, %s1808_s25  ;;  %418 = vst.msk [vmem:[%s2155_s28] sm:$0x1] (!%p1812_p7), %vm416_vm0, %v2053_v0 }
  0x15   : > { %s2171_s22 = scalar_lea.vmem %s3140_s9, %s3157_s10  ;;  %415 = sbr.rel (%p1812_p7) target bundleno = 28 (0x1c), region = 48 }
  0x16   : > { %419 = vst [vmem:[%s2171_s22] sm:$0x1] (!%p1812_p7), %v2054_v1 }
  0x1c PF: > { %v2005_v2 = vld [vmem:[%s3135_s4] sm:$0xff]   ;;  %v2006_v3 = vld [vmem:[%s3135_s4 + $0x8] sm:$0xff]   ;;  %v2007_v4 = vld [vmem:[%s3135_s4 + $0x10] sm:$0xff]   ;;  %vm1153_vm1 = vcmask 523264   ;;  %vm1353_vm2 = vcmask 516096  }
  0x1d   : > { %1867 = vmatprep.subr.bf16.mxu0 %v2005_v2  ;;  %1947 = vmatprep.subr.bf16.mxu1 %v2005_v2  ;;  %v2008_v5 = vld [vmem:[%s3135_s4 + $0x18] sm:$0xff]   ;;  %v420_v6 = vld [vmem:[%s2160_s14] sm:$0xff]  ;;  %v421_v7 = vld [vmem:[%s2160_s14 + $0x8] sm:$0xff] }
  0x1e   : > { %1868 = vmatpush3.bf16.msra.mxu0 %v2005_v2  ;;  %1955 = vmatpush3.bf16.msra.mxu1 %v2005_v2  ;;  %v424_v8 = vld [vmem:[%s2160_s14 + $0x20] sm:$0xff]  ;;  %v425_v9 = vld [vmem:[%s2160_s14 + $0x28] sm:$0xff]  ;;  %v422_v18 = vld [vmem:[%s2160_s14 + $0x10] sm:$0xff] }
  0x1f   : > { %1869 = vmatprep.subr.bf16.mxu0 %v2006_v3  ;;  %1948 = vmatprep.subr.bf16.mxu1 %v2006_v3  ;;  %v428_v10 = vld [vmem:[%s2160_s14 + $0x40] sm:$0xff]  ;;  %v429_v11 = vld [vmem:[%s2160_s14 + $0x48] sm:$0xff]  ;;  %v423_v19 = vld [vmem:[%s2160_s14 + $0x18] sm:$0xff] }
  0x20   : > { %v2198_v12 = vld [vmem:[%s3132_s1] ss:$0 sm:$0xff]  ;;  %v2010_v38 = vld [vmem:[%s3135_s4 + $0x28] sm:$0xff]   ;;  %v426_v47 = vld [vmem:[%s2160_s14 + $0x30] sm:$0xff] }
  0x21   : > { %v2203_v13 = vld [vmem:[%s3133_s2] ss:$0 sm:$0xff]  ;;  %v491_v14 = vsub.f32 %v420_v6, %v2198_v12  ;;  %v492_v15 = vsub.f32 %v421_v7, %v2198_v12  ;;  %v495_v16 = vsub.f32 %v424_v8, %v2198_v12  ;;  %v496_v17 = vsub.f32 %v425_v9, %v2198_v12  ;;  %v427_v48 = vld [vmem:[%s2160_s14 + $0x38] sm:$0xff]  ;;  %v430_v50 = vld [vmem:[%s2160_s14 + $0x50] sm:$0xff] }
  0x22   : > { %1870 = vmatpush3.bf16.msra.mxu0 %v2006_v3  ;;  %1956 = vmatpush3.bf16.msra.mxu1 %v2006_v3  ;;  %v2009_v20 = vld [vmem:[%s3135_s4 + $0x20] sm:$0xff]   ;;  %v499_v21 = vsub.f32 %v428_v10, %v2198_v12  ;;  %v500_v22 = vsub.f32 %v429_v11, %v2198_v12  ;;  %v493_v24 = vsub.f32 %v422_v18, %v2198_v12  ;;  %v431_v51 = vld [vmem:[%s2160_s14 + $0x58] sm:$0xff]  ;;  %v433_v57 = vld [vmem:[%s2160_s14 + $0x68] sm:$0xff] }
  0x23   : > { %1871 = vmatprep.subr.bf16.mxu0 %v2007_v4  ;;  %1949 = vmatprep.subr.bf16.mxu1 %v2007_v4  ;;  %v2221_v23 = vld [vmem:[%s391_s20] ss:$0 sm:$0xff]  ;;  %v494_v25 = vsub.f32 %v423_v19, %v2198_v12  ;;  %v562_v26 = vmul.f32 %v2203_v13, %v491_v14  ;;  %v563_v27 = vmul.f32 %v2203_v13, %v492_v15  ;;  %v2011_v58 = vld [vmem:[%s3135_s4 + $0x30] sm:$0xff]   ;;  %v435_v0 = vld [vmem:[%s2160_s14 + $0x78] sm:$0xff] }
  0x24   : > { %v566_v28 = vmul.f32 %v2203_v13, %v495_v16  ;;  %v567_v29 = vmul.f32 %v2203_v13, %v496_v17  ;;  %v570_v30 = vmul.f32 %v2203_v13, %v499_v21  ;;  %v571_v31 = vmul.f32 %v2203_v13, %v500_v22  ;;  %v432_v56 = vld [vmem:[%s2160_s14 + $0x60] sm:$0xff]  ;;  %v434_v63 = vld [vmem:[%s2160_s14 + $0x70] sm:$0xff]  ;;  %v2286_v15 = vld [vmem:[%s3135_s4 + $0x38] sm:$0xff]  }
  0x25   : > { %v564_v32 = vmul.f32 %v2203_v13, %v493_v24  ;;  %v565_v33 = vmul.f32 %v2203_v13, %v494_v25  ;;  %v633_v34 = vadd.f32 %v2221_v23, %v562_v26  ;;  %v634_v35 = vadd.f32 %v2221_v23, %v563_v27 }
  0x26   : > { %1872 = vmatpush3.bf16.msra.mxu0 %v2007_v4  ;;  %1957 = vmatpush3.bf16.msra.mxu1 %v2007_v4  ;;  %v637_v36 = vadd.f32 %v2221_v23, %v566_v28  ;;  %v638_v37 = vadd.f32 %v2221_v23, %v567_v29  ;;  %v2241_v39 = vadd.f32 %v2221_v23, %v570_v30 }
  0x27   : > { %1873 = vmatprep.subr.bf16.mxu0 %v2008_v5  ;;  %1950 = vmatprep.subr.bf16.mxu1 %v2008_v5  ;;  %v2244_v40 = vadd.f32 %v2221_v23, %v571_v31  ;;  %v2247_v41 = vadd.f32 %v2221_v23, %v564_v32  ;;  %v2250_v42 = vadd.f32 %v2221_v23, %v565_v33  ;;  %v697_v43 = vmax.f32 %v633_v34, 0.0  ;;  %v436_v32 = vld [vmem:[%s2160_s14 + $0x80] sm:$0xff] }
  0x28   : > { %v698_v44 = vmax.f32 %v634_v35, 0.0  ;;  %v701_v45 = vmax.f32 %v637_v36, 0.0  ;;  %v702_v46 = vmax.f32 %v638_v37, 0.0  ;;  %v705_v49 = vmax.f32 %v2241_v39, 0.0  ;;  %v437_v37 = vld [vmem:[%s2160_s14 + $0x88] sm:$0xff]  ;;  %v447_v39 = vld [vmem:[%s2160_s14 + $0xd8] sm:$0xff] }
  0x29   : > { %v706_v52 = vmax.f32 %v2244_v40, 0.0  ;;  %v699_v55 = vmax.f32 %v2247_v41, 0.0  ;;  %v700_v60 = vmax.f32 %v2250_v42, 0.0  ;;  %v497_v61 = vsub.f32 %v426_v47, %v2198_v12 }
  0x2a   : > { %1874 = vmatpush3.bf16.msra.mxu0 %v2008_v5  ;;  %1958 = vmatpush3.bf16.msra.mxu1 %v2008_v5  ;;  %v761_v53 = vpack.c.bf16 %v698_v44, %v697_v43  ;;  %v1556_v54 = vmax.f32 %v697_v43, %v701_v45  ;;  %v1557_v59 = vmax.f32 %v698_v44, %v702_v46  ;;  %v438_v44 = vld [vmem:[%s2160_s14 + $0x90] sm:$0xff] }
  0x2b   : > { %1875 = vmatprep.subr.bf16.mxu0 %v2009_v20  ;;  %1951 = vmatprep.subr.bf16.mxu1 %v2009_v20  ;;  %v498_v62 = vsub.f32 %v427_v48, %v2198_v12  ;;  %v2271_v2 = vpack.c.bf16 %v702_v46, %v701_v45  ;;  %v501_v3 = vsub.f32 %v430_v50, %v2198_v12  ;;  %v439_v50 = vld [vmem:[%s2160_s14 + $0x98] sm:$0xff] }
  0x2c   : > { %1883 = vmatprep.mubr.bf16.mxu0 %v761_v53  ;;  %v1560_v1 = vmax.f32 %v1556_v54, %v705_v49  ;;  %v502_v4 = vsub.f32 %v431_v51, %v2198_v12  ;;  %v568_v5 = vmul.f32 %v2203_v13, %v497_v61  ;;  %v503_v7 = vsub.f32 %v432_v56, %v2198_v12  ;;  %v440_v51 = vld [vmem:[%s2160_s14 + $0xa0] sm:$0xff]  ;;  %v441_v53 = vld [vmem:[%s2160_s14 + $0xa8] sm:$0xff] }
  0x2d   : > { %v569_v6 = vmul.f32 %v2203_v13, %v498_v62  ;;  %v504_v8 = vsub.f32 %v433_v57, %v2198_v12  ;;  %v572_v9 = vmul.f32 %v2203_v13, %v501_v3  ;;  %v505_v11 = vsub.f32 %v434_v63, %v2198_v12 }
  0x2e   : > { %1876 = vmatpush3.bf16.msra.mxu0 %v2009_v20  ;;  %1959 = vmatpush3.bf16.msra.mxu1 %v2009_v20  ;;  %v573_v10 = vmul.f32 %v2203_v13, %v502_v4  ;;  %v506_v14 = vsub.f32 %v435_v0, %v2198_v12  ;;  %v639_v16 = vadd.f32 %v2221_v23, %v568_v5 }
  0x2f   : > { %1877 = vmatprep.subr.bf16.mxu0 %v2010_v38  ;;  %v640_v17 = vadd.f32 %v2221_v23, %v569_v6  ;;  %v574_v18 = vmul.f32 %v2203_v13, %v503_v7  ;;  %v575_v19 = vmul.f32 %v2203_v13, %v504_v8  ;;  %v2293_v20 = vadd.f32 %v2221_v23, %v572_v9 }
  0x30   : > { %v2296_v21 = vadd.f32 %v2221_v23, %v573_v10  ;;  %v576_v22 = vmul.f32 %v2203_v13, %v505_v11  ;;  %v577_v24 = vmul.f32 %v2203_v13, %v506_v14  ;;  %1952 = vmatprep.subr.bf16.mxu1 %v2010_v38  ;;  %v703_v25 = vmax.f32 %v639_v16, 0.0 }
  0x31   : > { %v704_v26 = vmax.f32 %v640_v17, 0.0  ;;  %v2301_v27 = vadd.f32 %v2221_v23, %v574_v18  ;;  %v2304_v28 = vadd.f32 %v2221_v23, %v575_v19  ;;  %v1561_v29 = vmax.f32 %v1557_v59, %v706_v52  ;;  %v442_v59 = vld [vmem:[%s2160_s14 + $0xb0] sm:$0xff] }
  0x32   : > { %1878 = vmatpush3.bf16.msra.mxu0 %v2010_v38  ;;  %1960 = vmatpush3.bf16.msra.mxu1 %v2010_v38  ;;  %v2309_v30 = vadd.f32 %v2221_v23, %v576_v22  ;;  %v2312_v31 = vadd.f32 %v2221_v23, %v577_v24  ;;  %v1558_v33 = vmax.f32 %v699_v55, %v703_v25  ;;  %v707_v35 = vmax.f32 %v2293_v20, 0.0 }
  0x33   : > { %1879 = vmatprep.subr.bf16.mxu0 %v2011_v58  ;;  %1953 = vmatprep.subr.bf16.mxu1 %v2011_v58  ;;  %v1559_v34 = vmax.f32 %v700_v60, %v704_v26  ;;  %v708_v36 = vmax.f32 %v2296_v21, 0.0  ;;  %v762_v38 = vpack.c.bf16 %v700_v60, %v699_v55  ;;  %v709_v41 = vmax.f32 %v2301_v27, 0.0  ;;  %v443_v60 = vld [vmem:[%s2160_s14 + $0xb8] sm:$0xff] }
  0x34   : > { %v710_v42 = vmax.f32 %v2304_v28, 0.0  ;;  %v711_v43 = vmax.f32 %v2309_v30, 0.0  ;;  %v1562_v45 = vmax.f32 %v1558_v33, %v707_v35  ;;  %v712_v47 = vmax.f32 %v2312_v31, 0.0 }
  0x35   : > { %v1563_v46 = vmax.f32 %v1559_v34, %v708_v36  ;;  %v507_v48 = vsub.f32 %v436_v32, %v2198_v12  ;;  %v764_v54 = vpack.c.bf16 %v704_v26, %v703_v25  ;;  %v1564_v55 = vmax.f32 %v1560_v1, %v709_v41 }
  0x36   : > { %1880 = vmatpush3.bf16.msra.mxu0 %v2011_v58  ;;  %1961 = vmatpush3.bf16.msra.mxu1 %v2011_v58  ;;  %v1565_v56 = vmax.f32 %v1561_v29, %v710_v42  ;;  %v508_v57 = vsub.f32 %v437_v37, %v2198_v12  ;;  %v1566_v61 = vmax.f32 %v1562_v45, %v711_v43 }
  0x37   : > { %1881 = vmatprep.subr.bf16.mxu0 %v2286_v15  ;;  %v1567_v62 = vmax.f32 %v1563_v46, %v712_v47  ;;  %v578_v63 = vmul.f32 %v2203_v13, %v507_v48  ;;  %v509_v0 = vsub.f32 %v438_v44, %v2198_v12  ;;  %1954 = vmatprep.subr.bf16.mxu1 %v2286_v15  ;;  %v446_v44 = vld [vmem:[%s2160_s14 + $0xd0] sm:$0xff]  ;;  %v451_v48 = vld [vmem:[%s2160_s14 + $0xf8] sm:$0xff] }
  0x38   : > { %v579_v3 = vmul.f32 %v2203_v13, %v508_v57  ;;  %v510_v58 = vsub.f32 %v439_v50, %v2198_v12  ;;  %v511_v4 = vsub.f32 %v440_v51, %v2198_v12  ;;  %v512_v1 = vsub.f32 %v441_v53, %v2198_v12 }
  0x39   : > { %v649_v5 = vadd.f32 %v2221_v23, %v578_v63  ;;  %v580_v6 = vmul.f32 %v2203_v13, %v509_v0  ;;  %v513_v7 = vsub.f32 %v442_v59, %v2198_v12  ;;  %v514_v8 = vsub.f32 %v443_v60, %v2198_v12 }
  0x3a   : > { %1882 = vmatpush3.bf16.msra.mxu0 %v2286_v15  ;;  %v650_v9 = vadd.f32 %v2221_v23, %v579_v3  ;;  %v581_v10 = vmul.f32 %v2203_v13, %v510_v58  ;;  %v582_v11 = vmul.f32 %v2203_v13, %v511_v4  ;;  %v583_v14 = vmul.f32 %v2203_v13, %v512_v1  ;;  %v452_v1 = vld [vmem:[%s2160_s14 + $0x100] sm:$0xff] }
  0x3b   : > { %v713_v16 = vmax.f32 %v649_v5, 0.0  ;;  %v651_v17 = vadd.f32 %v2221_v23, %v580_v6  ;;  %v584_v18 = vmul.f32 %v2203_v13, %v513_v7  ;;  %v585_v19 = vmul.f32 %v2203_v13, %v514_v8  ;;  %1962 = vmatpush3.bf16.msra.mxu1 %v2286_v15  ;;  %v444_v15 = vld [vmem:[%s2160_s14 + $0xc0] sm:$0xff] }
  0x3c   : > { %v714_v20 = vmax.f32 %v650_v9, 0.0  ;;  %v2354_v21 = vadd.f32 %v2221_v23, %v582_v11  ;;  %v2357_v22 = vadd.f32 %v2221_v23, %v583_v14  ;;  %v765_v28 = vpack.c.bf16 %v706_v52, %v705_v49 }
  0x3d   : > { %1884 = vmatmul.mubr.bf16.vlgmr.msra.gmra.mrb[0].mxu0 %v762_v38  ;;  %v1568_v24 = vmax.f32 %v1564_v55, %v713_v16  ;;  %v715_v25 = vmax.f32 %v651_v17, 0.0  ;;  %v2360_v26 = vadd.f32 %v2221_v23, %v584_v18  ;;  %v2363_v27 = vadd.f32 %v2221_v23, %v585_v19  ;;  %v445_v38 = vld [vmem:[%s2160_s14 + $0xc8] sm:$0xff] }
  0x3e   : > { %1887 = vmatprep.mubr.bf16.mxu0 %v2271_v2  ;;  %v652_v2 = vadd.f32 %v2221_v23, %v581_v10  ;;  %v766_v29 = vpack.c.bf16 %v708_v36, %v707_v35  ;;  %v767_v30 = vpack.c.bf16 %v710_v42, %v709_v41  ;;  %v2370_v32 = vpack.c.bf16 %v712_v47, %v711_v43  ;;  %v448_v35 = vld [vmem:[%s2160_s14 + $0xe0] sm:$0xff]  ;;  %v449_v36 = vld [vmem:[%s2160_s14 + $0xe8] sm:$0xff]  ;;  %v450_v41 = vld [vmem:[%s2160_s14 + $0xf0] sm:$0xff] }
  0x3f   : > { %v2372_v33 = vpack.c.bf16 %v714_v20, %v713_v16  ;;  %v1570_v34 = vmax.f32 %v1566_v61, %v715_v25  ;;  %v717_v37 = vmax.f32 %v2354_v21, 0.0  ;;  %v1569_v45 = vmax.f32 %v1565_v56, %v714_v20  ;;  %v453_v16 = vld [vmem:[%s2160_s14 + $0x108] sm:$0xff]  ;;  %v456_v20 = vld [vmem:[%s2160_s14 + $0x120] sm:$0xff] }
  0x40   : > { %v716_v31 = vmax.f32 %v652_v2, 0.0  ;;  %v718_v40 = vmax.f32 %v2357_v22, 0.0  ;;  %v719_v49 = vmax.f32 %v2360_v26, 0.0  ;;  %v515_v52 = vsub.f32 %v444_v15, %v2198_v12  ;;  %v457_v26 = vld [vmem:[%s2160_s14 + $0x128] sm:$0xff] }
  0x41   : > { %v1572_v46 = vmax.f32 %v1568_v24, %v717_v37  ;;  %v720_v47 = vmax.f32 %v2363_v27, 0.0  ;;  %v516_v51 = vsub.f32 %v445_v38, %v2198_v12  ;;  %v517_v55 = vsub.f32 %v446_v44, %v2198_v12 }
  0x42   : > { %v2384_v42 = vpack.c.bf16 %v716_v31, %v715_v25  ;;  %v1571_v43 = vmax.f32 %v1567_v62, %v716_v31  ;;  %v1574_v50 = vmax.f32 %v1570_v34, %v719_v49  ;;  %v586_v53 = vmul.f32 %v2203_v13, %v515_v52 }
  0x43   : > { %v518_v56 = vsub.f32 %v447_v39, %v2198_v12  ;;  %v520_v57 = vsub.f32 %v449_v36, %v2198_v12  ;;  %v521_v59 = vsub.f32 %v450_v41, %v2198_v12  ;;  %v587_v60 = vmul.f32 %v2203_v13, %v516_v51  ;;  %v458_v51 = vld [vmem:[%s2160_s14 + $0x130] sm:$0xff] }
  0x44   : > { %v657_v61 = vadd.f32 %v2221_v23, %v586_v53  ;;  %v588_v62 = vmul.f32 %v2203_v13, %v517_v55  ;;  %v522_v63 = vsub.f32 %v451_v48, %v2198_v12  ;;  %v523_v2 = vsub.f32 %v452_v1, %v2198_v12 }
  0x45   : > { %1888 = vmatmul.mubr.bf16.gmra.mrb[4].mxu0 %v764_v54  ;;  %v519_v54 = vsub.f32 %v448_v35, %v2198_v12  ;;  %v589_v0 = vmul.f32 %v2203_v13, %v518_v56  ;;  %v591_v58 = vmul.f32 %v2203_v13, %v520_v57  ;;  %v592_v4 = vmul.f32 %v2203_v13, %v521_v59  ;;  %v459_v57 = vld [vmem:[%s2160_s14 + $0x138] sm:$0xff] }
  0x46   : > { %1891 = vmatprep.mubr.bf16.mxu0 %v765_v28  ;;  %v658_v5 = vadd.f32 %v2221_v23, %v587_v60  ;;  %v721_v6 = vmax.f32 %v657_v61, 0.0  ;;  %v659_v7 = vadd.f32 %v2221_v23, %v588_v62  ;;  %v593_v8 = vmul.f32 %v2203_v13, %v522_v63 }
  0x47   : > { %v590_v3 = vmul.f32 %v2203_v13, %v519_v54  ;;  %v660_v9 = vadd.f32 %v2221_v23, %v589_v0  ;;  %v662_v11 = vadd.f32 %v2221_v23, %v591_v58  ;;  %v2411_v14 = vadd.f32 %v2221_v23, %v592_v4 }
  0x48   : > { %v722_v17 = vmax.f32 %v658_v5, 0.0  ;;  %v723_v18 = vmax.f32 %v659_v7, 0.0  ;;  %v2415_v19 = vadd.f32 %v2221_v23, %v593_v8  ;;  %v2419_v21 = vpack.c.bf16 %v718_v40, %v717_v37  ;;  %v454_v37 = vld [vmem:[%s2160_s14 + $0x110] sm:$0xff] }
  0x49   : > { %v661_v10 = vadd.f32 %v2221_v23, %v590_v3  ;;  %v1573_v22 = vmax.f32 %v1569_v45, %v718_v40  ;;  %v1575_v24 = vmax.f32 %v1571_v43, %v720_v47  ;;  %v724_v25 = vmax.f32 %v660_v9, 0.0 }
  0x4a   : > { %v2422_v27 = vpack.c.bf16 %v720_v47, %v719_v49  ;;  %v726_v28 = vmax.f32 %v662_v11, 0.0  ;;  %v524_v31 = vsub.f32 %v453_v16, %v2198_v12  ;;  %v2425_v34 = vpack.c.bf16 %v722_v17, %v721_v6  ;;  %v455_v49 = vld [vmem:[%s2160_s14 + $0x118] sm:$0xff]  ;;  %v462_v11 = vld [vmem:[%s2160_s14 + $0x150] sm:$0xff] }
  0x4b   : > { %v725_v15 = vmax.f32 %v661_v10, 0.0  ;;  %v1578_v38 = vmax.f32 %v1574_v50, %v723_v18  ;;  %v727_v44 = vmax.f32 %v2411_v14, 0.0  ;;  %v2430_v39 = vpack.c.bf16 %v724_v25, %v723_v18  ;;  %v461_v10 = vld [vmem:[%s2160_s14 + $0x148] sm:$0xff] }
  0x4c   : > { %v728_v45 = vmax.f32 %v2415_v19, 0.0  ;;  %v594_v40 = vmul.f32 %v2203_v13, %v523_v2  ;;  %v1579_v52 = vmax.f32 %v1575_v24, %v724_v25  ;;  %v595_v35 = vmul.f32 %v2203_v13, %v524_v31 }
  0x4d   : > { %1892 = vmatmul.mubr.bf16.gmra.mrb[8].mxu0 %v766_v29  ;;  %v527_v29 = vsub.f32 %v456_v20, %v2198_v12  ;;  %v1576_v41 = vmax.f32 %v1572_v46, %v721_v6  ;;  %v1577_v48 = vmax.f32 %v1573_v22, %v722_v17  ;;  %v525_v50 = vsub.f32 %v454_v37, %v2198_v12  ;;  %v460_v6 = vld [vmem:[%s2160_s14 + $0x140] sm:$0xff]  ;;  %v463_v22 = vld [vmem:[%s2160_s14 + $0x158] sm:$0xff] }
  0x4e   : > { %1895 = vmatprep.mubr.bf16.mxu0 %v767_v30  ;;  %v528_v30 = vsub.f32 %v457_v26, %v2198_v12  ;;  %v665_v47 = vadd.f32 %v2221_v23, %v594_v40  ;;  %v666_v53 = vadd.f32 %v2221_v23, %v595_v35  ;;  %v526_v54 = vsub.f32 %v455_v49, %v2198_v12  ;;  %v465_v35 = vld [vmem:[%s2160_s14 + $0x168] sm:$0xff] }
  0x4f   : > { %v598_v36 = vmul.f32 %v2203_v13, %v527_v29  ;;  %v1580_v56 = vmax.f32 %v1576_v41, %v725_v15  ;;  %v2446_v59 = vpack.c.bf16 %v726_v28, %v725_v15  ;;  %v596_v61 = vmul.f32 %v2203_v13, %v525_v50 }
  0x50   : > { %v599_v43 = vmul.f32 %v2203_v13, %v528_v30  ;;  %v729_v60 = vmax.f32 %v665_v47, 0.0  ;;  %v730_v62 = vmax.f32 %v666_v53, 0.0  ;;  %v1581_v63 = vmax.f32 %v1577_v48, %v726_v28  ;;  %v464_v28 = vld [vmem:[%s2160_s14 + $0x160] sm:$0xff]  ;;  %v467_v47 = vld [vmem:[%s2160_s14 + $0x178] sm:$0xff] }
  0x51   : > { %v669_v55 = vadd.f32 %v2221_v23, %v598_v36  ;;  %v597_v0 = vmul.f32 %v2203_v13, %v526_v54  ;;  %v529_v3 = vsub.f32 %v458_v51, %v2198_v12  ;;  %v667_v1 = vadd.f32 %v2221_v23, %v596_v61 }
  0x52   : > { %v670_v46 = vadd.f32 %v2221_v23, %v599_v43  ;;  %v530_v5 = vsub.f32 %v459_v57, %v2198_v12  ;;  %v777_v7 = vpack.c.bf16 %v730_v62, %v729_v60  ;;  %v1584_v8 = vmax.f32 %v1580_v56, %v729_v60  ;;  %v466_v43 = vld [vmem:[%s2160_s14 + $0x170] sm:$0xff] }
  0x53   : > { %v733_v58 = vmax.f32 %v669_v55, 0.0  ;;  %v600_v9 = vmul.f32 %v2203_v13, %v529_v3  ;;  %v1582_v14 = vmax.f32 %v1578_v38, %v727_v44  ;;  %v1583_v16 = vmax.f32 %v1579_v52, %v728_v45  ;;  %v469_v3 = vld [vmem:[%s2160_s14 + $0x188] sm:$0xff] }
  0x54   : > { %v734_v4 = vmax.f32 %v670_v46, 0.0  ;;  %v601_v17 = vmul.f32 %v2203_v13, %v530_v5  ;;  %1915 = vmatprep.mubr.bf16.mxu1 %v777_v7  ;;  %v1585_v18 = vmax.f32 %v1581_v63, %v730_v62  ;;  %v531_v2 = vsub.f32 %v460_v6, %v2198_v12 }
  0x55   : > { %1896 = vmatmul.mubr.bf16.gmra.mrb[12].mxu0 %v2370_v32  ;;  %v668_v32 = vadd.f32 %v2221_v23, %v597_v0  ;;  %v671_v20 = vadd.f32 %v2221_v23, %v600_v9  ;;  %v532_v26 = vsub.f32 %v461_v10, %v2198_v12  ;;  %v533_v15 = vsub.f32 %v462_v11, %v2198_v12  ;;  %v468_v0 = vld [vmem:[%s2160_s14 + $0x180] sm:$0xff] }
  0x56   : > { %1899 = vmatprep.mubr.bf16.mxu0 %v2372_v33  ;;  %v731_v33 = vmax.f32 %v667_v1, 0.0  ;;  %v779_v24 = vpack.c.bf16 %v734_v4, %v733_v58  ;;  %v672_v25 = vadd.f32 %v2221_v23, %v601_v17  ;;  %v2469_v31 = vpack.c.bf16 %v728_v45, %v727_v44 }
  0x57   : > { %v732_v19 = vmax.f32 %v668_v32, 0.0  ;;  %v1588_v38 = vmax.f32 %v1584_v8, %v733_v58  ;;  %v602_v37 = vmul.f32 %v2203_v13, %v531_v2  ;;  %v603_v40 = vmul.f32 %v2203_v13, %v532_v26 }
  0x58   : > { %v1586_v30 = vmax.f32 %v1582_v14, %v731_v33  ;;  %v534_v49 = vsub.f32 %v463_v22, %v2198_v12  ;;  %v604_v52 = vmul.f32 %v2203_v13, %v533_v15  ;;  %v735_v36 = vmax.f32 %v671_v20, 0.0  ;;  %v471_v20 = vld [vmem:[%s2160_s14 + $0x198] sm:$0xff] }
  0x59   : > { %v778_v29 = vpack.c.bf16 %v732_v19, %v731_v33  ;;  %v736_v41 = vmax.f32 %v672_v25, 0.0  ;;  %v673_v44 = vadd.f32 %v2221_v23, %v602_v37  ;;  %v535_v45 = vsub.f32 %v464_v28, %v2198_v12 }
  0x5a   : > { %v1589_v48 = vmax.f32 %v1585_v18, %v734_v4  ;;  %v1587_v50 = vmax.f32 %v1583_v16, %v732_v19  ;;  %v674_v51 = vadd.f32 %v2221_v23, %v603_v40  ;;  %v675_v55 = vadd.f32 %v2221_v23, %v604_v52  ;;  %v470_v16 = vld [vmem:[%s2160_s14 + $0x190] sm:$0xff]  ;;  %v475_v52 = vld [vmem:[%s2160_s14 + $0x1b8] sm:$0xff] }
  0x5b   : > { %1916 = vmatmul.mubr.bf16.vlgmr.msra.gmra.mrb[0].mxu1 %v778_v29  ;;  %v737_v53 = vmax.f32 %v673_v44, 0.0  ;;  %v536_v56 = vsub.f32 %v465_v35, %v2198_v12  ;;  %v606_v57 = vmul.f32 %v2203_v13, %v535_v45  ;;  %v537_v46 = vsub.f32 %v466_v43, %v2198_v12  ;;  %v473_v29 = vld [vmem:[%s2160_s14 + $0x1a8] sm:$0xff] }
  0x5c   : > { %1919 = vmatprep.mubr.bf16.mxu1 %v779_v24  ;;  %v738_v54 = vmax.f32 %v674_v51, 0.0  ;;  %v780_v60 = vpack.c.bf16 %v736_v41, %v735_v36  ;;  %v1590_v61 = vmax.f32 %v1586_v30, %v735_v36  ;;  %v1591_v58 = vmax.f32 %v1587_v50, %v736_v41 }
  0x5d   : > { %1900 = vmatmul.mubr.bf16.gmra.mrb[16].mxu0 %v2384_v42  ;;  %v605_v42 = vmul.f32 %v2203_v13, %v534_v49  ;;  %v607_v63 = vmul.f32 %v2203_v13, %v536_v56  ;;  %v677_v1 = vadd.f32 %v2221_v23, %v606_v57  ;;  %v608_v5 = vmul.f32 %v2203_v13, %v537_v46  ;;  %v474_v49 = vld [vmem:[%s2160_s14 + $0x1b0] sm:$0xff]  ;;  %v477_v56 = vld [vmem:[%s2160_s14 + $0x1c8] sm:$0xff] }
  0x5e   : > { %1903 = vmatprep.mubr.bf16.mxu0 %v2419_v21  ;;  %v538_v21 = vsub.f32 %v467_v47, %v2198_v12  ;;  %v781_v4 = vpack.c.bf16 %v738_v54, %v737_v53  ;;  %v739_v6 = vmax.f32 %v675_v55, 0.0  ;;  %v1592_v9 = vmax.f32 %v1588_v38, %v737_v53  ;;  %v476_v55 = vld [vmem:[%s2160_s14 + $0x1c0] sm:$0xff] }
  0x5f   : > { %v676_v62 = vadd.f32 %v2221_v23, %v605_v42  ;;  %v678_v8 = vadd.f32 %v2221_v23, %v607_v63  ;;  %v679_v10 = vadd.f32 %v2221_v23, %v608_v5  ;;  %v539_v11 = vsub.f32 %v468_v0, %v2198_v12 }
  0x60   : > { %v609_v32 = vmul.f32 %v2203_v13, %v538_v21  ;;  %v540_v14 = vsub.f32 %v469_v3, %v2198_v12  ;;  %v1593_v33 = vmax.f32 %v1589_v48, %v738_v54  ;;  %v741_v17 = vmax.f32 %v677_v1, 0.0 }
  0x61   : > { %v740_v7 = vmax.f32 %v676_v62, 0.0  ;;  %v742_v18 = vmax.f32 %v678_v8, 0.0  ;;  %v1594_v2 = vmax.f32 %v1590_v61, %v739_v6  ;;  %v743_v22 = vmax.f32 %v679_v10, 0.0  ;;  %v479_v8 = vld [vmem:[%s2160_s14 + $0x1d8] sm:$0xff] }
  0x62   : > { %v680_v19 = vadd.f32 %v2221_v23, %v609_v32  ;;  %v610_v24 = vmul.f32 %v2203_v13, %v539_v11  ;;  %v611_v25 = vmul.f32 %v2203_v13, %v540_v14  ;;  %v541_v38 = vsub.f32 %v470_v16, %v2198_v12 }
  0x63   : > { %1920 = vmatmul.mubr.bf16.gmra.mrb[4].mxu1 %v780_v60  ;;  %v782_v26 = vpack.c.bf16 %v740_v7, %v739_v6  ;;  %v1595_v15 = vmax.f32 %v1591_v58, %v740_v7  ;;  %v1596_v37 = vmax.f32 %v1592_v9, %v741_v17  ;;  %v542_v40 = vsub.f32 %v471_v20, %v2198_v12  ;;  %v478_v7 = vld [vmem:[%s2160_s14 + $0x1d0] sm:$0xff] }
  0x64   : > { %1923 = vmatprep.mubr.bf16.mxu1 %v781_v4  ;;  %v744_v28 = vmax.f32 %v680_v19, 0.0  ;;  %v681_v30 = vadd.f32 %v2221_v23, %v610_v24  ;;  %v783_v35 = vpack.c.bf16 %v742_v18, %v741_v17  ;;  %v1597_v36 = vmax.f32 %v1593_v33, %v742_v18 }
  0x65   : > { %1904 = vmatmul.mubr.bf16.gmra.mrb[20].mxu0 %v2422_v27  ;;  %v472_v27 = vld [vmem:[%s2160_s14 + $0x1a0] sm:$0xff]  ;;  %v612_v41 = vmul.f32 %v2203_v13, %v541_v38  ;;  %v1598_v43 = vmax.f32 %v1594_v2, %v743_v22  ;;  %v613_v47 = vmul.f32 %v2203_v13, %v542_v40  ;;  %v544_v48 = vsub.f32 %v473_v29, %v2198_v12 }
  0x66   : > { %1907 = vmatprep.mubr.bf16.mxu0 %v2425_v34  ;;  %v682_v34 = vadd.f32 %v2221_v23, %v611_v25  ;;  %v543_v44 = vsub.f32 %v472_v27, %v2198_v12  ;;  %v784_v45 = vpack.c.bf16 %v744_v28, %v743_v22  ;;  %v545_v53 = vsub.f32 %v474_v49, %v2198_v12  ;;  %v480_v2 = vld [vmem:[%s2160_s14 + $0x1e0] sm:$0xff]  ;;  %v481_v22 = vld [vmem:[%s2160_s14 + $0x1e8] sm:$0xff] }
  0x67   : > { %v683_v50 = vadd.f32 %v2221_v23, %v612_v41  ;;  %v546_v42 = vsub.f32 %v475_v52, %v2198_v12  ;;  %v1599_v54 = vmax.f32 %v1595_v15, %v744_v28  ;;  %v745_v57 = vmax.f32 %v681_v30, 0.0  ;;  %v482_v15 = vld [vmem:[%s2160_s14 + $0x1f0] sm:$0xff]  ;;  %v483_v28 = vld [vmem:[%s2160_s14 + $0x1f8] sm:$0xff] }
  0x68   : > { %v614_v51 = vmul.f32 %v2203_v13, %v543_v44  ;;  %v746_v46 = vmax.f32 %v682_v34, 0.0  ;;  %v684_v21 = vadd.f32 %v2221_v23, %v613_v47  ;;  %v615_v61 = vmul.f32 %v2203_v13, %v544_v48 }
  0x69   : > { %v747_v60 = vmax.f32 %v683_v50, 0.0  ;;  %v616_v63 = vmul.f32 %v2203_v13, %v545_v53  ;;  %v617_v3 = vmul.f32 %v2203_v13, %v546_v42  ;;  %v547_v58 = vsub.f32 %v476_v55, %v2198_v12 }
  0x6a   : > { %v685_v62 = vadd.f32 %v2221_v23, %v614_v51  ;;  %v748_v0 = vmax.f32 %v684_v21, 0.0  ;;  %v1600_v4 = vmax.f32 %v1596_v37, %v745_v57  ;;  %v1601_v1 = vmax.f32 %v1597_v36, %v746_v46 }
  0x6b   : > { %1924 = vmatmul.mubr.bf16.gmra.mrb[8].mxu1 %v782_v26  ;;  %v686_v5 = vadd.f32 %v2221_v23, %v615_v61  ;;  %v2536_v6 = vadd.f32 %v2221_v23, %v616_v63  ;;  %v688_v9 = vadd.f32 %v2221_v23, %v617_v3  ;;  %v618_v10 = vmul.f32 %v2203_v13, %v547_v58 }
  0x6c   : > { %1927 = vmatprep.mubr.bf16.mxu1 %v783_v35  ;;  %v749_v32 = vmax.f32 %v685_v62, 0.0  ;;  %v785_v11 = vpack.c.bf16 %v746_v46, %v745_v57  ;;  %v786_v14 = vpack.c.bf16 %v748_v0, %v747_v60  ;;  %v1603_v17 = vmax.f32 %v1599_v54, %v748_v0 }
  0x6d   : > { %1908 = vmatmul.mubr.bf16.gmra.mrb[24].mxu0 %v2430_v39  ;;  %v548_v39 = vsub.f32 %v477_v56, %v2198_v12  ;;  %v750_v16 = vmax.f32 %v686_v5, 0.0  ;;  %v751_v18 = vmax.f32 %v2536_v6, 0.0  ;;  %v549_v19 = vsub.f32 %v478_v7, %v2198_v12 }
  0x6e   : > { %1911 = vmatprep.mubr.bf16.mxu0 %v2446_v59  ;;  %v1602_v59 = vmax.f32 %v1598_v43, %v747_v60  ;;  %v550_v20 = vsub.f32 %v479_v8, %v2198_v12  ;;  %v1604_v24 = vmax.f32 %v1600_v4, %v749_v32  ;;  %v752_v25 = vmax.f32 %v688_v9, 0.0 }
  0x6f   : > { %v619_v33 = vmul.f32 %v2203_v13, %v548_v39  ;;  %v689_v27 = vadd.f32 %v2221_v23, %v618_v10  ;;  %v787_v38 = vpack.c.bf16 %v750_v16, %v749_v32  ;;  %v1605_v29 = vmax.f32 %v1601_v1, %v750_v16 }
  0x70   : > { %v1606_v37 = vmax.f32 %v1602_v59, %v751_v18  ;;  %v620_v30 = vmul.f32 %v2203_v13, %v549_v19  ;;  %v621_v34 = vmul.f32 %v2203_v13, %v550_v20  ;;  %v551_v40 = vsub.f32 %v480_v2, %v2198_v12 }
  0x71   : > { %v690_v26 = vadd.f32 %v2221_v23, %v619_v33  ;;  %v552_v49 = vsub.f32 %v481_v22, %v2198_v12  ;;  %v1607_v52 = vmax.f32 %v1603_v17, %v752_v25  ;;  %v553_v36 = vsub.f32 %v482_v15, %v2198_v12  ;;  %v2574_v17 = vld [vmem:[%s3136_s5] ss:$0 sm:$0xff] }
  0x72   : > { %v691_v35 = vadd.f32 %v2221_v23, %v620_v30  ;;  %v554_v41 = vsub.f32 %v483_v28, %v2198_v12  ;;  %v753_v44 = vmax.f32 %v689_v27, 0.0  ;;  %v692_v47 = vadd.f32 %v2221_v23, %v621_v34 }
  0x73   : > { %1928 = vmatmul.mubr.bf16.gmra.mrb[12].mxu1 %v784_v45  ;;  %v754_v43 = vmax.f32 %v690_v26, 0.0  ;;  %v623_v48 = vmul.f32 %v2203_v13, %v552_v49  ;;  %v624_v50 = vmul.f32 %v2203_v13, %v553_v36  ;;  %v788_v4 = vpack.c.bf16 %v752_v25, %v751_v18 }
  0x74   : > { %1931 = vmatprep.mubr.bf16.mxu1 %v785_v11  ;;  %v755_v45 = vmax.f32 %v691_v35, 0.0  ;;  %v625_v51 = vmul.f32 %v2203_v13, %v554_v41  ;;  %v1608_v53 = vmax.f32 %v1604_v24, %v753_v44  ;;  %v756_v55 = vmax.f32 %v692_v47, 0.0  ;;  %v1555_v11 = vld [vmem:[%s2171_s22] sm:$0x1] }
  0x75   : > { %1912 = vmatmul.mubr.bf16.gmra.mrb[28].mxu0 %v2469_v31  ;;  %v622_v31 = vmul.f32 %v2203_v13, %v551_v40  ;;  %v1609_v42 = vmax.f32 %v1605_v29, %v754_v43  ;;  %v694_v12 = vadd.f32 %v2221_v23, %v623_v48  ;;  %v695_v57 = vadd.f32 %v2221_v23, %v624_v50 }
  0x76   : > { %v1610_v54 = vmax.f32 %v1606_v37, %v755_v45  ;;  %v696_v46 = vadd.f32 %v2221_v23, %v625_v51  ;;  %v1611_v21 = vmax.f32 %v1607_v52, %v756_v55  ;;  %v789_v5 = vpack.c.bf16 %v754_v43, %v753_v44 }
  0x77   : > { %v693_v56 = vadd.f32 %v2221_v23, %v622_v31  ;;  %v758_v61 = vmax.f32 %v694_v12, 0.0  ;;  %v759_v62 = vmax.f32 %v695_v57, 0.0  ;;  %v790_v8 = vpack.c.bf16 %v756_v55, %v755_v45 }
  0x78   : > { %v760_v0 = vmax.f32 %v696_v46, 0.0 }
  0x79   : > { %v757_v60 = vmax.f32 %v693_v56, 0.0  ;;  %v1613_v13 = vmax.f32 %v1609_v42, %v758_v61  ;;  %v1614_v3 = vmax.f32 %v1610_v54, %v759_v62 }
  0x7a   : > { %v1615_v58 = vmax.f32 %v1611_v21, %v760_v0  ;;  %v792_v16 = vpack.c.bf16 %v760_v0, %v759_v62 }
  0x7b   : > { %1932 = vmatmul.mubr.bf16.gmra.mrb[16].mxu1 %v786_v14  ;;  %v1612_v63 = vmax.f32 %v1608_v53, %v757_v60  ;;  %v791_v32 = vpack.c.bf16 %v758_v61, %v757_v60 }
  0x7c   : > { %1935 = vmatprep.mubr.bf16.mxu1 %v787_v38  ;;  %v1617_v1 = vmax.f32 %v1614_v3, %v1615_v58 }
  0x7d   : > { %v1616_v39 = vmax.f32 %v1612_v63, %v1613_v13 }
  0x7f   : > { %v1618_v6 = vmax.f32 %v1616_v39, %v1617_v1 }
  0x81   : > { %v1619_v23 = vrot.slane %v1618_v6, 4 }
  0x83   : > { %1936 = vmatmul.mubr.bf16.gmra.mrb[20].mxu1 %v788_v4  ;;  %v1620_v7 = vmax.f32 %v1618_v6, %v1619_v23 }
  0x84   : > { %1939 = vmatprep.mubr.bf16.mxu1 %v789_v5 }
  0x85   : > { %v1621_v59 = vrot.slane %v1620_v7, 2 }
  0x87   : > { %v1622_v9 = vmax.f32 %v1620_v7, %v1621_v59 }
  0x89   : > { %v1623_v10 = vrot.slane %v1622_v9, 1 }
  0x8b   : > { %1940 = vmatmul.mubr.bf16.gmra.mrb[24].mxu1 %v790_v8  ;;  %v1624_v14 = vmax.f32 %v1622_v9, %v1623_v10 }
  0x8c   : > { %1943 = vmatprep.mubr.bf16.mxu1 %v791_v32 }
  0x8d   : > { %v1625_v33 = vmax.f32 %v1555_v11, %v1624_v14 }
  0x8f   : > { %1626 = vst [vmem:[%s2171_s22] sm:$0x1] %v1625_v33 }
  0x93   : > { %1944 = vmatmul.mubr.bf16.gmra.mrb[28].mxu1 %v792_v16 }
 0x110   : > { %v1885_v18 = vpop.f32.mrb[0].mxu0 }
 0x111   : > { %v907_v19 = vadd.f32 %v1885_v18, %v2574_v17  ;;  %v898_v20 = vpop.f32.mrb[1].mxu0 }
 0x112   : > { %v899_v2 = vadd.f32 %v2574_v17, %v898_v20  ;;  %v1886_v22 = vpop.f32.mrb[2].mxu0 }
 0x113   : > { %1156 = vst.msk [vmem:[%s2165_s16 + $0x10] sm:$0xff] %vm1153_vm1, %v907_v19  ;;  %v910_v24 = vadd.f32 %v1886_v22, %v2574_v17  ;;  %v901_v25 = vpop.f32.mrb[3].mxu0  ;;  %v1358_v15 = vmul.f32 %v907_v19, %v907_v19  ;;  %v1222_v34 = vsel %vm1153_vm1, %v907_v19, 0.0 }
 0x114   : > { %1154 = vst.msk [vmem:[%s2165_s16] sm:$0xff] %vm1153_vm1, %v899_v2  ;;  %v1356_v27 = vmul.f32 %v899_v2, %v899_v2  ;;  %v902_v26 = vadd.f32 %v2574_v17, %v901_v25  ;;  %v1219_v28 = vsel %vm1153_vm1, %v899_v2, 0.0 }
 0x115   : > { %1157 = vst.msk [vmem:[%s2165_s16 + $0x18] sm:$0xff] %vm1153_vm1, %v910_v24  ;;  %v1359_v37 = vmul.f32 %v910_v24, %v910_v24  ;;  %v1423_v43 = vsel %vm1153_vm1, %v1358_v15, 0.0  ;;  %v1224_v47 = vsel %vm1153_vm1, %v910_v24, 0.0 }
 0x116   : > { %1155 = vst.msk [vmem:[%s2165_s16 + $0x8] sm:$0xff] %vm1153_vm1, %v902_v26  ;;  %v1220_v38 = vsel %vm1153_vm1, %v902_v26, 0.0  ;;  %v1357_v29 = vmul.f32 %v902_v26, %v902_v26  ;;  %v1420_v40 = vsel %vm1153_vm1, %v1356_v27, 0.0 }
 0x117   : > { %v1221_v30 = vadd.f32 %v1220_v38, %v1219_v28  ;;  %v1425_v48 = vsel %vm1153_vm1, %v1359_v37, 0.0 }
 0x118   : > { %v1421_v49 = vsel %vm1153_vm1, %v1357_v29, 0.0  ;;  %v1889_v52 = vpop.f32.mrb[4].mxu0 }
 0x119   : > { %v1223_v35 = vadd.f32 %v1222_v34, %v1221_v30  ;;  %v1422_v36 = vadd.f32 %v1421_v49, %v1420_v40  ;;  %v923_v41 = vadd.f32 %v1889_v52, %v2574_v17  ;;  %v914_v44 = vpop.f32.mrb[5].mxu0 }
 0x11a   : > { %v915_v31 = vadd.f32 %v2574_v17, %v914_v44  ;;  %v1890_v45 = vpop.f32.mrb[6].mxu0 }
 0x11b   : > { %v1424_v50 = vadd.f32 %v1423_v43, %v1422_v36  ;;  %1160 = vst.msk [vmem:[%s2165_s16 + $0x30] sm:$0xff] %vm1153_vm1, %v923_v41  ;;  %v1225_v51 = vadd.f32 %v1224_v47, %v1223_v35  ;;  %v917_v53 = vpop.f32.mrb[7].mxu0  ;;  %v926_v56 = vadd.f32 %v1890_v45, %v2574_v17  ;;  %v1362_v60 = vmul.f32 %v923_v41, %v923_v41 }
 0x11c   : > { %1158 = vst.msk [vmem:[%s2165_s16 + $0x20] sm:$0xff] %vm1153_vm1, %v915_v31  ;;  %v1226_v42 = vsel %vm1153_vm1, %v915_v31, 0.0  ;;  %v1360_v55 = vmul.f32 %v915_v31, %v915_v31  ;;  %v918_v54 = vadd.f32 %v2574_v17, %v917_v53  ;;  %v1230_v0 = vsel %vm1153_vm1, %v923_v41, 0.0 }
 0x11d   : > { %v1227_v12 = vadd.f32 %v1226_v42, %v1225_v51  ;;  %v1426_v57 = vadd.f32 %v1425_v48, %v1424_v50  ;;  %1161 = vst.msk [vmem:[%s2165_s16 + $0x38] sm:$0xff] %vm1153_vm1, %v926_v56  ;;  %v1363_v3 = vmul.f32 %v926_v56, %v926_v56  ;;  %v1232_v5 = vsel %vm1153_vm1, %v926_v56, 0.0 }
 0x11e   : > { %v1427_v46 = vsel %vm1153_vm1, %v1360_v55, 0.0  ;;  %1159 = vst.msk [vmem:[%s2165_s16 + $0x28] sm:$0xff] %vm1153_vm1, %v918_v54  ;;  %v1228_v21 = vsel %vm1153_vm1, %v918_v54, 0.0  ;;  %v1361_v63 = vmul.f32 %v918_v54, %v918_v54  ;;  %v1431_v8 = vsel %vm1153_vm1, %v1362_v60, 0.0 }
 0x11f   : > { %v1428_v61 = vadd.f32 %v1427_v46, %v1426_v57  ;;  %v1229_v62 = vadd.f32 %v1228_v21, %v1227_v12  ;;  %v1433_v33 = vsel %vm1153_vm1, %v1363_v3, 0.0 }
 0x120   : > { %v1893_v13 = vpop.f32.mrb[8].mxu0  ;;  %v1429_v39 = vsel %vm1153_vm1, %v1361_v63, 0.0 }
 0x121   : > { %v1231_v58 = vadd.f32 %v1230_v0, %v1229_v62  ;;  %v939_v4 = vadd.f32 %v1893_v13, %v2574_v17  ;;  %v930_v1 = vpop.f32.mrb[9].mxu0  ;;  %v1430_v6 = vadd.f32 %v1429_v39, %v1428_v61 }
 0x122   : > { %v931_v23 = vadd.f32 %v2574_v17, %v930_v1  ;;  %v1894_v7 = vpop.f32.mrb[10].mxu0 }
 0x123   : > { %1164 = vst.msk [vmem:[%s2165_s16 + $0x50] sm:$0xff] %vm1153_vm1, %v939_v4  ;;  %v1233_v59 = vadd.f32 %v1232_v5, %v1231_v58  ;;  %v942_v32 = vadd.f32 %v1894_v7, %v2574_v17  ;;  %v933_v9 = vpop.f32.mrb[11].mxu0  ;;  %v1432_v10 = vadd.f32 %v1431_v8, %v1430_v6  ;;  %v1366_v24 = vmul.f32 %v939_v4, %v939_v4 }
 0x124   : > { %1162 = vst.msk [vmem:[%s2165_s16 + $0x40] sm:$0xff] %vm1153_vm1, %v931_v23  ;;  %v1234_v11 = vsel %vm1153_vm1, %v931_v23, 0.0  ;;  %v1364_v14 = vmul.f32 %v931_v23, %v931_v23  ;;  %v934_v16 = vadd.f32 %v2574_v17, %v933_v9  ;;  %v1238_v27 = vsel %vm1153_vm1, %v939_v4, 0.0 }
 0x125   : > { %v1235_v18 = vadd.f32 %v1234_v11, %v1233_v59  ;;  %1165 = vst.msk [vmem:[%s2165_s16 + $0x58] sm:$0xff] %vm1153_vm1, %v942_v32  ;;  %v1434_v19 = vadd.f32 %v1433_v33, %v1432_v10  ;;  %v1367_v38 = vmul.f32 %v942_v32, %v942_v32  ;;  %v1240_v34 = vsel %vm1153_vm1, %v942_v32, 0.0 }
 0x126   : > { %v1435_v20 = vsel %vm1153_vm1, %v1364_v14, 0.0  ;;  %1163 = vst.msk [vmem:[%s2165_s16 + $0x48] sm:$0xff] %vm1153_vm1, %v934_v16  ;;  %v1236_v2 = vsel %vm1153_vm1, %v934_v16, 0.0  ;;  %v1365_v22 = vmul.f32 %v934_v16, %v934_v16  ;;  %v1439_v35 = vsel %vm1153_vm1, %v1366_v24, 0.0 }
 0x127   : > { %v1237_v25 = vadd.f32 %v1236_v2, %v1235_v18  ;;  %v1436_v26 = vadd.f32 %v1435_v20, %v1434_v19  ;;  %v1441_v48 = vsel %vm1153_vm1, %v1367_v38, 0.0 }
 0x128   : > { %v1437_v15 = vsel %vm1153_vm1, %v1365_v22, 0.0  ;;  %v1897_v28 = vpop.f32.mrb[12].mxu0 }
 0x129   : > { %v1239_v29 = vadd.f32 %v1238_v27, %v1237_v25  ;;  %v955_v37 = vadd.f32 %v1897_v28, %v2574_v17  ;;  %v946_v30 = vpop.f32.mrb[13].mxu0  ;;  %v1438_v40 = vadd.f32 %v1437_v15, %v1436_v26 }
 0x12a   : > { %v947_v49 = vadd.f32 %v2574_v17, %v946_v30  ;;  %v1898_v52 = vpop.f32.mrb[14].mxu0 }
 0x12b   : > { %1168 = vst.msk [vmem:[%s2165_s16 + $0x70] sm:$0xff] %vm1153_vm1, %v955_v37  ;;  %v1241_v36 = vadd.f32 %v1240_v34, %v1239_v29  ;;  %v958_v41 = vadd.f32 %v1898_v52, %v2574_v17  ;;  %v949_v44 = vpop.f32.mrb[15].mxu0  ;;  %v1440_v43 = vadd.f32 %v1439_v35, %v1438_v40  ;;  %v1370_v56 = vmul.f32 %v955_v37, %v955_v37 }
 0x12c   : > { %1166 = vst.msk [vmem:[%s2165_s16 + $0x60] sm:$0xff] %vm1153_vm1, %v947_v49  ;;  %v1242_v47 = vsel %vm1153_vm1, %v947_v49, 0.0  ;;  %v1368_v31 = vmul.f32 %v947_v49, %v947_v49  ;;  %v950_v45 = vadd.f32 %v2574_v17, %v949_v44  ;;  %v1246_v12 = vsel %vm1153_vm1, %v955_v37, 0.0 }
 0x12d   : > { %v1243_v50 = vadd.f32 %v1242_v47, %v1241_v36  ;;  %1169 = vst.msk [vmem:[%s2165_s16 + $0x78] sm:$0xff] %vm1153_vm1, %v958_v41  ;;  %v1442_v51 = vadd.f32 %v1441_v48, %v1440_v43  ;;  %v1371_v61 = vmul.f32 %v958_v41, %v958_v41  ;;  %v1248_v58 = vsel %vm1153_vm1, %v958_v41, 0.0 }
 0x12e   : > { %v1443_v53 = vsel %vm1153_vm1, %v1368_v31, 0.0  ;;  %1167 = vst.msk [vmem:[%s2165_s16 + $0x68] sm:$0xff] %vm1153_vm1, %v950_v45  ;;  %v1244_v42 = vsel %vm1153_vm1, %v950_v45, 0.0  ;;  %v1369_v55 = vmul.f32 %v950_v45, %v950_v45  ;;  %v1917_v60 = vpop.f32.mrb[0].mxu1  ;;  %v1447_v23 = vsel %vm1153_vm1, %v1370_v56, 0.0 }
 0x12f   : > { %v1245_v54 = vadd.f32 %v1244_v42, %v1243_v50  ;;  %v1444_v57 = vadd.f32 %v1443_v53, %v1442_v51  ;;  %v2655_v13 = vadd.f32 %v1917_v60, %v2574_v17  ;;  %v1026_v3 = vpop.f32.mrb[1].mxu1  ;;  %v1449_v16 = vsel %vm1153_vm1, %v1371_v61, 0.0 }
 0x130   : > { %v1445_v46 = vsel %vm1153_vm1, %v1369_v55, 0.0  ;;  %v1901_v21 = vpop.f32.mrb[16].mxu0  ;;  %v2660_v5 = vadd.f32 %v2574_v17, %v1026_v3  ;;  %v1918_v6 = vpop.f32.mrb[2].mxu1 }
 0x131   : > { %v1247_v62 = vadd.f32 %v1246_v12, %v1245_v54  ;;  %v971_v63 = vadd.f32 %v1901_v21, %v2574_v17  ;;  %v962_v0 = vpop.f32.mrb[17].mxu0  ;;  %v1446_v39 = vadd.f32 %v1445_v46, %v1444_v57  ;;  %1188 = vst.msk [vmem:[%s2165_s16 + $0x110] sm:$0xff] %vm1153_vm1, %v2655_v13  ;;  %v1029_v32 = vpop.f32.mrb[3].mxu1  ;;  %v2687_v34 = vadd.f32 %v1918_v6, %v2574_v17 }
 0x132   : > { %v963_v4 = vadd.f32 %v2574_v17, %v962_v0  ;;  %v1902_v1 = vpop.f32.mrb[18].mxu0  ;;  %1186 = vst.msk [vmem:[%s2165_s16 + $0x100] sm:$0xff] %vm1153_vm1, %v2660_v5  ;;  %v2692_v41 = vadd.f32 %v2574_v17, %v1029_v32 }
 0x133   : > { %1172 = vst.msk [vmem:[%s2165_s16 + $0x90] sm:$0xff] %vm1153_vm1, %v971_v63  ;;  %v1249_v7 = vadd.f32 %v1248_v58, %v1247_v62  ;;  %v974_v8 = vadd.f32 %v1902_v1, %v2574_v17  ;;  %v965_v59 = vpop.f32.mrb[19].mxu0  ;;  %v1448_v9 = vadd.f32 %v1447_v23, %v1446_v39  ;;  %v1374_v22 = vmul.f32 %v971_v63, %v971_v63 }
 0x134   : > { %1170 = vst.msk [vmem:[%s2165_s16 + $0x80] sm:$0xff] %vm1153_vm1, %v963_v4  ;;  %v1250_v10 = vsel %vm1153_vm1, %v963_v4, 0.0  ;;  %v1372_v11 = vmul.f32 %v963_v4, %v963_v4  ;;  %v966_v14 = vadd.f32 %v2574_v17, %v965_v59  ;;  %v1254_v25 = vsel %vm1153_vm1, %v971_v63, 0.0  ;;  %1189 = vst.msk [vmem:[%s2165_s16 + $0x118] sm:$0xff] %vm1153_vm1, %v2687_v34 }
 0x135   : > { %v1251_v33 = vadd.f32 %v1250_v10, %v1249_v7  ;;  %1173 = vst.msk [vmem:[%s2165_s16 + $0x98] sm:$0xff] %vm1153_vm1, %v974_v8  ;;  %v1450_v18 = vadd.f32 %v1449_v16, %v1448_v9  ;;  %v1375_v38 = vmul.f32 %v974_v8, %v974_v8  ;;  %v1256_v49 = vsel %vm1153_vm1, %v974_v8, 0.0  ;;  %1187 = vst.msk [vmem:[%s2165_s16 + $0x108] sm:$0xff] %vm1153_vm1, %v2692_v41 }
 0x136   : > { %v1451_v19 = vsel %vm1153_vm1, %v1372_v11, 0.0  ;;  %1171 = vst.msk [vmem:[%s2165_s16 + $0x88] sm:$0xff] %vm1153_vm1, %v966_v14  ;;  %v1252_v20 = vsel %vm1153_vm1, %v966_v14, 0.0  ;;  %v1373_v2 = vmul.f32 %v966_v14, %v966_v14  ;;  %v1921_v28 = vpop.f32.mrb[4].mxu1  ;;  %v1455_v43 = vsel %vm1153_vm1, %v1374_v22, 0.0 }
 0x137   : > { %v1253_v24 = vadd.f32 %v1252_v20, %v1251_v33  ;;  %v1452_v27 = vadd.f32 %v1451_v19, %v1450_v18  ;;  %v1042_v40 = vpop.f32.mrb[5].mxu1  ;;  %v1457_v55 = vsel %vm1153_vm1, %v1375_v38, 0.0  ;;  %v2725_v6 = vadd.f32 %v1921_v28, %v2574_v17 }
 0x138   : > { %v1453_v26 = vsel %vm1153_vm1, %v1373_v2, 0.0  ;;  %v1905_v15 = vpop.f32.mrb[20].mxu0  ;;  %v2694_v44 = vpop.f32.mrb[6].mxu1  ;;  %v2732_v9 = vadd.f32 %v2574_v17, %v1042_v40 }
 0x139   : > { %v1255_v29 = vadd.f32 %v1254_v25, %v1253_v24  ;;  %v987_v37 = vadd.f32 %v1905_v15, %v2574_v17  ;;  %v978_v30 = vpop.f32.mrb[21].mxu0  ;;  %v1454_v52 = vadd.f32 %v1453_v26, %v1452_v27  ;;  %v2703_v48 = vpop.f32.mrb[7].mxu1  ;;  %1192 = vst.msk [vmem:[%s2165_s16 + $0x130] sm:$0xff] %vm1153_vm1, %v2725_v6 }
 0x13a   : > { %v979_v35 = vadd.f32 %v2574_v17, %v978_v30  ;;  %v1906_v36 = vpop.f32.mrb[22].mxu0  ;;  %1190 = vst.msk [vmem:[%s2165_s16 + $0x120] sm:$0xff] %vm1153_vm1, %v2732_v9 }
 0x13b   : > { %1176 = vst.msk [vmem:[%s2165_s16 + $0xb0] sm:$0xff] %vm1153_vm1, %v987_v37  ;;  %v1257_v47 = vadd.f32 %v1256_v49, %v1255_v29  ;;  %v990_v31 = vadd.f32 %v1906_v36, %v2574_v17  ;;  %v981_v45 = vpop.f32.mrb[23].mxu0  ;;  %v1456_v50 = vadd.f32 %v1455_v43, %v1454_v52  ;;  %v1378_v21 = vmul.f32 %v987_v37, %v987_v37 }
 0x13c   : > { %1174 = vst.msk [vmem:[%s2165_s16 + $0xa0] sm:$0xff] %vm1153_vm1, %v979_v35  ;;  %v1258_v51 = vsel %vm1153_vm1, %v979_v35, 0.0  ;;  %v1376_v53 = vmul.f32 %v979_v35, %v979_v35  ;;  %v982_v42 = vadd.f32 %v2574_v17, %v981_v45  ;;  %v1262_v61 = vsel %vm1153_vm1, %v987_v37, 0.0 }
 0x13d   : > { %v1259_v56 = vadd.f32 %v1258_v51, %v1257_v47  ;;  %1177 = vst.msk [vmem:[%s2165_s16 + $0xb8] sm:$0xff] %vm1153_vm1, %v990_v31  ;;  %v1458_v54 = vadd.f32 %v1457_v55, %v1456_v50  ;;  %v1379_v58 = vmul.f32 %v990_v31, %v990_v31  ;;  %v1264_v7 = vsel %vm1153_vm1, %v990_v31, 0.0 }
 0x13e   : > { %v1459_v12 = vsel %vm1153_vm1, %v1376_v53, 0.0  ;;  %1175 = vst.msk [vmem:[%s2165_s16 + $0xa8] sm:$0xff] %vm1153_vm1, %v982_v42  ;;  %v1260_v57 = vsel %vm1153_vm1, %v982_v42, 0.0  ;;  %v1377_v46 = vmul.f32 %v982_v42, %v982_v42  ;;  %v2721_v3 = vpop.f32.mrb[8].mxu1  ;;  %v1463_v11 = vsel %vm1153_vm1, %v1378_v21, 0.0 }
 0x13f   : > { %v1261_v60 = vadd.f32 %v1260_v57, %v1259_v56  ;;  %v1460_v62 = vadd.f32 %v1459_v12, %v1458_v54  ;;  %v2727_v23 = vpop.f32.mrb[9].mxu1  ;;  %v1465_v24 = vsel %vm1153_vm1, %v1379_v58, 0.0  ;;  %v2766_v31 = vadd.f32 %v2694_v44, %v2574_v17 }
 0x140   : > { %v1461_v63 = vsel %vm1153_vm1, %v1377_v46, 0.0  ;;  %v1909_v0 = vpop.f32.mrb[24].mxu0  ;;  %v2734_v10 = vpop.f32.mrb[10].mxu1  ;;  %v2774_v55 = vadd.f32 %v2574_v17, %v2703_v48 }
 0x141   : > { %v1263_v39 = vadd.f32 %v1262_v61, %v1261_v60  ;;  %v1003_v4 = vadd.f32 %v1909_v0, %v2574_v17  ;;  %v994_v1 = vpop.f32.mrb[25].mxu0  ;;  %v1462_v8 = vadd.f32 %v1461_v63, %v1460_v62  ;;  %v2743_v18 = vpop.f32.mrb[11].mxu1  ;;  %1193 = vst.msk [vmem:[%s2165_s16 + $0x138] sm:$0xff] %vm1153_vm1, %v2766_v31 }
 0x142   : > { %v995_v59 = vadd.f32 %v2574_v17, %v994_v1  ;;  %v1910_v32 = vpop.f32.mrb[26].mxu0  ;;  %1191 = vst.msk [vmem:[%s2165_s16 + $0x128] sm:$0xff] %vm1153_vm1, %v2774_v55 }
 0x143   : > { %1180 = vst.msk [vmem:[%s2165_s16 + $0xd0] sm:$0xff] %vm1153_vm1, %v1003_v4  ;;  %v1265_v14 = vadd.f32 %v1264_v7, %v1263_v39  ;;  %v1006_v16 = vadd.f32 %v1910_v32, %v2574_v17  ;;  %v997_v33 = vpop.f32.mrb[27].mxu0  ;;  %v1464_v19 = vadd.f32 %v1463_v11, %v1462_v8  ;;  %v1382_v38 = vmul.f32 %v1003_v4, %v1003_v4 }
 0x144   : > { %1178 = vst.msk [vmem:[%s2165_s16 + $0xc0] sm:$0xff] %vm1153_vm1, %v995_v59  ;;  %v1266_v20 = vsel %vm1153_vm1, %v995_v59, 0.0  ;;  %v1380_v2 = vmul.f32 %v995_v59, %v995_v59  ;;  %v998_v22 = vadd.f32 %v2574_v17, %v997_v33  ;;  %v1270_v37 = vsel %vm1153_vm1, %v1003_v4, 0.0 }
 0x145   : > { %v1267_v25 = vadd.f32 %v1266_v20, %v1265_v14  ;;  %1181 = vst.msk [vmem:[%s2165_s16 + $0xd8] sm:$0xff] %vm1153_vm1, %v1006_v16  ;;  %v1466_v27 = vadd.f32 %v1465_v24, %v1464_v19  ;;  %v1383_v35 = vmul.f32 %v1006_v16, %v1006_v16  ;;  %v1272_v50 = vsel %vm1153_vm1, %v1006_v16, 0.0 }
 0x146   : > { %v1467_v26 = vsel %vm1153_vm1, %v1380_v2, 0.0  ;;  %1179 = vst.msk [vmem:[%s2165_s16 + $0xc8] sm:$0xff] %vm1153_vm1, %v998_v22  ;;  %v1268_v15 = vsel %vm1153_vm1, %v998_v22, 0.0  ;;  %v1381_v28 = vmul.f32 %v998_v22, %v998_v22  ;;  %v2761_v52 = vpop.f32.mrb[12].mxu1  ;;  %v1471_v54 = vsel %vm1153_vm1, %v1382_v38, 0.0 }
 0x147   : > { %v1269_v29 = vadd.f32 %v1268_v15, %v1267_v25  ;;  %v1468_v30 = vadd.f32 %v1467_v26, %v1466_v27  ;;  %v2768_v45 = vpop.f32.mrb[13].mxu1  ;;  %v1473_v62 = vsel %vm1153_vm1, %v1383_v35, 0.0  ;;  %v1282_v8 = vsel %vm1153_vm1, %v2660_v5, 0.0 }
 0x148   : > { %v1469_v40 = vsel %vm1153_vm1, %v1381_v28, 0.0  ;;  %v1913_v49 = vpop.f32.mrb[28].mxu0  ;;  %v1930_v56 = vpop.f32.mrb[14].mxu1  ;;  %v1388_v14 = vmul.f32 %v2660_v5, %v2660_v5  ;;  %v2805_v20 = vadd.f32 %v2721_v3, %v2574_v17  ;;  %v2809_v2 = vadd.f32 %v2574_v17, %v2727_v23 }
 0x149   : > { %v1271_v36 = vadd.f32 %v1270_v37, %v1269_v29  ;;  %v1019_v43 = vadd.f32 %v1913_v49, %v2574_v17  ;;  %v1010_v47 = vpop.f32.mrb[29].mxu0  ;;  %v1470_v51 = vadd.f32 %v1469_v40, %v1468_v30  ;;  %v1077_v46 = vpop.f32.mrb[15].mxu1  ;;  %v2814_v5 = vadd.f32 %v2734_v10, %v2574_v17 }
 0x14a   : > { %v1011_v53 = vadd.f32 %v2574_v17, %v1010_v47  ;;  %v1914_v42 = vpop.f32.mrb[30].mxu0  ;;  %v2818_v27 = vadd.f32 %v2574_v17, %v2743_v18  ;;  %1196 = vst.msk [vmem:[%s2165_s16 + $0x150] sm:$0xff] %vm1153_vm1, %v2805_v20  ;;  %1194 = vst.msk [vmem:[%s2165_s16 + $0x140] sm:$0xff] %vm1153_vm1, %v2809_v2  ;;  %v1483_v38 = vsel %vm1153_vm1, %v1388_v14, 0.0  ;;  %v1389_v29 = vmul.f32 %v2692_v41, %v2692_v41 }
 0x14b   : > { %1184 = vst.msk [vmem:[%s2165_s16 + $0xf0] sm:$0xff] %vm1153_vm1, %v1019_v43  ;;  %v1273_v44 = vadd.f32 %v1272_v50, %v1271_v36  ;;  %v1022_v12 = vadd.f32 %v1914_v42, %v2574_v17  ;;  %v1013_v57 = vpop.f32.mrb[31].mxu0  ;;  %v1472_v21 = vadd.f32 %v1471_v54, %v1470_v51  ;;  %v1386_v1 = vmul.f32 %v1019_v43, %v1019_v43 }
 0x14c   : > { %1182 = vst.msk [vmem:[%s2165_s16 + $0xe0] sm:$0xff] %vm1153_vm1, %v1011_v53  ;;  %v1274_v48 = vsel %vm1153_vm1, %v1011_v53, 0.0  ;;  %v1384_v60 = vmul.f32 %v1011_v53, %v1011_v53  ;;  %v1014_v61 = vadd.f32 %v2574_v17, %v1013_v57  ;;  %v1278_v59 = vsel %vm1153_vm1, %v1019_v43, 0.0  ;;  %1197 = vst.msk [vmem:[%s2165_s16 + $0x158] sm:$0xff] %vm1153_vm1, %v2814_v5 }
 0x14d   : > { %v1275_v63 = vadd.f32 %v1274_v48, %v1273_v44  ;;  %1185 = vst.msk [vmem:[%s2165_s16 + $0xf8] sm:$0xff] %vm1153_vm1, %v1022_v12  ;;  %v1474_v0 = vadd.f32 %v1473_v62, %v1472_v21  ;;  %v1387_v33 = vmul.f32 %v1022_v12, %v1022_v12  ;;  %v1280_v24 = vsel %vm1153_vm1, %v1022_v12, 0.0  ;;  %1195 = vst.msk [vmem:[%s2165_s16 + $0x148] sm:$0xff] %vm1153_vm1, %v2818_v27 }
 0x14e   : > { %v1475_v58 = vsel %vm1153_vm1, %v1384_v60, 0.0  ;;  %1183 = vst.msk [vmem:[%s2165_s16 + $0xe8] sm:$0xff] %vm1153_vm1, %v1014_v61  ;;  %v1276_v39 = vsel %vm1153_vm1, %v1014_v61, 0.0  ;;  %v1385_v4 = vmul.f32 %v1014_v61, %v1014_v61  ;;  %v1933_v16 = vpop.f32.mrb[16].mxu1  ;;  %v1479_v3 = vsel %vm1153_vm1, %v1386_v1, 0.0 }
 0x14f   : > { %v1277_v7 = vadd.f32 %v1276_v39, %v1275_v63  ;;  %v1476_v32 = vadd.f32 %v1475_v58, %v1474_v0  ;;  %v1090_v22 = vpop.f32.mrb[17].mxu1  ;;  %v1481_v10 = vsel %vm1153_vm1, %v1387_v33, 0.0  ;;  %v1284_v30 = vsel %vm1153_vm1, %v2692_v41, 0.0 }
 0x150   : > { %v1477_v11 = vsel %vm1153_vm1, %v1385_v4, 0.0  ;;  %v1934_v26 = vpop.f32.mrb[18].mxu1  ;;  %v2841_v40 = vadd.f32 %v2761_v52, %v2574_v17  ;;  %v1390_v49 = vmul.f32 %v2655_v13, %v2655_v13  ;;  %v2847_v36 = vadd.f32 %v2574_v17, %v2768_v45 }
 0x151   : > { %v1279_v19 = vadd.f32 %v1278_v59, %v1277_v7  ;;  %v1478_v25 = vadd.f32 %v1477_v11, %v1476_v32  ;;  %v1093_v23 = vpop.f32.mrb[19].mxu1  ;;  %v2850_v43 = vadd.f32 %v1930_v56, %v2574_v17  ;;  %v1286_v41 = vsel %vm1153_vm1, %v2655_v13, 0.0 }
 0x152   : > { %1200 = vst.msk [vmem:[%s2165_s16 + $0x170] sm:$0xff] %vm1153_vm1, %v2841_v40  ;;  %v2858_v52 = vadd.f32 %v2574_v17, %v1077_v46  ;;  %v1391_v51 = vmul.f32 %v2687_v34, %v2687_v34  ;;  %v1485_v53 = vsel %vm1153_vm1, %v1389_v29, 0.0  ;;  %v1392_v42 = vmul.f32 %v2732_v9, %v2732_v9  ;;  %1198 = vst.msk [vmem:[%s2165_s16 + $0x160] sm:$0xff] %vm1153_vm1, %v2847_v36 }
 0x153   : > { %v1281_v15 = vadd.f32 %v1280_v24, %v1279_v19  ;;  %v1480_v28 = vadd.f32 %v1479_v3, %v1478_v25  ;;  %1201 = vst.msk [vmem:[%s2165_s16 + $0x178] sm:$0xff] %vm1153_vm1, %v2850_v43  ;;  %v1288_v56 = vsel %vm1153_vm1, %v2687_v34, 0.0  ;;  %v1290_v44 = vsel %vm1153_vm1, %v2732_v9, 0.0 }
 0x154   : > { %1199 = vst.msk [vmem:[%s2165_s16 + $0x168] sm:$0xff] %vm1153_vm1, %v2858_v52  ;;  %v1487_v57 = vsel %vm1153_vm1, %v1390_v49, 0.0  ;;  %v2880_v21 = vadd.f32 %v1933_v16, %v2574_v17  ;;  %v2883_v34 = vadd.f32 %v2574_v17, %v1090_v22  ;;  %v2886_v61 = vadd.f32 %v1934_v26, %v2574_v17 }
 0x155   : > { %v1283_v18 = vadd.f32 %v1282_v8, %v1281_v15  ;;  %v1482_v37 = vadd.f32 %v1481_v10, %v1480_v28  ;;  %v1489_v9 = vsel %vm1153_vm1, %v1391_v51, 0.0  ;;  %v1491_v63 = vsel %vm1153_vm1, %v1392_v42, 0.0 }
 0x156   : > { %v1937_v50 = vpop.f32.mrb[20].mxu1  ;;  %v1393_v0 = vmul.f32 %v2774_v55, %v2774_v55  ;;  %1204 = vst.msk [vmem:[%s2165_s16 + $0x190] sm:$0xff] %vm1153_vm1, %v2880_v21  ;;  %v1292_v39 = vsel %vm1153_vm1, %v2774_v55, 0.0  ;;  %1202 = vst.msk [vmem:[%s2165_s16 + $0x180] sm:$0xff] %vm1153_vm1, %v2883_v34  ;;  %v1394_v4 = vmul.f32 %v2725_v6, %v2725_v6  ;;  %v2906_v7 = vadd.f32 %v2574_v17, %v1093_v23 }
 0x157   : > { %v1285_v35 = vadd.f32 %v1284_v30, %v1283_v18  ;;  %v1484_v47 = vadd.f32 %v1483_v38, %v1482_v37  ;;  %v1106_v13 = vpop.f32.mrb[21].mxu1  ;;  %1205 = vst.msk [vmem:[%s2165_s16 + $0x198] sm:$0xff] %vm1153_vm1, %v2886_v61  ;;  %v1294_v8 = vsel %vm1153_vm1, %v2725_v6, 0.0  ;;  %v2911_v55 = vadd.f32 %v1937_v50, %v2574_v17 }
 0x158   : > { %v1938_v12 = vpop.f32.mrb[22].mxu1  ;;  %v2914_v32 = vadd.f32 %v2574_v17, %v1106_v13  ;;  %v1395_v14 = vmul.f32 %v2766_v31, %v2766_v31  ;;  %v1493_v33 = vsel %vm1153_vm1, %v1393_v0, 0.0  ;;  %v1396_v19 = vmul.f32 %v2809_v2, %v2809_v2  ;;  %1203 = vst.msk [vmem:[%s2165_s16 + $0x188] sm:$0xff] %vm1153_vm1, %v2906_v7 }
 0x159   : > { %v1287_v45 = vadd.f32 %v1286_v41, %v1285_v35  ;;  %v1486_v54 = vadd.f32 %v1485_v53, %v1484_v47  ;;  %v1109_v48 = vpop.f32.mrb[23].mxu1  ;;  %v1296_v22 = vsel %vm1153_vm1, %v2766_v31, 0.0  ;;  %v1298_v25 = vsel %vm1153_vm1, %v2809_v2, 0.0  ;;  %1208 = vst.msk [vmem:[%s2165_s16 + $0x1b0] sm:$0xff] %vm1153_vm1, %v2911_v55 }
 0x15a   : > { %1206 = vst.msk [vmem:[%s2165_s16 + $0x1a0] sm:$0xff] %vm1153_vm1, %v2914_v32  ;;  %v1495_v3 = vsel %vm1153_vm1, %v1394_v4, 0.0  ;;  %v2936_v23 = vadd.f32 %v1938_v12, %v2574_v17  ;;  %v2939_v10 = vadd.f32 %v2574_v17, %v1109_v48  ;;  %v1497_v18 = vsel %vm1153_vm1, %v1395_v14, 0.0 }
 0x15b   : > { %v1289_v46 = vadd.f32 %v1288_v56, %v1287_v45  ;;  %v1488_v60 = vadd.f32 %v1487_v57, %v1486_v54  ;;  %v1499_v29 = vsel %vm1153_vm1, %v1396_v19, 0.0  ;;  %v1397_v37 = vmul.f32 %v2818_v27, %v2818_v27 }
 0x15c   : > { %1209 = vst.msk [vmem:[%s2165_s16 + $0x1b8] sm:$0xff] %vm1153_vm1, %v2936_v23  ;;  %v1300_v49 = vsel %vm1153_vm1, %v2818_v27, 0.0  ;;  %1207 = vst.msk [vmem:[%s2165_s16 + $0x1a8] sm:$0xff] %vm1153_vm1, %v2939_v10  ;;  %v1398_v35 = vmul.f32 %v2805_v20, %v2805_v20  ;;  %v1302_v50 = vsel %vm1153_vm1, %v2805_v20, 0.0  ;;  %v1399_v42 = vmul.f32 %v2814_v5, %v2814_v5 }
 0x15d   : > { %v1291_v62 = vadd.f32 %v1290_v44, %v1289_v46  ;;  %v1490_v58 = vadd.f32 %v1489_v9, %v1488_v60  ;;  %v1501_v56 = vsel %vm1153_vm1, %v1397_v37, 0.0  ;;  %v1400_v54 = vmul.f32 %v2847_v36, %v2847_v36 }
 0x15e   : > { %v1941_v11 = vpop.f32.mrb[24].mxu1  ;;  %v1304_v44 = vsel %vm1153_vm1, %v2814_v5, 0.0  ;;  %v1306_v57 = vsel %vm1153_vm1, %v2847_v36, 0.0  ;;  %v1503_v48 = vsel %vm1153_vm1, %v1398_v35, 0.0  ;;  %v1505_v0 = vsel %vm1153_vm1, %v1399_v42, 0.0 }
 0x15f   : > { %v1293_v1 = vadd.f32 %v1292_v39, %v1291_v62  ;;  %v1492_v59 = vadd.f32 %v1491_v63, %v1490_v58  ;;  %v1122_v6 = vpop.f32.mrb[25].mxu1  ;;  %v2942_v2 = vadd.f32 %v1941_v11, %v2574_v17  ;;  %v1507_v39 = vsel %vm1153_vm1, %v1400_v54, 0.0 }
 0x160   : > { %v1942_v26 = vpop.f32.mrb[26].mxu1  ;;  %v2962_v47 = vadd.f32 %v2574_v17, %v1122_v6  ;;  %v1401_v4 = vmul.f32 %v2858_v52, %v2858_v52  ;;  %v1318_v37 = vsel %vm1153_vm1, %v2880_v21, 0.0 }
 0x161   : > { %v1295_v16 = vadd.f32 %v1294_v8, %v1293_v1  ;;  %v1494_v24 = vadd.f32 %v1493_v33, %v1492_v59  ;;  %v1125_v31 = vpop.f32.mrb[27].mxu1  ;;  %1212 = vst.msk [vmem:[%s2165_s16 + $0x1d0] sm:$0xff] %vm1153_vm1, %v2942_v2  ;;  %v2967_v27 = vadd.f32 %v1942_v26, %v2574_v17  ;;  %v1308_v8 = vsel %vm1153_vm1, %v2858_v52, 0.0 }
 0x162   : > { %v2970_v45 = vadd.f32 %v2574_v17, %v1125_v31  ;;  %1210 = vst.msk [vmem:[%s2165_s16 + $0x1c0] sm:$0xff] %vm1153_vm1, %v2962_v47  ;;  %v1402_v59 = vmul.f32 %v2841_v40, %v2841_v40  ;;  %v1403_v52 = vmul.f32 %v2850_v43, %v2850_v43  ;;  %v1509_v6 = vsel %vm1153_vm1, %v1401_v4, 0.0 }
 0x163   : > { %v1297_v15 = vadd.f32 %v1296_v22, %v1295_v16  ;;  %v1496_v28 = vadd.f32 %v1495_v3, %v1494_v24  ;;  %1213 = vst.msk [vmem:[%s2165_s16 + $0x1d8] sm:$0xff] %vm1153_vm1, %v2967_v27  ;;  %v1310_v16 = vsel %vm1153_vm1, %v2841_v40, 0.0  ;;  %v1404_v22 = vmul.f32 %v2883_v34, %v2883_v34 }
 0x164   : > { %1211 = vst.msk [vmem:[%s2165_s16 + $0x1c8] sm:$0xff] %vm1153_vm1, %v2970_v45  ;;  %v1314_v40 = vsel %vm1153_vm1, %v2883_v34, 0.0 }
 0x165   : > { %v1299_v38 = vadd.f32 %v1298_v25, %v1297_v15  ;;  %v1498_v30 = vadd.f32 %v1497_v18, %v1496_v28  ;;  %v1511_v25 = vsel %vm1153_vm1, %v1402_v59, 0.0  ;;  %v1513_v15 = vsel %vm1153_vm1, %v1403_v52, 0.0 }
 0x166   : > { %v1945_v53 = vpop.f32.mrb[28].mxu1  ;;  %v1515_v28 = vsel %vm1153_vm1, %v1404_v22, 0.0  ;;  %v1405_v18 = vmul.f32 %v2906_v7, %v2906_v7  ;;  %v1414_v52 = vmul.f32 %v2942_v2, %v2942_v2  ;;  %v1415_v22 = vmul.f32 %v2967_v27, %v2967_v27 }
 0x167   : > { %v1301_v41 = vadd.f32 %v1300_v49, %v1299_v38  ;;  %v1500_v51 = vadd.f32 %v1499_v29, %v1498_v30  ;;  %v1138_v20 = vpop.f32.mrb[29].mxu1  ;;  %v2992_v9 = vadd.f32 %v1945_v53, %v2574_v17  ;;  %v1406_v29 = vmul.f32 %v2880_v21, %v2880_v21 }
 0x168   : > { %v1946_v46 = vpop.f32.mrb[30].mxu1  ;;  %v2995_v63 = vadd.f32 %v2574_v17, %v1138_v20  ;;  %v1407_v49 = vmul.f32 %v2886_v61, %v2886_v61  ;;  %v1322_v53 = vsel %vm1153_vm1, %v2914_v32, 0.0 }
 0x169   : > { %v1303_v13 = vadd.f32 %v1302_v50, %v1301_v41  ;;  %v1502_v12 = vadd.f32 %v1501_v56, %v1500_v51  ;;  %v1141_v5 = vpop.f32.mrb[31].mxu1  ;;  %v2998_v36 = vadd.f32 %v1946_v46, %v2574_v17  ;;  %1216 = vst.msk [vmem:[%s2165_s16 + $0x1f0] sm:$0xff] %vm1153_vm1, %v2992_v9  ;;  %v1517_v41 = vsel %vm1153_vm1, %v1405_v18, 0.0 }
 0x16a   : > { %1214 = vst.msk [vmem:[%s2165_s16 + $0x1e0] sm:$0xff] %vm1153_vm1, %v2995_v63  ;;  %v3018_v14 = vadd.f32 %v2574_v17, %v1141_v5  ;;  %v1312_v17 = vsel %vm1153_vm1, %v2850_v43, 0.0  ;;  %v1316_v43 = vsel %vm1153_vm1, %v2906_v7, 0.0  ;;  %v1408_v50 = vmul.f32 %v2914_v32, %v2914_v32 }
 0x16b   : > { %v1305_v60 = vadd.f32 %v1304_v44, %v1303_v13  ;;  %v1504_v62 = vadd.f32 %v1503_v48, %v1502_v12  ;;  %1217 = vst.msk [vmem:[%s2165_s16 + $0x1f8] sm:$0xff] %vm1153_vm1, %v2998_v36  ;;  %v1320_v7 = vsel %vm1153_vm1, %v2886_v61, 0.0  ;;  %v1519_v42 = vsel %vm1153_vm1, %v1406_v29, 0.0 }
 0x16c   : > { %1215 = vst.msk [vmem:[%s2165_s16 + $0x1e8] sm:$0xff] %vm1153_vm1, %v3018_v14  ;;  %v1521_v56 = vsel %vm1153_vm1, %v1407_v49, 0.0  ;;  %v1523_v20 = vsel %vm1153_vm1, %v1408_v50, 0.0  ;;  %v1409_v44 = vmul.f32 %v2939_v10, %v2939_v10  ;;  %v1324_v61 = vsel %vm1153_vm1, %v2939_v10, 0.0 }
 0x16d   : > { %v1307_v58 = vadd.f32 %v1306_v57, %v1305_v60  ;;  %v1506_v1 = vadd.f32 %v1505_v0, %v1504_v62  ;;  %v1410_v57 = vmul.f32 %v2911_v55, %v2911_v55  ;;  %v1326_v46 = vsel %vm1153_vm1, %v2911_v55, 0.0 }
 0x16e   : > { %v1411_v60 = vmul.f32 %v2936_v23, %v2936_v23  ;;  %v1525_v62 = vsel %vm1153_vm1, %v1409_v44, 0.0  ;;  %v1412_v0 = vmul.f32 %v2962_v47, %v2962_v47  ;;  %v1328_v10 = vsel %vm1153_vm1, %v2936_v23, 0.0 }
 0x16f   : > { %v1309_v11 = vadd.f32 %v1308_v8, %v1307_v58  ;;  %v1508_v33 = vadd.f32 %v1507_v39, %v1506_v1  ;;  %v1330_v39 = vsel %vm1153_vm1, %v2962_v47, 0.0  ;;  %v1527_v4 = vsel %vm1153_vm1, %v1410_v57, 0.0 }
 0x170   : > { %v1529_v8 = vsel %vm1153_vm1, %v1411_v60, 0.0  ;;  %v1332_v23 = vsel %vm1153_vm1, %v2970_v45, 0.0  ;;  %v1418_v29 = vmul.f32 %v2992_v9, %v2992_v9 }
 0x171   : > { %v1311_v19 = vadd.f32 %v1310_v16, %v1309_v11  ;;  %v1510_v24 = vadd.f32 %v1509_v6, %v1508_v33  ;;  %v1531_v11 = vsel %vm1153_vm1, %v1412_v0, 0.0  ;;  %v1413_v16 = vmul.f32 %v2970_v45, %v2970_v45 }
 0x172   : > { %v1336_v45 = vsel %vm1153_vm1, %v2967_v27, 0.0  ;;  %v1340_v27 = vsel %vm1153_vm1, %v3018_v14, 0.0 }
 0x173   : > { %v1313_v26 = vadd.f32 %v1312_v17, %v1311_v19  ;;  %v1512_v3 = vadd.f32 %v1511_v25, %v1510_v24  ;;  %v1334_v19 = vsel %vm1153_vm1, %v2942_v2, 0.0  ;;  %v1533_v24 = vsel %vm1153_vm1, %v1413_v16, 0.0 }
 0x175   : > { %v1315_v31 = vadd.f32 %v1314_v40, %v1313_v26  ;;  %v1514_v38 = vadd.f32 %v1513_v15, %v1512_v3  ;;  %v1416_v40 = vmul.f32 %v2995_v63, %v2995_v63  ;;  %v1338_v26 = vsel %vm1153_vm1, %v2995_v63, 0.0 }
 0x176   : > { %v1535_v3 = vsel %vm1153_vm1, %v1414_v52, 0.0 }
 0x177   : > { %v1317_v34 = vadd.f32 %v1316_v43, %v1315_v31  ;;  %v1516_v30 = vadd.f32 %v1515_v28, %v1514_v38  ;;  %v1537_v31 = vsel %vm1153_vm1, %v1415_v22, 0.0  ;;  %v1539_v18 = vsel %vm1153_vm1, %v1416_v40, 0.0 }
 0x178   : > { %v1417_v38 = vmul.f32 %v3018_v14, %v3018_v14  ;;  %v1543_v14 = vsel %vm1153_vm1, %v1418_v29, 0.0 }
 0x179   : > { %v1319_v35 = vadd.f32 %v1318_v37, %v1317_v34  ;;  %v1518_v51 = vadd.f32 %v1517_v41, %v1516_v30  ;;  %v1342_v34 = vsel %vm1153_vm1, %v2992_v9, 0.0  ;;  %v1419_v30 = vmul.f32 %v2998_v36, %v2998_v36 }
 0x17a   : > { %v1344_v41 = vsel %vm1153_vm1, %v2998_v36, 0.0  ;;  %v1218_v36 = vld [vmem:[%s2149_s24] sm:$0x1] }
 0x17b   : > { %v1321_v21 = vadd.f32 %v1320_v7, %v1319_v35  ;;  %v1520_v13 = vadd.f32 %v1519_v42, %v1518_v51  ;;  %v1541_v35 = vsel %vm1153_vm1, %v1417_v38, 0.0 }
 0x17d   : > { %v1323_v54 = vadd.f32 %v1322_v53, %v1321_v21  ;;  %v1522_v12 = vadd.f32 %v1521_v56, %v1520_v13  ;;  %v1545_v53 = vsel %vm1153_vm1, %v1419_v30, 0.0 }
 0x17f   : > { %v1325_v32 = vadd.f32 %v1324_v61, %v1323_v54  ;;  %v1524_v48 = vadd.f32 %v1523_v20, %v1522_v12 }
 0x181   : > { %v1327_v5 = vadd.f32 %v1326_v46, %v1325_v32  ;;  %v1526_v58 = vadd.f32 %v1525_v62, %v1524_v48  ;;  %v1355_v48 = vld [vmem:[%s2155_s28] sm:$0x1] }
 0x183   : > { %v1329_v55 = vadd.f32 %v1328_v10, %v1327_v5  ;;  %v1528_v1 = vadd.f32 %v1527_v4, %v1526_v58 }
 0x185   : > { %v1331_v59 = vadd.f32 %v1330_v39, %v1329_v55  ;;  %v1530_v33 = vadd.f32 %v1529_v8, %v1528_v1 }
 0x187   : > { %v1333_v47 = vadd.f32 %v1332_v23, %v1331_v59  ;;  %v1532_v6 = vadd.f32 %v1531_v11, %v1530_v33 }
 0x189   : > { %v1335_v17 = vadd.f32 %v1334_v19, %v1333_v47  ;;  %v1534_v25 = vadd.f32 %v1533_v24, %v1532_v6 }
 0x18b   : > { %v1337_v2 = vadd.f32 %v1336_v45, %v1335_v17  ;;  %v1536_v15 = vadd.f32 %v1535_v3, %v1534_v25 }
 0x18d   : > { %v1339_v28 = vadd.f32 %v1338_v26, %v1337_v2  ;;  %v1538_v43 = vadd.f32 %v1537_v31, %v1536_v15 }
 0x18f   : > { %v1341_v63 = vadd.f32 %v1340_v27, %v1339_v28  ;;  %v1540_v37 = vadd.f32 %v1539_v18, %v1538_v43 }
 0x191   : > { %v1343_v49 = vadd.f32 %v1342_v34, %v1341_v63  ;;  %v1542_v50 = vadd.f32 %v1541_v35, %v1540_v37 }
 0x193   : > { %v1345_v7 = vadd.f32 %v1344_v41, %v1343_v49  ;;  %v1544_v51 = vadd.f32 %v1543_v14, %v1542_v50 }
 0x195   : > { %v1346_v9 = vrot.slane %v1345_v7, 4  ;;  %v1546_v42 = vadd.f32 %v1545_v53, %v1544_v51 }
 0x197   : > { %v1347_v21 = vadd.f32 %v1346_v9, %v1345_v7  ;;  %v1547_v13 = vrot.slane %v1546_v42, 4 }
 0x199   : > { %v1348_v56 = vrot.slane %v1347_v21, 2  ;;  %v1548_v54 = vadd.f32 %v1547_v13, %v1546_v42 }
 0x19b   : > { %v1349_v20 = vadd.f32 %v1348_v56, %v1347_v21  ;;  %v1549_v44 = vrot.slane %v1548_v54, 2 }
 0x19d   : > { %v1350_v12 = vrot.slane %v1349_v20, 1  ;;  %v1550_v61 = vadd.f32 %v1549_v44, %v1548_v54 }
 0x19f   : > { %v1351_v57 = vadd.f32 %v1350_v12, %v1349_v20  ;;  %v1551_v32 = vrot.slane %v1550_v61, 1 }
 0x1a1   : > { %v1352_v46 = vadd.f32 %v1351_v57, %v1218_v36  ;;  %v1552_v60 = vadd.f32 %v1551_v32, %v1550_v61 }
 0x1a3   : > { %1354 = vst.msk [vmem:[%s2149_s24] sm:$0x1] %vm1353_vm2, %v1352_v46  ;;  %v1553_v5 = vadd.f32 %v1552_v60, %v1355_v48 }
 0x1a5   : > { %1554 = vst.msk [vmem:[%s2155_s28] sm:$0x1] %vm1353_vm2, %v1553_v5 }
 0x1a6 PF: > { %s20_s13 = sadd.s32 1, %s2051_s13   ;;  %s3145_s10 = sld [smem:[#allocation2_spill]] }
 0x1a7   : > { %p17_p8 = scmp.ge.s32.totalorder %s20_s13, 6   ;;  %s3146_s16 = sld [smem:[#allocation3_spill]] }
 0x1a8   : > { %s3147_s12 = sld [smem:[#allocation4_spill]]  ;;  %s3148_s30 = smov %s2043_s11 }
 0x1a9   :  { %19 = sbr.rel (!%p17_p8) target bundleno = 3 (0x3), region = 117 }
 0x1ad   : > { %s3149_s11 = smov %s3146_s16 }

// kernel: deepsets_block.12
= control target key start
LH: loop header
LB: loop body
LE: loop exit
PB: predicated region body
PF: predicated region fallthrough
CT: control target
= control target key end

     0   :  { %s520_s0 = inlined_call_operand.vmem [shape: f32[2,1,1], index: 0, kind: input, shape index: {}]   ;;  %s521_s1 = inlined_call_operand.vmem [shape: f32[2,1,1], index: 1, kind: input, shape index: {}]   ;;  %s522_s2 = inlined_call_operand.vmem [shape: f32[2,1,64], index: 2, kind: input, shape index: {}]   ;;  %s523_s3 = inlined_call_operand.vmem [shape: f32[64,1], index: 3, kind: input, shape index: {}]   ;;  %s524_s4 = inlined_call_operand.<no memory space> [shape: f32[1,1], index: 4, kind: input, shape index: {}]   ;;  %s525_s5 = inlined_call_operand.hbm [shape: f32[1,1], index: 5, kind: output, shape index: {0}]   ;;  %s526_s6 = inlined_call_operand.hbm [shape: f32[1,1], index: 6, kind: output, shape index: {1}]   ;;  %s527_s7 = inlined_call_operand.vmem [shape: f32[2,1,1], index: 7, kind: output, shape index: {2}]  }
   0x1   :  { %v13_v0 = vstv %s524_s4 }
   0x2   :  { %14 = vst [vmem:[#allocation2] sm:$0x1] %v13_v0 }
   0x3   :  { %15 = vsyncpa [#allocation4], 0  ;;  %v94_v1 = vld [vmem:[%s523_s3] sm:$0xff]  ;;  %v95_v2 = vld [vmem:[%s523_s3 + $0x8] sm:$0xff]  ;;  %v35_v4 = vlaneseq  ;;  %v380_v5 = vmov 0.0|0.0   ;;  %vm381_vm0 = vmmov 0  }
   0x4   :  { %v96_v3 = vld [vmem:[%s523_s3 + $0x10] sm:$0xff]  ;;  %310 = vmatprep.subr.bf16.mxu0 %v380_v5  ;;  %v311_v6 = vpack.c.bf16 %v95_v2, %v94_v1  ;;  %v97_v7 = vld [vmem:[%s523_s3 + $0x18] sm:$0xff]  ;;  %v382_v8 = vmov 0.0   ;;  %v383_v9 = vmov 1966171168   ;;  %v98_v15 = vld [vmem:[%s523_s3 + $0x20] sm:$0xff] }
   0x5   :  { %307 = vmatprep.mubr.msk.f32.mxu0 %vm381_vm0, %v382_v8  ;;  %v33_v10 = vunpack.c.l.s4 %v383_v9  ;;  %v36_v11 = vshrl.u32 %v35_v4, 7  ;;  %v314_v12 = vpack.c.bf16 %v97_v7, %v96_v3  ;;  %v92_v13 = vld [vmem:[%s522_s2] sm:$0x1]  ;;  %v93_v14 = vld [vmem:[%s522_s2 + $0x1] sm:$0x1]  ;;  %v99_v16 = vld [vmem:[%s523_s3 + $0x28] sm:$0xff] }
   0x6   :  { %312 = vmatpush3.bf16.msra.mxu0 %v311_v6 }
   0x7   :  { %313 = vmatprep.subr.bf16.mxu0 %v380_v5  ;;  %v34_v17 = vunpack.c.0.s8 %v33_v10 }
   0x8   :  { %16 = vsyncpa [#allocation6], 0  ;;  %v111_v19 = vcombine.low %v92_v13, %v93_v14  ;;  %v317_v20 = vpack.c.bf16 %v99_v16, %v98_v15  ;;  %v100_v21 = vld [vmem:[%s523_s3 + $0x30] sm:$0xff]  ;;  %v101_v22 = vld [vmem:[%s523_s3 + $0x38] sm:$0xff]  ;;  %vm126_vm1 = vcmask 523264   ;;  %vm47_vm2 = vcmask 1024  }
   0x9   :  { %v453_v18 = vsub.s32 %v34_v17, %v36_v11  ;;  %v320_v24 = vpack.c.bf16 %v101_v22, %v100_v21  ;;  %v55_v26 = vld [vmem:[%s521_s1] sm:$0x1]  ;;  %v56_v27 = vld [vmem:[%s521_s1 + $0x1] sm:$0x1]  ;;  %vm87_vm3 = vcmask 0   ;;  %s385_s28 = smov [#allocation5]  }
   0xa   :  { %315 = vmatpush3.bf16.msra.mxu0 %v314_v12  ;;  %v59_v28 = vcombine.low %v55_v26, %v56_v27  ;;  %v27_v31 = vld [vmem:[%s520_s0] sm:$0x1]  ;;  %v28_v32 = vld [vmem:[%s520_s0 + $0x1] sm:$0x1]  ;;  %s384_s0 = smov [#allocation3]   ;;  %s264_s29 = sshll.u32 %s385_s28, 4  ;;  %s265_s29 = int_to_ptr.vmem [resolvable:$true] %s264_s29 }
   0xb   :  { %316 = vmatprep.subr.bf16.mxu0 %v380_v5  ;;  %v118_v23 = vrot.slane %v111_v19, %v453_v18  ;;  %v31_v33 = vcombine.low %v27_v31, %v28_v32  ;;  %s254_s1 = sshll.u32 %s384_s0, 4  ;;  %s255_s1 = int_to_ptr.vmem [resolvable:$true] %s254_s1 }
   0xc   :  { %v66_v29 = vrot.slane %v59_v28, %v453_v18  ;;  %s332_s30 = scalar_lea.vmem %s255_s1, 16  ;;  %s336_s8 = scalar_lea.vmem %s255_s1, 32 }
   0xd   :  { %v125_v25 = vrot.slane %v118_v23, %v453_v18  ;;  %v38_v35 = vrot.slane %v31_v33, %v453_v18  ;;  %p333_p0 = scmp.ne.s32.totalorder %s255_s1, %s332_s30  ;;  %p337_p1 = scmp.lt.s32.totalorder %s255_s1, %s255_s1 }
   0xe   :  { %318 = vmatpush3.bf16.msra.mxu0 %v317_v20  ;;  %v73_v30 = vrot.slane %v66_v29, %v453_v18  ;;  %p338_p2 = scmp.lt.s32.totalorder %s336_s8, %s332_s30 }
   0xf   :  { %319 = vmatprep.subr.bf16.mxu0 %v380_v5  ;;  %v45_v36 = vrot.slane %v38_v35, %v453_v18 }
  0x10   :  { %v75_v34 = vsel %vm47_vm2, %v73_v30, 0.0  ;;  %p339_p3 = por %p338_p2, %p337_p1 }
  0x11   :  { %v76_v37 = vrot.slane %v75_v34, 4  ;;  %v48_v38 = vsel %vm47_vm2, %v45_v36, 0.0 }
  0x12   :  { %321 = vmatpush3.bf16.msra.mxu0 %v320_v24  ;;  %v49_v39 = vrot.slane %v48_v38, 4  ;;  %p340_p4 = pnand %p339_p3, %p333_p0 }
  0x13   :  { %v77_v40 = vadd.f32 %v76_v37, %v75_v34 }
  0x14   :  { %v50_v41 = vadd.f32 %v49_v39, %v48_v38 }
  0x15   :  { %308 = vmatmul.mubr.msk.f32.vlgmr.msra.gmra.mrb[0].mxu0 %vm126_vm1, %v125_v25  ;;  %v78_v44 = vrot.slane %v77_v40, 2 }
  0x16   :  { %v51_v42 = vrot.slane %v50_v41, 2 }
  0x17   :  { %v79_v46 = vadd.f32 %v78_v44, %v77_v40 }
  0x18   :  { %v52_v43 = vadd.f32 %v51_v42, %v50_v41 }
  0x19   :  { %v80_v48 = vrot.slane %v79_v46, 1 }
  0x1a   :  { %v53_v45 = vrot.slane %v52_v43, 1 }
  0x1b   :  { %v81_v49 = vadd.f32 %v80_v48, %v79_v46 }
  0x1c   :  { %v54_v47 = vadd.f32 %v53_v45, %v52_v43 }
  0x1d   :  { %v84_v51 = vmul.f32 0.00048828125, %v81_v49 }
  0x1e   :  { %v83_v50 = vmul.f32 0.00048828125, %v54_v47 }
  0x20   :  { %v85_v52 = vmul.f32 %v83_v50, %v83_v50  ;;  %88 = vst.msk [vmem:[#allocation3] sm:$0x1] %vm87_vm3, %v83_v50 }
  0x22   :  { %v86_v53 = vsub.f32 %v84_v51, %v85_v52 }
  0x24   :  { %v89_v54 = vadd.f32 1e-05, %v86_v53 }
  0x26   :  { %328 = vrsqrt.f32 %v89_v54 }
  0x30   :  { %v329_v55 = vpop.eup %328 }
  0x31   :  { %91 = vst.msk [vmem:[#allocation5] sm:$0x1] %vm87_vm3, %v329_v55 }
  0x32   :  { %343 = shalt.err (!%p340_p4)
}
  0x33   :  { %s344_s10 = scalar_lea.hbm %s525_s5, 16 }
  0x34   :  { %p345_p5 = scmp.ne.s32.totalorder %s525_s5, %s344_s10  ;;  %p348_p6 = scmp.lt.u32.totalorder %s344_s10, %s525_s5 }
  0x36   :  { %p350_p7 = pnand %p348_p6, %p345_p5 }
  0x38   :  { %353 = shalt.err (!%p350_p7)
}
  0x39   :  { %257 = dma.vmem_to_hbm [thread:$0]  %s255_s1, 16, %s525_s5, [#allocation4]  }
  0x3a   :  { %s354_s17 = scalar_lea.vmem %s265_s29, 16  ;;  %s358_s18 = scalar_lea.vmem %s265_s29, 32 }
  0x3b   :  { %p355_p8 = scmp.ne.s32.totalorder %s265_s29, %s354_s17  ;;  %p359_p9 = scmp.lt.s32.totalorder %s265_s29, %s265_s29 }
  0x3c   :  { %p360_p10 = scmp.lt.s32.totalorder %s358_s18, %s354_s17 }
  0x3e   :  { %p361_p11 = por %p360_p10, %p359_p9 }
  0x40   :  { %p362_p12 = pnand %p361_p11, %p355_p8 }
  0x42   :  { %365 = shalt.err (!%p362_p12)
}
  0x43   :  { %s366_s20 = scalar_lea.hbm %s526_s6, 16 }
  0x44   :  { %p367_p13 = scmp.ne.s32.totalorder %s526_s6, %s366_s20  ;;  %p370_p0 = scmp.lt.u32.totalorder %s366_s20, %s526_s6 }
  0x46   :  { %p372_p1 = pnand %p370_p0, %p367_p13 }
  0x48   :  { %375 = shalt.err (!%p372_p1)
}
  0x49   :  { %267 = dma.vmem_to_hbm [thread:$0]  %s265_s29, 16, %s526_s6, [#allocation6]   ;;  %v280_v56 = vld [vmem:[#allocation2] ss:$0 sm:$0xff] }
  0xe8   :  { %v195_v57 = vpop.f32.mrb[0].mxu0 }
  0xe9   :  { %v196_v58 = vadd.f32 %v280_v56, %v195_v57  ;;  %v309_v59 = vpop.f32.mrb[1].mxu0 }
  0xeb   :  { %v199_v60 = vsel %vm47_vm2, %v196_v58, 0.0 }
  0xec   :  { %v200_v61 = vrot.slane %v199_v60, 4 }
  0xee   :  { %v201_v62 = vadd.f32 %v200_v61, %v199_v60 }
  0xf0   :  { %v202_v63 = vrot.slane %v201_v62, 2 }
  0xf2   :  { %v203_v0 = vadd.f32 %v202_v63, %v201_v62 }
  0xf4   :  { %v204_v1 = vrot.slane %v203_v0, 1 }
  0xf6   :  { %v205_v2 = vadd.f32 %v204_v1, %v203_v0 }
  0xf8   :  { %v207_v3 = vmul.f32 0.5, %v205_v2 }
  0xfa   :  { %v208_v4 = vsub.f32 %v196_v58, %v207_v3 }
  0xfc   :  { %v209_v5 = vmul.f32 %v208_v4, %v208_v4 }
  0xfe   :  { %v210_v6 = vsel %vm47_vm2, %v209_v5, 0.0 }
  0xff   :  { %v211_v7 = vrot.slane %v210_v6, 4 }
 0x101   :  { %v212_v8 = vadd.f32 %v211_v7, %v210_v6 }
 0x103   :  { %v213_v9 = vrot.slane %v212_v8, 2 }
 0x105   :  { %v214_v10 = vadd.f32 %v213_v9, %v212_v8 }
 0x107   :  { %v215_v11 = vrot.slane %v214_v10, 1 }
 0x109   :  { %v216_v12 = vadd.f32 %v215_v11, %v214_v10 }
 0x10b   :  { %v217_v13 = vmul.f32 0.5, %v216_v12 }
 0x10d   :  { %v218_v14 = vadd.f32 1e-05, %v217_v13 }
 0x10f   :  { %330 = vrsqrt.f32 %v218_v14 }
 0x119   :  { %v331_v15 = vpop.eup %330 }
 0x11a   :  { %v220_v16 = vmul.f32 %v331_v15, %v208_v4 }
 0x11c   :  { %v228_v17 = vrot.slane %v220_v16, %v453_v18 }
 0x11e   :  { %v229_v19 = vcombine.high %v228_v17, %v228_v17  ;;  %v236_v20 = vrot.slane %v228_v17, %v453_v18 }
 0x120   :  { %v243_v21 = vrot.slane %v229_v19, %v453_v18  ;;  %246 = vst.msk [vmem:[%s527_s7] sm:$0x1] %vm87_vm3, %v236_v20 }
 0x122   :  { %247 = vst.msk [vmem:[%s527_s7 + $0x1] sm:$0x1] %vm87_vm3, %v243_v21 }
 0x123   :  { %376 = dma.done.wait [#allocation4], 16  }
 0x124   :  { %377 = vsyncadd [#allocation4], 4294967280 }
 0x125   :  { %378 = dma.done.wait [#allocation6], 16  }
 0x126   :  { %379 = vsyncadd [#allocation6], 4294967280 }
 0x127   :  { %278 = vsyncpa [#allocation4], 1 }
 0x128   :  { %279 = vsyncpa [#allocation6], 1 }

// kernel: deepsets_block.11
= control target key start
LH: loop header
LB: loop body
LE: loop exit
PB: predicated region body
PF: predicated region fallthrough
CT: control target
= control target key end

     0   :  { %s1867_s11 = smov 0   ;;  %s1869_s12 = smov 0   ;;  %s2728_s0 = inlined_call_operand.vmem [shape: f32[2,1024,64], index: 0, kind: input, shape index: {}]   ;;  %s2729_s1 = inlined_call_operand.vmem [shape: f32[1,64], index: 1, kind: input, shape index: {}]   ;;  %s2730_s2 = inlined_call_operand.vmem [shape: f32[1,64], index: 2, kind: input, shape index: {}]   ;;  %s2731_s3 = inlined_call_operand.vmem [shape: f32[2,1,64], index: 3, kind: input, shape index: {}]   ;;  %s2732_s4 = inlined_call_operand.vmem [shape: f32[1,64], index: 4, kind: input, shape index: {}]   ;;  %s2733_s5 = inlined_call_operand.<no memory space> [shape: f32[1,1], index: 5, kind: input, shape index: {}]   ;;  %s2734_s6 = inlined_call_operand.vmem [shape: f32[2,1,1024], index: 6, kind: output, shape index: {0}]   ;;  %s2735_s7 = inlined_call_operand.vmem [shape: f32[2,1,1], index: 7, kind: output, shape index: {1}]   ;;  %s2736_s8 = inlined_call_operand.vmem [shape: f32[2,1,1], index: 8, kind: output, shape index: {2}]   ;;  %s2737_s9 = inlined_call_operand.vmem [shape: f32[2,1,64], index: 9, kind: output, shape index: {3}]  }
   0x1   :  { %v15_v0 = vstv %s2733_s5  ;;  %s1871_s13 = smov 0   ;;  %s1873_s14 = smov 0  }
   0x2   :  { %16 = vst [vmem:[#allocation2] sm:$0x1] %v15_v0  ;;  %s1875_s15 = smov 0  }
   0x3 LB: > { %s31_s5 = sadd.s32 1, %s1800_s13  ;;  %s34_s16 = sadd.s32 1, %s1804_s14  ;;  %s1808_s15 = sphi %s1875_s15, %s22_s15   ;;  %s1804_s14 = sphi %s1873_s14, %s2769_s14   ;;  %s1800_s13 = sphi %s1871_s13, %s2768_s13   ;;  %s1796_s12 = sphi %s1869_s12, %s2767_s12   ;;  %s1792_s11 = sphi %s1867_s11, %s2766_s11  }
   0x4   : > { %p32_p0 = scmp.ge.s32.totalorder %s31_s5, 2  ;;  %p1483_p1 = scmp.ge.s32.totalorder %s1808_s15, 1 }
   0x5   : > { %p325_p2 = scmp.lt.s32.totalorder %s1808_s15, 5 }
   0x6   : > { %s2771_s5 = smov (%p32_p0, %s31_s5), 0  ;;  %s2773_s16 = smov (!%p32_p0, %s34_s16), %s1804_s14 }
   0x7   : > { %2749 = sst [smem:[#allocation3_spill]] %s2771_s5  ;;  %p326_p3 = pnand %p1483_p1, %p325_p2 }
   0x8   : > { %p36_p4 = scmp.ge.s32.totalorder %s2773_s16, 2  ;;  %s1484_s17 = sshll.u32 (!%p326_p3), %s1792_s11, 6 }
   0x9   : > { %329 = sbr.rel (%p326_p3) target bundleno = 509 (0x1fd), region = 44  ;;  %p381_p5 = scmp.lt.s32.totalorder (!%p326_p3), %s1796_s12, 1 }
   0xa   : > { %s2775_s16 = smov (%p36_p4, %s2773_s16), 0  ;;  %p383_p6 = scmp.lt.s32.totalorder (!%p326_p3), %s1484_s17, 127 }
   0xb   : > { %2750 = sst [smem:[#allocation4_spill]] %s2775_s16  ;;  %s1487_s18 = sshll.u32 (!%p326_p3), %s1792_s11, 2 }
   0xc   : > { %p396_p7 = scmp.lt.s32.totalorder (!%p326_p3), %s1487_s18, 7  ;;  %p1489_p8 = scmp.ne.s32.totalorder (!%p326_p3), %s1792_s11, 0 }
  0x10   : > { %s2777_s12 = smov (!%p381_p5, %s1796_s12), 1  ;;  %s2779_s17 = smov (!%p383_p6, %s1484_s17), 127 }
  0x11   : > { %s1485_s19 = sshll.u32 %s2777_s12, 7  ;;  %s392_s22 = scalar_lea.vmem %s2731_s3, %s2777_s12  ;;  %vm415_vm0 = vcmask (!%p1489_p8), 0   ;;  %vm418_vm1 = vcmask (!%p1489_p8), 516096   ;;  %v1810_v1 = vmov (!%p1489_p8), 0.0   ;;  %v1811_v2 = vmov (!%p1489_p8), -inf  }
  0x12   : > { %s386_s23 = sadd.s32 %s1485_s19, %s2779_s17  ;;  %s1488_s25 = sshll.u32 %s2777_s12, 3 }
  0x13   : > { %s1486_s24 = sshll.u32 %s386_s23, 3  ;;  %s1918_s10 = scalar_lea.vmem %s2735_s7, %s2777_s12 }
  0x14   : > { %s1912_s28 = scalar_lea.vmem %s2728_s0, %s1486_s24  ;;  %s2781_s18 = smov (!%p396_p7, %s1487_s18), 7  ;;  %416 = vst.msk [vmem:[%s1918_s10] sm:$0x1] (!%p1489_p8), %vm415_vm0, %v1810_v1 }
  0x15   : > { %s1924_s20 = scalar_lea.vmem %s2736_s8, %s2777_s12  ;;  %s1930_s21 = scalar_lea.vmem %s2737_s9, %s2777_s12 }
  0x16   : > { %s1932_s23 = sadd.s32 %s1488_s25, %s2781_s18  ;;  %414 = sbr.rel (%p1489_p8) target bundleno = 29 (0x1d), region = 48  ;;  %417 = vst.msk [vmem:[%s1924_s20] sm:$0x1] (!%p1489_p8), %vm415_vm0, %v1810_v1 }
  0x17   : > { %s400_s27 = scalar_lea.vmem %s2734_s6, %s1932_s23  ;;  %419 = vst.msk [vmem:[%s1930_s21] sm:$0x1] (!%p1489_p8), %vm418_vm1, %v1811_v2 }
  0x1d PF: > { %v436_v3 = vld [vmem:[%s1912_s28 + $0x80] sm:$0xff]  ;;  %v437_v4 = vld [vmem:[%s1912_s28 + $0x88] sm:$0xff]  ;;  %vm772_vm2 = vcmask 523264   ;;  %vm1309_vm4 = vcmask 516096   ;;  %vm1145_vm5 = vcmask 1040384   ;;  %vm1156_vm7 = vcmask 0  }
  0x1e   : > { %v1947_v5 = vld [vmem:[%s2729_s1] ss:$0 sm:$0xff]  ;;  %v469_v11 = vld [vmem:[%s1912_s28 + $0x188] sm:$0xff]  ;;  %vm1988_vm3 = vmpackc.low %vm772_vm2, %vm772_vm2 }
  0x1f   : > { %v507_v6 = vsub.f32 %v436_v3, %v1947_v5  ;;  %v508_v7 = vsub.f32 %v437_v4, %v1947_v5  ;;  %v1954_v8 = vld [vmem:[%s2730_s2] ss:$0 sm:$0xff]  ;;  %v540_v16 = vsub.f32 %v469_v11, %v1947_v5  ;;  %v421_v17 = vld [vmem:[%s1912_s28 + $0x8] sm:$0xff] }
  0x20   : > { %v1956_v9 = vld [vmem:[%s392_s22] ss:$0 sm:$0xff]  ;;  %v425_v19 = vld [vmem:[%s1912_s28 + $0x28] sm:$0xff]  ;;  %v492_v24 = vsub.f32 %v421_v17, %v1947_v5 }
  0x21   : > { %v468_v10 = vld [vmem:[%s1912_s28 + $0x180] sm:$0xff]  ;;  %v578_v13 = vmul.f32 %v1954_v8, %v507_v6  ;;  %v579_v14 = vmul.f32 %v1954_v8, %v508_v7  ;;  %v429_v21 = vld [vmem:[%s1912_s28 + $0x48] sm:$0xff]  ;;  %v611_v29 = vmul.f32 %v1954_v8, %v540_v16  ;;  %v496_v32 = vsub.f32 %v425_v19, %v1947_v5 }
  0x22   : > { %v420_v12 = vld [vmem:[%s1912_s28] sm:$0xff]  ;;  %v539_v15 = vsub.f32 %v468_v10, %v1947_v5  ;;  %v433_v30 = vld [vmem:[%s1912_s28 + $0x68] sm:$0xff]  ;;  %v500_v34 = vsub.f32 %v429_v21, %v1947_v5  ;;  %v563_v44 = vmul.f32 %v1954_v8, %v492_v24 }
  0x23   : > { %v424_v18 = vld [vmem:[%s1912_s28 + $0x20] sm:$0xff]  ;;  %v491_v23 = vsub.f32 %v420_v12, %v1947_v5  ;;  %v649_v26 = vadd.f32 %v1956_v9, %v578_v13  ;;  %v650_v27 = vadd.f32 %v1956_v9, %v579_v14  ;;  %v682_v39 = vadd.f32 %v1956_v9, %v611_v29  ;;  %v441_v49 = vld [vmem:[%s1912_s28 + $0xa8] sm:$0xff] }
  0x24   : > { %v428_v20 = vld [vmem:[%s1912_s28 + $0x40] sm:$0xff]  ;;  %v495_v25 = vsub.f32 %v424_v18, %v1947_v5  ;;  %v610_v28 = vmul.f32 %v1954_v8, %v539_v15  ;;  %v504_v41 = vsub.f32 %v433_v30, %v1947_v5  ;;  %v567_v52 = vmul.f32 %v1954_v8, %v496_v32 }
  0x25   : > { %v432_v22 = vld [vmem:[%s1912_s28 + $0x60] sm:$0xff]  ;;  %v499_v33 = vsub.f32 %v428_v20, %v1947_v5  ;;  %v713_v36 = vmax.f32 %v649_v26, 0.0  ;;  %v714_v37 = vmax.f32 %v650_v27, 0.0  ;;  %v562_v43 = vmul.f32 %v1954_v8, %v491_v23 }
  0x26   : > { %v440_v31 = vld [vmem:[%s1912_s28 + $0xa0] sm:$0xff]  ;;  %v503_v35 = vsub.f32 %v432_v22, %v1947_v5  ;;  %v681_v38 = vadd.f32 %v1956_v9, %v610_v28  ;;  %v746_v50 = vmax.f32 %v682_v39, 0.0  ;;  %v566_v51 = vmul.f32 %v1954_v8, %v495_v25 }
  0x27   : > { %v511_v42 = vsub.f32 %v440_v31, %v1947_v5  ;;  %v1629_v45 = vpack.c.bf16 %v714_v37, %v713_v36  ;;  %v1203_v46 = vsel %vm772_vm2, %v713_v36, -inf  ;;  %v1205_v47 = vsel %vm772_vm2, %v714_v37, -inf  ;;  %v444_v30 = vld [vmem:[%s1912_s28 + $0xc0] sm:$0xff]  ;;  %v453_v36 = vld [vmem:[%s1912_s28 + $0x108] sm:$0xff] }
  0x28   : > { %v745_v48 = vmax.f32 %v681_v38, 0.0  ;;  %v1204_v53 = vmax.f32 %v1205_v47, %v1203_v46  ;;  %v570_v54 = vmul.f32 %v1954_v8, %v499_v33  ;;  %v571_v55 = vmul.f32 %v1954_v8, %v500_v34  ;;  %v452_v31 = vld [vmem:[%s1912_s28 + $0x100] sm:$0xff] }
  0x29   : > { %1631 = vmatprep.subr.msk.bf16.mxu0 %vm1988_vm3, %v1629_v45  ;;  %v574_v56 = vmul.f32 %v1954_v8, %v503_v35  ;;  %v512_v59 = vsub.f32 %v441_v49, %v1947_v5  ;;  %v575_v60 = vmul.f32 %v1954_v8, %v504_v41  ;;  %v582_v61 = vmul.f32 %v1954_v8, %v511_v42  ;;  %v445_v35 = vld [vmem:[%s1912_s28 + $0xc8] sm:$0xff]  ;;  %v448_v41 = vld [vmem:[%s1912_s28 + $0xe0] sm:$0xff] }
  0x2a   : > { %v1677_v57 = vpack.c.bf16 %v746_v50, %v745_v48  ;;  %v1267_v58 = vsel %vm772_vm2, %v745_v48, -inf  ;;  %v633_v62 = vadd.f32 %v1956_v9, %v562_v43  ;;  %v634_v63 = vadd.f32 %v1956_v9, %v563_v44  ;;  %v449_v42 = vld [vmem:[%s1912_s28 + $0xe8] sm:$0xff]  ;;  %v456_v44 = vld [vmem:[%s1912_s28 + $0x120] sm:$0xff] }
  0x2b   : > { %v2015_v0 = vadd.f32 %v1956_v9, %v566_v51  ;;  %v2018_v1 = vadd.f32 %v1956_v9, %v567_v52  ;;  %v2021_v2 = vadd.f32 %v1956_v9, %v570_v54  ;;  %v1206_v3 = vmax.f32 %v1267_v58, %v1204_v53  ;;  %v457_v45 = vld [vmem:[%s1912_s28 + $0x128] sm:$0xff]  ;;  %v460_v46 = vld [vmem:[%s1912_s28 + $0x140] sm:$0xff] }
  0x2c   : > { %1679 = vmatprep.subr.msk.bf16.mxu1 %vm1988_vm3, %v1677_v57  ;;  %v2024_v4 = vadd.f32 %v1956_v9, %v571_v55  ;;  %v2027_v6 = vadd.f32 %v1956_v9, %v574_v56  ;;  %v2030_v7 = vadd.f32 %v1956_v9, %v575_v60  ;;  %v1269_v10 = vsel %vm772_vm2, %v746_v50, -inf  ;;  %v461_v51 = vld [vmem:[%s1912_s28 + $0x148] sm:$0xff]  ;;  %v464_v52 = vld [vmem:[%s1912_s28 + $0x160] sm:$0xff] }
  0x2d   : > { %v583_v11 = vmul.f32 %v1954_v8, %v512_v59  ;;  %v697_v12 = vmax.f32 %v633_v62, 0.0  ;;  %v698_v13 = vmax.f32 %v634_v63, 0.0  ;;  %v2035_v14 = vadd.f32 %v1956_v9, %v582_v61  ;;  %v2087_v55 = vld [vmem:[%s2732_s4] sm:$0x1]  ;;  %v465_v60 = vld [vmem:[%s1912_s28 + $0x168] sm:$0xff] }
  0x2e   : > { %v701_v15 = vmax.f32 %v2015_v0, 0.0  ;;  %v702_v16 = vmax.f32 %v2018_v1, 0.0  ;;  %v2743_v17 = vmax.f32 %v2021_v2, 0.0  ;;  %v2742_v18 = vmax.f32 %v2024_v4, 0.0  ;;  %1593 = vmatprep.mubr.msk.f32.mxu0 %vm772_vm2, %v2087_v55  ;;  %v472_v61 = vld [vmem:[%s1912_s28 + $0x1a0] sm:$0xff]  ;;  %v473_v62 = vld [vmem:[%s1912_s28 + $0x1a8] sm:$0xff]  ;;  %1627 = vmatprep.mubr.msk.f32.mxu1 %vm772_vm2, %v2087_v55 }
  0x2f   : > { %v2739_v19 = vmax.f32 %v2027_v6, 0.0  ;;  %v2738_v20 = vmax.f32 %v2030_v7, 0.0  ;;  %v1632_v21 = vpack.c.bf16 %v698_v13, %v697_v12  ;;  %v1175_v22 = vsel %vm772_vm2, %v697_v12, -inf }
  0x30   : > { %v1176_v23 = vsel %vm772_vm2, %v698_v13, -inf  ;;  %v1179_v24 = vsel %vm772_vm2, %v701_v15, -inf  ;;  %v1181_v25 = vsel %vm772_vm2, %v702_v16, -inf  ;;  %v1187_v28 = vsel %vm772_vm2, %v2743_v17, -inf }
  0x31   : > { %1634 = vmatpush3.bf16.xpose.msk.msra.mxu0 %vm1988_vm3, %v1632_v21  ;;  %v1180_v26 = vmax.f32 %v1175_v22, %v1179_v24  ;;  %v1182_v27 = vmax.f32 %v1176_v23, %v1181_v25  ;;  %v1189_v29 = vsel %vm772_vm2, %v2742_v18, -inf  ;;  %v2062_v32 = vadd.f32 %v1956_v9, %v583_v11  ;;  %v474_v18 = vld [vmem:[%s1912_s28 + $0x1b0] sm:$0xff] }
  0x32   : > { %v1195_v33 = vsel %vm772_vm2, %v2739_v19, -inf  ;;  %v1197_v34 = vsel %vm772_vm2, %v2738_v20, -inf  ;;  %v1212_v37 = vmax.f32 %v1269_v10, %v1206_v3  ;;  %v717_v43 = vmax.f32 %v2035_v14, 0.0 }
  0x33   : > { %v1188_v38 = vmax.f32 %v1180_v26, %v1187_v28  ;;  %v1190_v39 = vmax.f32 %v1182_v27, %v1189_v29  ;;  %v515_v47 = vsub.f32 %v444_v30, %v1947_v5  ;;  %v523_v48 = vsub.f32 %v452_v31, %v1947_v5 }
  0x34   : > { %v516_v53 = vsub.f32 %v445_v35, %v1947_v5  ;;  %v524_v54 = vsub.f32 %v453_v36, %v1947_v5  ;;  %v718_v56 = vmax.f32 %v2062_v32, 0.0  ;;  %v1211_v57 = vsel %vm772_vm2, %v717_v43, -inf }
  0x35   : > { %v1196_v49 = vmax.f32 %v1188_v38, %v1195_v33  ;;  %v1198_v50 = vmax.f32 %v1190_v39, %v1197_v34  ;;  %v519_v58 = vsub.f32 %v448_v41, %v1947_v5  ;;  %v520_v63 = vsub.f32 %v449_v42, %v1947_v5 }
  0x36   : > { %v527_v3 = vsub.f32 %v456_v44, %v1947_v5  ;;  %v528_v10 = vsub.f32 %v457_v45, %v1947_v5  ;;  %v531_v11 = vsub.f32 %v460_v46, %v1947_v5  ;;  %v532_v12 = vsub.f32 %v461_v51, %v1947_v5 }
  0x37   : > { %v1214_v59 = vmax.f32 %v1196_v49, %v1212_v37  ;;  %v535_v13 = vsub.f32 %v464_v52, %v1947_v5  ;;  %v594_v21 = vmul.f32 %v1954_v8, %v523_v48  ;;  %v586_v23 = vmul.f32 %v1954_v8, %v515_v47 }
  0x38   : > { %v587_v24 = vmul.f32 %v1954_v8, %v516_v53  ;;  %v595_v25 = vmul.f32 %v1954_v8, %v524_v54  ;;  %v1213_v26 = vsel %vm772_vm2, %v718_v56, -inf  ;;  %v536_v27 = vsub.f32 %v465_v60, %v1947_v5 }
  0x39   : > { %v1220_v22 = vmax.f32 %v1198_v50, %v1214_v59  ;;  %v543_v28 = vsub.f32 %v472_v61, %v1947_v5  ;;  %v544_v29 = vsub.f32 %v473_v62, %v1947_v5  ;;  %v590_v31 = vmul.f32 %v1954_v8, %v519_v58 }
  0x3a   : > { %v591_v33 = vmul.f32 %v1954_v8, %v520_v63  ;;  %v598_v34 = vmul.f32 %v1954_v8, %v527_v3  ;;  %v599_v35 = vmul.f32 %v1954_v8, %v528_v10  ;;  %v602_v36 = vmul.f32 %v1954_v8, %v531_v11 }
  0x3b   : > { %v1222_v30 = vmax.f32 %v1211_v57, %v1220_v22  ;;  %v603_v37 = vmul.f32 %v1954_v8, %v532_v12  ;;  %v665_v38 = vadd.f32 %v1956_v9, %v594_v21  ;;  %v606_v39 = vmul.f32 %v1954_v8, %v535_v13  ;;  %v438_v21 = vld [vmem:[%s1912_s28 + $0x90] sm:$0xff] }
  0x3c   : > { %v2126_v41 = vadd.f32 %v1956_v9, %v586_v23  ;;  %v2129_v42 = vadd.f32 %v1956_v9, %v587_v24  ;;  %v666_v44 = vadd.f32 %v1956_v9, %v595_v25  ;;  %v607_v45 = vmul.f32 %v1954_v8, %v536_v27  ;;  %v470_v27 = vld [vmem:[%s1912_s28 + $0x190] sm:$0xff] }
  0x3d   : > { %v614_v46 = vmul.f32 %v1954_v8, %v543_v28  ;;  %v615_v47 = vmul.f32 %v1954_v8, %v544_v29  ;;  %v1228_v48 = vmax.f32 %v1213_v26, %v1222_v30  ;;  %v2136_v49 = vadd.f32 %v1956_v9, %v590_v31  ;;  %v439_v26 = vld [vmem:[%s1912_s28 + $0x98] sm:$0xff] }
  0x3e   : > { %v2139_v50 = vadd.f32 %v1956_v9, %v591_v33  ;;  %v2142_v51 = vadd.f32 %v1956_v9, %v598_v34  ;;  %v2145_v52 = vadd.f32 %v1956_v9, %v599_v35  ;;  %v2148_v53 = vadd.f32 %v1956_v9, %v602_v36  ;;  %v471_v28 = vld [vmem:[%s1912_s28 + $0x198] sm:$0xff]  ;;  %v422_v34 = vld [vmem:[%s1912_s28 + $0x10] sm:$0xff] }
  0x3f   : > { %v729_v54 = vmax.f32 %v665_v38, 0.0  ;;  %v730_v57 = vmax.f32 %v666_v44, 0.0  ;;  %v2151_v58 = vadd.f32 %v1956_v9, %v603_v37  ;;  %v2154_v59 = vadd.f32 %v1956_v9, %v606_v39  ;;  %v423_v35 = vld [vmem:[%s1912_s28 + $0x18] sm:$0xff]  ;;  %v454_v44 = vld [vmem:[%s1912_s28 + $0x110] sm:$0xff] }
  0x40   : > { %v721_v60 = vmax.f32 %v2126_v41, 0.0  ;;  %v722_v61 = vmax.f32 %v2129_v42, 0.0  ;;  %v2159_v62 = vadd.f32 %v1956_v9, %v607_v45  ;;  %v2162_v63 = vadd.f32 %v1956_v9, %v614_v46  ;;  %v446_v42 = vld [vmem:[%s1912_s28 + $0xd0] sm:$0xff] }
  0x41   : > { %v2165_v3 = vadd.f32 %v1956_v9, %v615_v47  ;;  %v2741_v10 = vmax.f32 %v2136_v49, 0.0  ;;  %v1680_v11 = vpack.c.bf16 %v730_v57, %v729_v54  ;;  %v2740_v22 = vmax.f32 %v2139_v50, 0.0 }
  0x42   : > { %v1219_v12 = vsel %vm772_vm2, %v721_v60, -inf  ;;  %v1221_v13 = vsel %vm772_vm2, %v722_v61, -inf  ;;  %v733_v23 = vmax.f32 %v2142_v51, 0.0  ;;  %v734_v24 = vmax.f32 %v2145_v52, 0.0 }
  0x43   : > { %v1230_v25 = vmax.f32 %v1219_v12, %v1228_v48  ;;  %v2744_v29 = vmax.f32 %v2148_v53, 0.0  ;;  %v2745_v30 = vmax.f32 %v2151_v58, 0.0  ;;  %v2747_v31 = vmax.f32 %v2154_v59, 0.0  ;;  %1682 = vmatpush3.bf16.xpose.msk.msra.mxu1 %vm1988_vm3, %v1680_v11 }
  0x44   : > { %v1227_v33 = vsel %vm772_vm2, %v2741_v10, -inf  ;;  %v1229_v37 = vsel %vm772_vm2, %v2740_v22, -inf  ;;  %v1235_v38 = vsel %vm772_vm2, %v729_v54, -inf  ;;  %v1237_v39 = vsel %vm772_vm2, %v730_v57, -inf  ;;  %v443_v10 = vld [vmem:[%s1912_s28 + $0xb8] sm:$0xff] }
  0x45   : > { %v1236_v36 = vmax.f32 %v1221_v13, %v1230_v25  ;;  %v1243_v45 = vsel %vm772_vm2, %v733_v23, -inf  ;;  %v509_v46 = vsub.f32 %v438_v21, %v1947_v5  ;;  %v510_v47 = vsub.f32 %v439_v26, %v1947_v5  ;;  %v455_v25 = vld [vmem:[%s1912_s28 + $0x118] sm:$0xff] }
  0x46   : > { %v541_v48 = vsub.f32 %v470_v27, %v1947_v5  ;;  %v542_v12 = vsub.f32 %v471_v28, %v1947_v5  ;;  %v493_v13 = vsub.f32 %v422_v34, %v1947_v5  ;;  %v494_v54 = vsub.f32 %v423_v35, %v1947_v5 }
  0x47   : > { %v1238_v11 = vmax.f32 %v1227_v33, %v1236_v36  ;;  %v580_v57 = vmul.f32 %v1954_v8, %v509_v46  ;;  %v581_v20 = vmul.f32 %v1954_v8, %v510_v47  ;;  %v525_v21 = vsub.f32 %v454_v44, %v1947_v5 }
  0x48   : > { %v612_v19 = vmul.f32 %v1954_v8, %v541_v48  ;;  %v613_v26 = vmul.f32 %v1954_v8, %v542_v12  ;;  %v564_v27 = vmul.f32 %v1954_v8, %v493_v13  ;;  %v565_v28 = vmul.f32 %v1954_v8, %v494_v54 }
  0x49   : > { %v1244_v22 = vmax.f32 %v1229_v37, %v1238_v11  ;;  %v2215_v33 = vadd.f32 %v1956_v9, %v580_v57  ;;  %v2218_v34 = vadd.f32 %v1956_v9, %v581_v20  ;;  %v526_v36 = vsub.f32 %v455_v25, %v1947_v5 }
  0x4a   : > { %v2221_v35 = vadd.f32 %v1956_v9, %v612_v19  ;;  %v2225_v37 = vadd.f32 %v1956_v9, %v613_v26  ;;  %v2228_v44 = vadd.f32 %v1956_v9, %v564_v27  ;;  %v2231_v47 = vadd.f32 %v1956_v9, %v565_v28 }
  0x4b   : > { %v1246_v46 = vmax.f32 %v1235_v38, %v1244_v22  ;;  %v715_v48 = vmax.f32 %v2215_v33, 0.0  ;;  %v716_v20 = vmax.f32 %v2218_v34, 0.0  ;;  %v596_v19 = vmul.f32 %v1954_v8, %v525_v21 }
  0x4c   : > { %v747_v11 = vmax.f32 %v2221_v35, 0.0  ;;  %v748_v22 = vmax.f32 %v2225_v37, 0.0  ;;  %v699_v38 = vmax.f32 %v2228_v44, 0.0  ;;  %v2748_v13 = vmax.f32 %v2231_v47, 0.0 }
  0x4d   : > { %v1252_v12 = vmax.f32 %v1237_v39, %v1246_v46  ;;  %v749_v54 = vmax.f32 %v2162_v63, 0.0  ;;  %v750_v25 = vmax.f32 %v2165_v3, 0.0  ;;  %v1245_v57 = vsel %vm772_vm2, %v734_v24, -inf }
  0x4e   : > { %v1635_v39 = vpack.c.bf16 %v716_v20, %v715_v48  ;;  %v2746_v21 = vmax.f32 %v2159_v62, 0.0  ;;  %v1683_v27 = vpack.c.bf16 %v748_v22, %v747_v11  ;;  %v1638_v63 = vpack.c.bf16 %v2748_v13, %v699_v38 }
  0x4f   : > { %v1254_v26 = vmax.f32 %v1243_v45, %v1252_v12  ;;  %v1251_v3 = vsel %vm772_vm2, %v2744_v29, -inf  ;;  %v1253_v45 = vsel %vm772_vm2, %v2745_v30, -inf  ;;  %v597_v28 = vmul.f32 %v1954_v8, %v526_v36  ;;  %v442_v12 = vld [vmem:[%s1912_s28 + $0xb0] sm:$0xff] }
  0x50   : > { %1637 = vmatprep.subr.msk.bf16.mxu0 %vm1988_vm3, %v1635_v39  ;;  %v2268_v46 = vadd.f32 %v1956_v9, %v596_v19  ;;  %v1259_v29 = vsel %vm772_vm2, %v2747_v31, -inf  ;;  %v1261_v30 = vsel %vm772_vm2, %v2746_v21, -inf  ;;  %1685 = vmatprep.subr.msk.bf16.mxu1 %vm1988_vm3, %v1683_v27  ;;  %v1641_v36 = vpack.c.bf16 %v718_v56, %v717_v43  ;;  %v475_v19 = vld [vmem:[%s1912_s28 + $0x1b8] sm:$0xff] }
  0x51   : > { %v1260_v17 = vmax.f32 %v1245_v57, %v1254_v26  ;;  %1640 = vmatpush3.bf16.xpose.msk.msra.mxu0 %vm1988_vm3, %v1638_v63  ;;  %v426_v57 = vld [vmem:[%s1912_s28 + $0x30] sm:$0xff]  ;;  %v1275_v39 = vsel %vm772_vm2, %v749_v54, -inf  ;;  %v2291_v26 = vadd.f32 %v1956_v9, %v597_v28  ;;  %v1689_v31 = vpack.c.bf16 %v750_v25, %v749_v54  ;;  %v427_v56 = vld [vmem:[%s1912_s28 + $0x38] sm:$0xff] }
  0x52   : > { %v731_v21 = vmax.f32 %v2268_v46, 0.0  ;;  %1643 = vmatprep.subr.msk.bf16.mxu0 %vm1988_vm3, %v1641_v36  ;;  %v513_v14 = vsub.f32 %v442_v12, %v1947_v5  ;;  %v514_v32 = vsub.f32 %v443_v10, %v1947_v5  ;;  %v545_v43 = vsub.f32 %v474_v18, %v1947_v5  ;;  %v458_v36 = vld [vmem:[%s1912_s28 + $0x130] sm:$0xff] }
  0x53   : > { %v1262_v27 = vmax.f32 %v1251_v3, %v1260_v17  ;;  %v732_v63 = vmax.f32 %v2291_v26, 0.0  ;;  %v1644_v28 = vpack.c.bf16 %v702_v16, %v701_v15  ;;  %v546_v17 = vsub.f32 %v475_v19, %v1947_v5 }
  0x54   : > { %v497_v54 = vsub.f32 %v426_v57, %v1947_v5  ;;  %v584_v12 = vmul.f32 %v1954_v8, %v513_v14  ;;  %v585_v10 = vmul.f32 %v1954_v8, %v514_v32  ;;  %v616_v18 = vmul.f32 %v1954_v8, %v545_v43 }
  0x55   : > { %v1268_v3 = vmax.f32 %v1253_v45, %v1262_v27  ;;  %v1277_v13 = vsel %vm772_vm2, %v750_v25, -inf  ;;  %v1686_v0 = vpack.c.bf16 %v732_v63, %v731_v21  ;;  %v617_v1 = vmul.f32 %v1954_v8, %v546_v17  ;;  %v459_v25 = vld [vmem:[%s1912_s28 + $0x138] sm:$0xff] }
  0x56   : > { %v498_v15 = vsub.f32 %v427_v56, %v1947_v5  ;;  %v2319_v45 = vadd.f32 %v1956_v9, %v584_v12  ;;  %v2322_v19 = vadd.f32 %v1956_v9, %v585_v10  ;;  %v2325_v57 = vadd.f32 %v1956_v9, %v616_v18  ;;  %v476_v18 = vld [vmem:[%s1912_s28 + $0x1c0] sm:$0xff] }
  0x57   : > { %v1270_v16 = vmax.f32 %v1259_v29, %v1268_v3  ;;  %1688 = vmatpush3.bf16.xpose.msk.msra.mxu1 %vm1988_vm3, %v1686_v0  ;;  %v2331_v27 = vadd.f32 %v1956_v9, %v617_v1  ;;  %v568_v14 = vmul.f32 %v1954_v8, %v497_v54  ;;  %v529_v32 = vsub.f32 %v458_v36, %v1947_v5  ;;  %v477_v36 = vld [vmem:[%s1912_s28 + $0x1c8] sm:$0xff] }
  0x58   : > { %v569_v29 = vmul.f32 %v1954_v8, %v498_v15  ;;  %1691 = vmatprep.subr.msk.bf16.mxu1 %vm1988_vm3, %v1689_v31  ;;  %v719_v56 = vmax.f32 %v2319_v45, 0.0  ;;  %v720_v17 = vmax.f32 %v2322_v19, 0.0  ;;  %v751_v3 = vmax.f32 %v2325_v57, 0.0 }
  0x59   : > { %v1276_v43 = vmax.f32 %v1261_v30, %v1270_v16  ;;  %1646 = vmatpush3.bf16.xpose.msk.msra.mxu0 %vm1988_vm3, %v1644_v28  ;;  %v752_v54 = vmax.f32 %v2331_v27, 0.0  ;;  %v2345_v12 = vadd.f32 %v1956_v9, %v568_v14  ;;  %v530_v30 = vsub.f32 %v459_v25, %v1947_v5 }
  0x5a   : > { %v2348_v10 = vadd.f32 %v1956_v9, %v569_v29  ;;  %v1647_v28 = vpack.c.bf16 %v720_v17, %v719_v56  ;;  %v1207_v0 = vsel %vm772_vm2, %v715_v48, -inf  ;;  %v1692_v1 = vpack.c.bf16 %v734_v24, %v733_v23 }
  0x5b   : > { %v1278_v31 = vmax.f32 %v1275_v39, %v1276_v43  ;;  %v1695_v39 = vpack.c.bf16 %v752_v54, %v751_v3  ;;  %v703_v15 = vmax.f32 %v2345_v12, 0.0  ;;  %v600_v48 = vmul.f32 %v1954_v8, %v529_v32 }
  0x5c   : > { %1649 = vmatprep.subr.msk.bf16.mxu0 %vm1988_vm3, %v1647_v28  ;;  %v704_v33 = vmax.f32 %v2348_v10, 0.0  ;;  %v601_v51 = vmul.f32 %v1954_v8, %v530_v30  ;;  %v1209_v52 = vsel %vm772_vm2, %v716_v20, -inf  ;;  %v1653_v23 = vpack.c.bf16 %v722_v61, %v721_v60  ;;  %v447_v20 = vld [vmem:[%s1912_s28 + $0xd8] sm:$0xff] }
  0x5d   : > { %v1186_v16 = vmax.f32 %v1277_v13, %v1278_v31  ;;  %v547_v24 = vsub.f32 %v476_v18, %v1947_v5  ;;  %v548_v13 = vsub.f32 %v477_v36, %v1947_v5  ;;  %v1271_v14 = vsel %vm772_vm2, %v747_v11, -inf  ;;  %v478_v11 = vld [vmem:[%s1912_s28 + $0x1d0] sm:$0xff] }
  0x5e   : > { %v1273_v34 = vsel %vm772_vm2, %v748_v22, -inf  ;;  %v1650_v41 = vpack.c.bf16 %v704_v33, %v703_v15  ;;  %v2397_v60 = vadd.f32 %v1956_v9, %v600_v48  ;;  %v2400_v61 = vadd.f32 %v1956_v9, %v601_v51  ;;  %v762_v22 = vld [vmem:[#allocation2] sm:$0x1] }
  0x5f   : > { %v1284_v25 = vmax.f32 %v1207_v0, %v1186_v16  ;;  %1694 = vmatpush3.bf16.xpose.msk.msra.mxu1 %vm1988_vm3, %v1692_v1  ;;  %v618_v35 = vmul.f32 %v1954_v8, %v547_v24  ;;  %v619_v37 = vmul.f32 %v1954_v8, %v548_v13  ;;  %v2409_v32 = vsel %vm772_vm2, %v699_v38, -inf  ;;  %v479_v1 = vld [vmem:[%s1912_s28 + $0x1d8] sm:$0xff]  ;;  %v430_v16 = vld [vmem:[%s1912_s28 + $0x50] sm:$0xff] }
  0x60   : > { %v2753_v43 = vmax.f32 %v2231_v47, 0.0  ;;  %1697 = vmatprep.subr.msk.bf16.mxu1 %vm1988_vm3, %v1695_v39  ;;  %v735_v31 = vmax.f32 %v2397_v60, 0.0  ;;  %v736_v28 = vmax.f32 %v2400_v61, 0.0  ;;  %v1812_v38 = vmov 0  }
  0x61   : > { %v1286_v29 = vmax.f32 %v1209_v52, %v1284_v25  ;;  %1652 = vmatpush3.bf16.xpose.msk.msra.mxu0 %vm1988_vm3, %v1650_v41  ;;  %v2423_v44 = vadd.f32 %v1956_v9, %v618_v35  ;;  %v2426_v47 = vadd.f32 %v1956_v9, %v619_v37  ;;  %1769 = vset.pattern.permute.xlu0 %v1812_v38  ;;  %v1239_v48 = vsel %vm772_vm2, %v731_v21, -inf  ;;  %v431_v21 = vld [vmem:[%s1912_s28 + $0x58] sm:$0xff]  ;;  %v462_v37 = vld [vmem:[%s1912_s28 + $0x150] sm:$0xff] }
  0x62   : > { %v1178_v30 = vsel %vm772_vm2, %v2753_v43, -inf  ;;  %1655 = vmatprep.subr.msk.bf16.mxu0 %vm1988_vm3, %v1653_v23  ;;  %v517_v36 = vsub.f32 %v446_v42, %v1947_v5  ;;  %v518_v0 = vsub.f32 %v447_v20, %v1947_v5  ;;  %v549_v39 = vsub.f32 %v478_v11, %v1947_v5  ;;  %765 = vperm.xlu0 %1769, %v762_v22  }
  0x63   : > { %v1192_v18 = vmax.f32 %v1271_v14, %v1286_v29  ;;  %v1698_v51 = vpack.c.bf16 %v736_v28, %v735_v31  ;;  %v753_v52 = vmax.f32 %v2423_v44, 0.0  ;;  %v2754_v23 = vmax.f32 %v2021_v2, 0.0  ;;  %v463_v29 = vld [vmem:[%s1912_s28 + $0x158] sm:$0xff] }
  0x64   : > { %v2755_v24 = vmax.f32 %v2024_v4, 0.0  ;;  %v754_v14 = vmax.f32 %v2426_v47, 0.0  ;;  %v588_v41 = vmul.f32 %v1954_v8, %v517_v36  ;;  %v589_v46 = vmul.f32 %v1954_v8, %v518_v0 }
  0x65   : > { %v1194_v25 = vmax.f32 %v1273_v34, %v1192_v18  ;;  %v1241_v42 = vsel %vm772_vm2, %v732_v63, -inf  ;;  %v550_v35 = vsub.f32 %v479_v1, %v1947_v5  ;;  %v620_v2 = vmul.f32 %v1954_v8, %v549_v39 }
  0x66   : > { %v1656_v13 = vpack.c.bf16 %v2755_v24, %v2754_v23  ;;  %v501_v4 = vsub.f32 %v430_v16, %v1947_v5  ;;  %v1215_v20 = vsel %vm772_vm2, %v719_v56, -inf  ;;  %v1701_v11 = vpack.c.bf16 %v754_v14, %v753_v52 }
  0x67   : > { %v1292_v34 = vmax.f32 %v1178_v30, %v1194_v25  ;;  %v2464_v26 = vadd.f32 %v1956_v9, %v588_v41  ;;  %1700 = vmatpush3.bf16.xpose.msk.msra.mxu1 %vm1988_vm3, %v1698_v51  ;;  %v2469_v63 = vadd.f32 %v1956_v9, %v589_v46  ;;  %v621_v22 = vmul.f32 %v1954_v8, %v550_v35 }
  0x68   : > { %v2473_v45 = vadd.f32 %v1956_v9, %v620_v2  ;;  %v502_v56 = vsub.f32 %v431_v21, %v1947_v5  ;;  %1703 = vmatprep.subr.msk.bf16.mxu1 %vm1988_vm3, %v1701_v11  ;;  %v572_v38 = vmul.f32 %v1954_v8, %v501_v4  ;;  %v533_v18 = vsub.f32 %v462_v37, %v1947_v5 }
  0x69   : > { %v1294_v43 = vmax.f32 %v1239_v48, %v1292_v34  ;;  %1658 = vmatpush3.bf16.xpose.msk.msra.mxu0 %vm1988_vm3, %v1656_v13  ;;  %v723_v30 = vmax.f32 %v2464_v26, 0.0  ;;  %v724_v36 = vmax.f32 %v2469_v63, 0.0  ;;  %v2486_v0 = vadd.f32 %v1956_v9, %v621_v22 }
  0x6a   : > { %v755_v1 = vmax.f32 %v2473_v45, 0.0  ;;  %v573_v39 = vmul.f32 %v1954_v8, %v502_v56  ;;  %v1217_v48 = vsel %vm772_vm2, %v720_v17, -inf  ;;  %v2494_v51 = vadd.f32 %v1956_v9, %v572_v38 }
  0x6b   : > { %v1299_v16 = vmax.f32 %v1241_v42, %v1294_v43  ;;  %v534_v23 = vsub.f32 %v463_v29, %v1947_v5  ;;  %v1279_v24 = vsel %vm772_vm2, %v751_v3, -inf  ;;  %v2756_v13 = vmax.f32 %v2148_v53, 0.0  ;;  %v480_v42 = vld [vmem:[%s1912_s28 + $0x1e0] sm:$0xff]  ;;  %v481_v53 = vld [vmem:[%s1912_s28 + $0x1e8] sm:$0xff] }
  0x6c   : > { %v2757_v25 = vmax.f32 %v2151_v58, 0.0  ;;  %v1659_v19 = vpack.c.bf16 %v724_v36, %v723_v30  ;;  %v756_v17 = vmax.f32 %v2486_v0, 0.0  ;;  %v2510_v21 = vadd.f32 %v1956_v9, %v573_v39 }
  0x6d   : > { %v1200_v46 = vmax.f32 %v1215_v20, %v1299_v16  ;;  %v707_v57 = vmax.f32 %v2494_v51, 0.0  ;;  %v604_v3 = vmul.f32 %v1954_v8, %v533_v18  ;;  %v1281_v58 = vsel %vm772_vm2, %v752_v54, -inf }
  0x6e   : > { %v1704_v41 = vpack.c.bf16 %v2757_v25, %v2756_v13  ;;  %v1183_v35 = vsel %vm772_vm2, %v703_v15, -inf  ;;  %1661 = vmatprep.subr.msk.bf16.mxu0 %vm1988_vm3, %v1659_v19  ;;  %v1707_v2 = vpack.c.bf16 %v756_v17, %v755_v1  ;;  %v605_v4 = vmul.f32 %v1954_v8, %v534_v23  ;;  %v482_v23 = vld [vmem:[%s1912_s28 + $0x1f0] sm:$0xff] }
  0x6f   : > { %v1202_v37 = vmax.f32 %v1217_v48, %v1200_v46  ;;  %v708_v27 = vmax.f32 %v2510_v21, 0.0  ;;  %v2531_v34 = vadd.f32 %v1956_v9, %v604_v3  ;;  %v2758_v54 = vmax.f32 %v2136_v49, 0.0  ;;  %v450_v49 = vld [vmem:[%s1912_s28 + $0xf0] sm:$0xff] }
  0x70   : > { %v2759_v12 = vmax.f32 %v2139_v50, 0.0  ;;  %1706 = vmatpush3.bf16.xpose.msk.msra.mxu1 %vm1988_vm3, %v1704_v41  ;;  %v2540_v20 = vadd.f32 %v1956_v9, %v605_v4  ;;  %v551_v11 = vsub.f32 %v480_v42, %v1947_v5  ;;  %v552_v22 = vsub.f32 %v481_v53, %v1947_v5  ;;  %v451_v50 = vld [vmem:[%s1912_s28 + $0xf8] sm:$0xff]  ;;  %v434_v19 = vld [vmem:[%s1912_s28 + $0x70] sm:$0xff] }
  0x71   : > { %v2760_v56 = vmax.f32 %v2027_v6, 0.0  ;;  %v2761_v29 = vmax.f32 %v2030_v7, 0.0  ;;  %v1208_v38 = vmax.f32 %v1279_v24, %v1202_v37  ;;  %v1184_v18 = vmax.f32 %v2409_v32, %v1183_v35  ;;  %1709 = vmatprep.subr.msk.bf16.mxu1 %vm1988_vm3, %v1707_v2  ;;  %v483_v41 = vld [vmem:[%s1912_s28 + $0x1f8] sm:$0xff] }
  0x72   : > { %v1665_v15 = vpack.c.bf16 %v2759_v12, %v2758_v54  ;;  %v1662_v39 = vpack.c.bf16 %v708_v27, %v707_v57  ;;  %v739_v6 = vmax.f32 %v2531_v34, 0.0  ;;  %v740_v7 = vmax.f32 %v2540_v20, 0.0 }
  0x73   : > { %v1668_v43 = vpack.c.bf16 %v2761_v29, %v2760_v56  ;;  %v622_v16 = vmul.f32 %v1954_v8, %v551_v11  ;;  %v623_v48 = vmul.f32 %v1954_v8, %v552_v22  ;;  %v1210_v24 = vmax.f32 %v1281_v58, %v1208_v38  ;;  %v435_v11 = vld [vmem:[%s1912_s28 + $0x78] sm:$0xff]  ;;  %v466_v22 = vld [vmem:[%s1912_s28 + $0x170] sm:$0xff] }
  0x74   : > { %v1185_v32 = vsel %vm772_vm2, %v704_v33, -inf  ;;  %1664 = vmatpush3.bf16.xpose.msk.msra.mxu0 %vm1988_vm3, %v1662_v39  ;;  %v521_v13 = vsub.f32 %v450_v49, %v1947_v5  ;;  %v522_v25 = vsub.f32 %v451_v50, %v1947_v5  ;;  %v1247_v46 = vsel %vm772_vm2, %v735_v31, -inf }
  0x75   : > { %v1710_v10 = vpack.c.bf16 %v740_v7, %v739_v6  ;;  %1667 = vmatprep.subr.msk.bf16.mxu0 %vm1988_vm3, %v1665_v15  ;;  %v2581_v33 = vadd.f32 %v1956_v9, %v622_v16  ;;  %v2584_v3 = vadd.f32 %v1956_v9, %v623_v48  ;;  %v1216_v42 = vmax.f32 %v1184_v18, %v1210_v24  ;;  %v467_v16 = vld [vmem:[%s1912_s28 + $0x178] sm:$0xff] }
  0x76   : > { %v592_v60 = vmul.f32 %v1954_v8, %v521_v13  ;;  %v593_v31 = vmul.f32 %v1954_v8, %v522_v25  ;;  %v553_v53 = vsub.f32 %v482_v23, %v1947_v5  ;;  %v554_v2 = vsub.f32 %v483_v41, %v1947_v5 }
  0x77   : > { %v757_v58 = vmax.f32 %v2581_v33, 0.0  ;;  %v758_v35 = vmax.f32 %v2584_v3, 0.0  ;;  %v505_v4 = vsub.f32 %v434_v19, %v1947_v5  ;;  %v1218_v37 = vmax.f32 %v1185_v32, %v1216_v42 }
  0x78   : > { %v2594_v54 = vadd.f32 %v1956_v9, %v592_v60  ;;  %v2597_v12 = vadd.f32 %v1956_v9, %v593_v31  ;;  %v624_v15 = vmul.f32 %v1954_v8, %v553_v53  ;;  %v1249_v56 = vsel %vm772_vm2, %v736_v28, -inf  ;;  %1712 = vmatpush3.bf16.xpose.msk.msra.mxu1 %vm1988_vm3, %v1710_v10 }
  0x79   : > { %v1283_v29 = vsel %vm772_vm2, %v753_v52, -inf  ;;  %v1713_v49 = vpack.c.bf16 %v758_v35, %v757_v58  ;;  %v625_v50 = vmul.f32 %v1954_v8, %v554_v2  ;;  %v1224_v38 = vmax.f32 %v1247_v46, %v1218_v37 }
  0x7a   : > { %v727_v18 = vmax.f32 %v2594_v54, 0.0  ;;  %v728_v61 = vmax.f32 %v2597_v12, 0.0  ;;  %v695_v28 = vadd.f32 %v1956_v9, %v624_v15  ;;  %v506_v52 = vsub.f32 %v435_v11, %v1947_v5 }
  0x7b   : > { %1715 = vmatprep.subr.msk.bf16.mxu1 %vm1988_vm3, %v1713_v49  ;;  %v696_v44 = vadd.f32 %v1956_v9, %v625_v50  ;;  %v576_v39 = vmul.f32 %v1954_v8, %v505_v4  ;;  %v537_v48 = vsub.f32 %v466_v22, %v1947_v5  ;;  %v1226_v23 = vmax.f32 %v1249_v56, %v1224_v38 }
  0x7c   : > { %v1285_v24 = vsel %vm772_vm2, %v754_v14, -inf  ;;  %1670 = vmatpush3.bf16.xpose.msk.msra.mxu0 %vm1988_vm3, %v1668_v43  ;;  %v2762_v32 = vmax.f32 %v2154_v59, 0.0  ;;  %v2763_v13 = vmax.f32 %v2159_v62, 0.0  ;;  %v1671_v41 = vpack.c.bf16 %v728_v61, %v727_v18 }
  0x7d   : > { %v759_v19 = vmax.f32 %v695_v28, 0.0  ;;  %v760_v46 = vmax.f32 %v696_v44, 0.0  ;;  %v577_v10 = vmul.f32 %v1954_v8, %v506_v52  ;;  %v647_v42 = vadd.f32 %v1956_v9, %v576_v39 }
  0x7e   : > { %v1716_v25 = vpack.c.bf16 %v2763_v13, %v2762_v32  ;;  %v1232_v60 = vmax.f32 %v1283_v29, %v1226_v23  ;;  %1673 = vmatprep.subr.msk.bf16.mxu0 %vm1988_vm3, %v1671_v41  ;;  %v538_v47 = vsub.f32 %v467_v16, %v1947_v5  ;;  %v608_v14 = vmul.f32 %v1954_v8, %v537_v48  ;;  %v1174_v32 = vld [vmem:[%s1930_s21] sm:$0x1] }
  0x7f   : > { %v1223_v59 = vsel %vm772_vm2, %v723_v30, -inf  ;;  %v1719_v62 = vpack.c.bf16 %v760_v46, %v759_v19  ;;  %v648_v43 = vadd.f32 %v1956_v9, %v577_v10  ;;  %v711_v53 = vmax.f32 %v647_v42, 0.0 }
  0x80   : > { %v1234_v31 = vmax.f32 %v1285_v24, %v1232_v60  ;;  %v609_v2 = vmul.f32 %v1954_v8, %v538_v47  ;;  %v679_v4 = vadd.f32 %v1956_v9, %v608_v14  ;;  %v1225_v37 = vsel %vm772_vm2, %v724_v36, -inf  ;;  %1718 = vmatpush3.bf16.xpose.msk.msra.mxu1 %vm1988_vm3, %v1716_v25 }
  0x81   : > { %v712_v5 = vmax.f32 %v648_v43, 0.0  ;;  %1721 = vmatprep.subr.msk.bf16.mxu1 %vm1988_vm3, %v1719_v62  ;;  %v1287_v8 = vsel %vm772_vm2, %v755_v1, -inf  ;;  %v1289_v36 = vsel %vm772_vm2, %v756_v17, -inf  ;;  %v1193_v45 = vsel %vm772_vm2, %v708_v27, -inf }
  0x82   : > { %v1240_v26 = vmax.f32 %v1223_v59, %v1234_v31  ;;  %v680_v30 = vadd.f32 %v1956_v9, %v609_v2  ;;  %v743_v54 = vmax.f32 %v679_v4, 0.0  ;;  %v1191_v9 = vsel %vm772_vm2, %v707_v57, -inf }
  0x83   : > { %v1674_v12 = vpack.c.bf16 %v712_v5, %v711_v53  ;;  %v1255_v1 = vsel %vm772_vm2, %v739_v6, -inf  ;;  %v1257_v51 = vsel %vm772_vm2, %v740_v7, -inf  ;;  %v1291_v21 = vsel %vm772_vm2, %v757_v58, -inf }
  0x84   : > { %v1242_v15 = vmax.f32 %v1225_v37, %v1240_v26  ;;  %v744_v63 = vmax.f32 %v680_v30, 0.0  ;;  %v1293_v27 = vsel %vm772_vm2, %v758_v35, -inf  ;;  %v1231_v6 = vsel %vm772_vm2, %v727_v18, -inf }
  0x85   : > { %1676 = vmatpush3.bf16.xpose.msk.msra.mxu0 %vm1988_vm3, %v1674_v12  ;;  %v1233_v20 = vsel %vm772_vm2, %v728_v61, -inf  ;;  %v1295_v49 = vsel %vm772_vm2, %v759_v19, -inf  ;;  %v1297_v58 = vsel %vm772_vm2, %v760_v46, -inf  ;;  %v1201_v3 = vsel %vm772_vm2, %v712_v5, -inf }
  0x86   : > { %v1248_v11 = vmax.f32 %v1287_v8, %v1242_v15  ;;  %v1722_v22 = vpack.c.bf16 %v744_v63, %v743_v54  ;;  %v1263_v18 = vsel %vm772_vm2, %v743_v54, -inf  ;;  %v1265_v61 = vsel %vm772_vm2, %v744_v63, -inf }
  0x87   : > { %v768_v41 = vlaneseq  ;;  %v1813_v42 = vmov 1966171168  }
  0x88   : > { %v1250_v56 = vmax.f32 %v1289_v36, %v1248_v11  ;;  %1724 = vmatpush3.bf16.xpose.msk.msra.mxu1 %vm1988_vm3, %v1722_v22  ;;  %v1117_v60 = vunpack.c.l.s4 %v1813_v42 }
  0x89   : > { %v769_v19 = vshrl.u32 %v768_v41, 7  ;;  %vm1141_vm6 = vcmp.lt.s32.totalorder %v768_v41, 512 }
  0x8a   : > { %v1256_v0 = vmax.f32 %v1191_v9, %v1250_v56  ;;  %v1118_v14 = vunpack.c.0.s8 %v1117_v60 }
  0x8b   : > { %v770_v46 = vsub.s32 0, %v769_v19 }
  0x8c   : > { %v1258_v17 = vmax.f32 %v1193_v45, %v1256_v0  ;;  %1594 = vmatmul.mubr.msk.f32.vlgmr.msra.gmra.mrb[0].mxu0 %vm772_vm2, %v2087_v55  ;;  %v1121_v4 = vsub.s32 %v1118_v14, %v769_v19 }
  0x8e   : > { %v1264_v57 = vmax.f32 %v1255_v1, %v1258_v17 }
  0x8f   : > { %1628 = vmatmul.mubr.msk.f32.vlgmr.msra.gmra.mrb[0].mxu1 %vm772_vm2, %v2087_v55  ;;  %v1199_v55 = vsel %vm772_vm2, %v711_v53, -inf }
  0x90   : > { %v1266_v40 = vmax.f32 %v1257_v51, %v1264_v57 }
  0x92   : > { %v1272_v34 = vmax.f32 %v1291_v21, %v1266_v40 }
  0x94   : > { %v1274_v29 = vmax.f32 %v1293_v27, %v1272_v34 }
  0x96   : > { %v1280_v7 = vmax.f32 %v1231_v6, %v1274_v29 }
  0x98   : > { %v1282_v33 = vmax.f32 %v1233_v20, %v1280_v7  ;;  %v1144_v20 = vld [vmem:[%s1918_s10] sm:$0x1] }
  0x9a   : > { %v1288_v50 = vmax.f32 %v1295_v49, %v1282_v33  ;;  %v1158_v49 = vld [vmem:[%s1924_s20] sm:$0x1] }
  0x9c   : > { %v1290_v38 = vmax.f32 %v1297_v58, %v1288_v50 }
  0x9e   : > { %v1296_v35 = vmax.f32 %v1199_v55, %v1290_v38 }
  0xa0   : > { %v1298_v28 = vmax.f32 %v1201_v3, %v1296_v35 }
  0xa2   : > { %v1300_v44 = vmax.f32 %v1263_v18, %v1298_v28 }
  0xa4   : > { %v1301_v52 = vmax.f32 %v1265_v61, %v1300_v44 }
  0xa6   : > { %v1302_v39 = vrot.slane %v1301_v52, 4 }
  0xa8   : > { %v1303_v16 = vmax.f32 %v1301_v52, %v1302_v39 }
  0xaa   : > { %v1304_v48 = vrot.slane %v1303_v16, 2 }
  0xac   : > { %v1305_v23 = vmax.f32 %v1303_v16, %v1304_v48 }
  0xae   : > { %v1306_v24 = vrot.slane %v1305_v23, 1 }
  0xb0   : > { %v1307_v13 = vmax.f32 %v1305_v23, %v1306_v24 }
  0xb2   : > { %v1308_v25 = vmax.f32 %v1174_v32, %v1307_v13 }
  0xb4   : > { %1310 = vst.msk [vmem:[%s1930_s21] sm:$0x1] %vm1309_vm4, %v1308_v25 }
  0xe1   : > { %v766_v10 = vpop.permute.xlu0 %765 }
  0xe2   : > { %v771_v47 = vrot.slane %v766_v10, %v770_v46 }
 0x15f   : > { %v1034_v59 = vpop.f32.mrb[0].mxu0 }
 0x160   : > { %v1035_v62 = vadd.f32 %v1034_v59, %v771_v47  ;;  %v1036_v43 = vpop.f32.mrb[1].mxu0 }
 0x161   : > { %v1037_v31 = vadd.f32 %v1036_v43, %v771_v47 }
 0x162   : > { %v1146_v53 = vsel %vm1145_vm5, %v1035_v62, 0.0  ;;  %v1159_v2 = vmul.f32 %v1035_v62, %v1035_v62  ;;  %v1105_v37 = vpop.f32.mrb[0].mxu1 }
 0x163   : > { %v1114_v5 = vcombine.low %v1035_v62, %v1037_v31  ;;  %v1147_v26 = vsel %vm1145_vm5, %v1037_v31, 0.0  ;;  %v1160_v30 = vmul.f32 %v1037_v31, %v1037_v31  ;;  %v1106_v54 = vadd.f32 %v1105_v37, %v771_v47  ;;  %v1107_v8 = vpop.f32.mrb[1].mxu1 }
 0x164   : > { %v1148_v12 = vadd.f32 %v1147_v26, %v1146_v53  ;;  %v1163_v15 = vsel %vm1145_vm5, %v1159_v2, 0.0  ;;  %v1108_v63 = vadd.f32 %v1107_v8, %v771_v47 }
 0x165   : > { %v1164_v36 = vsel %vm1145_vm5, %v1160_v30, 0.0  ;;  %v1149_v11 = vsel %vm1145_vm5, %v1106_v54, 0.0  ;;  %v1161_v22 = vmul.f32 %v1106_v54, %v1106_v54  ;;  %v1122_v56 = vrot.slane %v1114_v5, %v1121_v4 }
 0x166   : > { %v1165_v9 = vadd.f32 %v1164_v36, %v1163_v15  ;;  %v1115_v45 = vcombine.low %v1106_v54, %v1108_v63  ;;  %v1150_v0 = vadd.f32 %v1149_v11, %v1148_v12  ;;  %v1162_v1 = vmul.f32 %v1108_v63, %v1108_v63 }
 0x167   : > { %v1151_v17 = vsel %vm1145_vm5, %v1108_v63, 0.0  ;;  %v1166_v51 = vsel %vm1145_vm5, %v1161_v22, 0.0 }
 0x168   : > { %v1129_v57 = vrot.slane %v1115_v45, %v1121_v4  ;;  %v1152_v21 = vadd.f32 %v1151_v17, %v1150_v0  ;;  %v1167_v40 = vadd.f32 %v1166_v51, %v1165_v9  ;;  %v1168_v27 = vsel %vm1145_vm5, %v1162_v1, 0.0 }
 0x16a   : > { %v1130_v34 = vcombine.low %v1122_v56, %v1129_v57  ;;  %1153 = vadd.xlane.f32.xlu0 %v1152_v21  ;;  %v1169_v6 = vadd.f32 %v1168_v27, %v1167_v40 }
 0x16c   : > { %v1137_v29 = vrot.slane %v1130_v34, %v1121_v4  ;;  %1170 = vadd.xlane.f32.xlu1 %v1169_v6 }
 0x16e   : > { %1143 = vst.msk [vmem:[%s400_s27] sm:$0xf] %vm1141_vm6, %v1137_v29 }
 0x1f7   : > { %v1154_v7 = vpop.xlane.xlu0 %1153 }
 0x1f8   : > { %v1155_v33 = vadd.f32 %v1154_v7, %v1144_v20 }
 0x1f9   : > { %v1171_v58 = vpop.xlane.xlu1 %1170 }
 0x1fa   : > { %1157 = vst.msk [vmem:[%s1918_s10] sm:$0x1] %vm1156_vm7, %v1155_v33  ;;  %v1172_v50 = vadd.f32 %v1171_v58, %v1158_v49 }
 0x1fc   : > { %1173 = vst.msk [vmem:[%s1924_s20] sm:$0x1] %vm1156_vm7, %v1172_v50 }
 0x1fd PF: > { %s22_s15 = sadd.s32 1, %s1808_s15   ;;  %s2764_s29 = sld [smem:[#allocation3_spill]] }
 0x1fe   : > { %p19_p9 = scmp.ge.s32.totalorder %s22_s15, 6   ;;  %s2765_s30 = sld [smem:[#allocation4_spill]] }
 0x1ff   : > { %s2766_s11 = smov %s1800_s13  ;;  %s2767_s12 = smov %s1804_s14 }
 0x200   :  { %21 = sbr.rel (!%p19_p9) target bundleno = 3 (0x3), region = 117 }
 0x203   : > { %s2768_s13 = smov %s2764_s29 }
 0x204   : > { %s2769_s14 = smov %s2765_s30 }

// kernel: deepsets_block.13
= control target key start
LH: loop header
LB: loop body
LE: loop exit
PB: predicated region body
PF: predicated region fallthrough
CT: control target
= control target key end

     0   :  { %s739_s0 = inlined_call_operand.vmem [shape: f32[2,1,1024], index: 0, kind: input, shape index: {}]   ;;  %s740_s1 = inlined_call_operand.<no memory space> [shape: f32[1,1], index: 1, kind: input, shape index: {}]   ;;  %s741_s3 = inlined_call_operand.vmem [shape: f32[2,1,1], index: 3, kind: input, shape index: {}]   ;;  %s742_s4 = inlined_call_operand.hbm [shape: f32[2,1,1024], index: 4, kind: output, shape index: {}]   ;;  %s743_s2 = inlined_call_operand.<no memory space> [shape: f32[1,1], index: 2, kind: input, shape index: {}]  }
   0x1   :  { %v9_v0 = vstv %s740_s1  ;;  %v11_v1 = vstv %s743_s2 }
   0x2   :  { %10 = vst [vmem:[#allocation2] sm:$0x1] %v9_v0  ;;  %12 = vst [vmem:[#allocation3] sm:$0x1] %v11_v1 }
   0x3   :  { %13 = vsyncpa [#allocation5], 0 }
   0x4   :  { %15 = vsyncpa [#allocation5 + $0x1], 0  ;;  %s601_s19 = smov 0   ;;  %s603_s20 = smov 0  }
   0x5   :  { %s605_s21 = smov 0   ;;  %s607_s22 = smov 0  }
   0x6   :  { %s609_s23 = smov 0   ;;  %s611_s24 = smov 0  }
   0x7   :  { %s613_s1 = smov 0   ;;  %s615_s25 = smov 0  }
   0x8 LB: > { %s384_s2 = sadd.s32 4294967295, %s566_s25   ;;  %s385_s26 = sadd.s32 4294967294, %s566_s25   ;;  %s566_s25 = sphi %s615_s25, %s21_s25   ;;  %s562_s1 = sphi %s613_s1, %s752_s1   ;;  %s558_s24 = sphi %s611_s24, %s751_s24   ;;  %s554_s23 = sphi %s609_s23, %s750_s23   ;;  %s550_s22 = sphi %s607_s22, %s749_s22   ;;  %s546_s21 = sphi %s605_s21, %s748_s21   ;;  %s542_s20 = sphi %s603_s20, %s747_s20   ;;  %s538_s19 = sphi %s601_s19, %s746_s19  }
   0x9   : > { %s30_s27 = sadd.s32 1, %s558_s24  ;;  %s33_s28 = sadd.s32 1, %s562_s1 }
   0xa   : > { %p31_p0 = scmp.ge.s32.totalorder %s30_s27, 2  ;;  %p148_p1 = scmp.ne.s32.totalorder %s546_s21, %s542_s20 }
   0xb   : > { %p149_p2 = scmp.eq.s32.totalorder %s384_s2, 3  ;;  %p154_p5 = scmp.ne.s32.totalorder %s542_s20, %s538_s19 }
   0xc   : > { %s754_s27 = smov (%p31_p0, %s30_s27), 0  ;;  %s756_s28 = smov (!%p31_p0, %s33_s28), %s562_s1 }
   0xd   : > { %s134_s29 = ssub.s32 %s558_s24, %s754_s27  ;;  %p652_p3 = por %p149_p2, %p148_p1 }
   0xe   : > { %p35_p4 = scmp.ge.s32.totalorder %s756_s28, 2  ;;  %p155_p6 = scmp.eq.s32.totalorder %s385_s26, 3 }
   0xf   : > { %p388_p7 = scmp.ge.s32.totalorder %s566_s25, 1  ;;  %p197_p9 = scmp.lt.s32.totalorder %s566_s25, 5 }
  0x10   : > { %s758_s28 = smov (%p35_p4, %s756_s28), 0  ;;  %p661_p8 = por %p155_p6, %p154_p5 }
  0x11   : > { %s133_s6 = ssub.s32 %s562_s1, %s758_s28  ;;  %s138_s7 = sadd.s32 1, %s546_s21 }
  0x12   : > { %s135_s8 = sor.u32 %s134_s29, %s133_s6  ;;  %p198_p10 = pnand %p388_p7, %p197_p9 }
  0x13   : > { %p136_p11 = scmp.eq.s32.totalorder %s135_s8, 0  ;;  %v243_v2 = vld [vmem:[#allocation2] sm:$0x1] (!%p198_p10)  ;;  %p230_p12 = scmp.lt.s32.totalorder (!%p198_p10), %s554_s23, 1  ;;  %v568_v3 = vmov (!%p198_p10), 0   ;;  %v249_v6 = vlaneseq (!%p198_p10) }
  0x14   : > { %201 = sbr.rel (%p198_p10) target bundleno = 179 (0xb3), region = 36  ;;  %470 = vset.pattern.permute.xlu0 (!%p198_p10), %v568_v3  ;;  %471 = vset.pattern.permute.xlu1 (!%p198_p10), %v568_v3  ;;  %v254_v4 = vld [vmem:[#allocation3] sm:$0x1] (!%p198_p10)  ;;  %s390_s14 = sshll.u32 (!%p198_p10), %s550_s22, 2 }
  0x15   : > { %s670_s9 = scalar_select %p136_p11, %s546_s21, %s138_s7  }
  0x16   : > { %246 = vperm.xlu0 (!%p198_p10), %470, %v243_v2   ;;  %p232_p13 = scmp.lt.s32.totalorder (!%p198_p10), %s390_s14, 7  ;;  %v250_v7 = vshrl.u32 (!%p198_p10), %v249_v6, 7  ;;  %s226_s29 = sand.u32 (!%p198_p10), 1, %s542_s20   ;;  %vm279_vm0 = vcmp.lt.s32.totalorder (!%p198_p10), %v249_v6, 512 }
  0x17   : > { %s389_s6 = sshll.u32 (!%p198_p10), %s226_s29, 2  ;;  %s394_s7 = sshll.u32 (!%p198_p10), %s554_s23, 3 }
  0x18   : > { %v251_v8 = vsub.s32 (!%p198_p10), 0, %v250_v7  ;;  %s295_s22 = sadd.s32 (!%p198_p10), %s394_s7, %s390_s14 }
  0x19   : > { %s395_s8 = sshll.u32 (!%p198_p10), %s295_s22, 4 }
  0x1a   : > { %257 = vperm.xlu0 (!%p198_p10), %470, %v254_v4  }
  0x1b   : > { %s231_s10 = scalar_select %p230_p12, %s554_s23, 1 }
  0x1c   : > { %s233_s15 = scalar_select %p232_p13, %s390_s14, 7 }
  0x1d   : > { %s240_s13 = scalar_lea.vmem %s741_s3, %s231_s10  ;;  %s391_s16 = sshll.u32 %s231_s10, 3 }
  0x1e   : > { %v265_v5 = vld [vmem:[%s240_s13] sm:$0x1]  ;;  %s235_s17 = sadd.s32 %s391_s16, %s233_s15  ;;  %s228_s10 = scalar_lea.vmem [#allocation4], %s389_s6 }
  0x1f   : > { %268 = vperm.xlu1 %471, %v265_v5   ;;  %s236_s26 = scalar_lea.vmem %s739_s0, %s235_s17  ;;  %s299_s11 = sshll.u32 %s228_s10, 4  ;;  %s688_s11 = int_to_ptr.vmem [resolvable:$true] %s299_s11 }
  0x20   : > { %v242_v11 = vld [vmem:[%s236_s26] sm:$0xf]  ;;  %s686_s15 = scalar_lea.hbm %s742_s4, %s395_s8  ;;  %s283_s23 = scalar_lea.sflag [#allocation5], %s226_s29 }
  0x21   : > { %s472_s14 = scalar_lea.vmem %s688_s11, 64  ;;  %s569_s16 = smov [#allocation4]  }
  0x22   : > { %p473_p0 = scmp.ne.s32.totalorder %s688_s11, %s472_s14  ;;  %s476_s17 = sshll.u32 %s569_s16, 4  ;;  %s477_s17 = int_to_ptr.vmem [resolvable:$false] %s476_s17 }
  0x23   : > { %s478_s18 = scalar_lea.vmem %s477_s17, 128  ;;  %p479_p4 = scmp.lt.s32.totalorder %s688_s11, %s477_s17 }
  0x24   : > { %p474_p1 = pnand %p473_p0, %p652_p3  ;;  %p480_p5 = scmp.lt.s32.totalorder %s478_s18, %s472_s14 }
  0x26   : > { %p475_p2 = pneg %p474_p1  ;;  %p481_p6 = por %p480_p5, %p479_p4 }
  0x28   : > { %p482_p7 = pnand %p481_p6, %p475_p2 }
  0x95   : > { %v247_v9 = vpop.permute.xlu0 %246 }
  0x96   : > { %v252_v10 = vrot.slane %v247_v9, %v251_v8 }
  0x98   : > { %v253_v14 = vsub.f32 %v242_v11, %v252_v10 }
  0x99   : > { %v258_v12 = vpop.permute.xlu0 %257 }
  0x9a   : > { %v263_v15 = vrot.slane %v258_v12, %v251_v8 }
  0x9c   : > { %v264_v17 = vmul.f32 %v263_v15, %v253_v14 }
  0x9e   : > { %v269_v13 = vpop.permute.xlu1 %268 }
  0x9f   : > { %v274_v16 = vrot.slane %v269_v13, %v251_v8 }
  0xa1   : > { %v275_v18 = vadd.f32 %v274_v16, %v264_v17 }
  0xa3   : > { %v276_v19 = vmax.f32 %v275_v18, 0.0 }
  0xa5   : > { %281 = vst.msk [vmem:[%s228_s10] sm:$0xf] %vm279_vm0, %v276_v19 }
  0xa6   : > { %485 = shalt.err (!%p482_p7)
}
  0xa7   : > { %s486_s2 = scalar_lea.hbm %s686_s15, 64  ;;  %s490_s6 = scalar_lea.hbm %s742_s4, 256 }
  0xa8   : > { %p487_p9 = scmp.ne.s32.totalorder %s686_s15, %s486_s2  ;;  %p491_p12 = scmp.lt.u32.totalorder %s686_s15, %s742_s4 }
  0xa9   : > { %p492_p13 = scmp.lt.u32.totalorder %s490_s6, %s486_s2  ;;  %p494_p1 = scmp.lt.u32.totalorder %s486_s2, %s686_s15 }
  0xaa   : > { %p488_p10 = pnand %p487_p9, %p652_p3 }
  0xab   : > { %p493_p0 = por %p492_p13, %p491_p12 }
  0xac   : > { %p489_p11 = pneg %p488_p10 }
  0xad   : > { %p495_p2 = por %p494_p1, %p493_p0 }
  0xaf   : > { %p496_p4 = pnand %p495_p2, %p489_p11 }
  0xb1   : > { %499 = shalt.err (!%p496_p4)
}
  0xb2   : > { %398 = dma.vmem_to_hbm [thread:$0]  (%p652_p3), %s688_s11, 64, %s686_s15, %s283_s23  }
  0xb3 PF: > { %p404_p5 = scmp.ge.s32.totalorder %s566_s25, 2  ;;  %s311_s8 = sand.u32 1, %s538_s19  }
  0xb4   : > { %s312_s10 = scalar_lea.sflag [#allocation5], %s311_s8 }
  0xb5   : > { %p401_p6 = pnand %p404_p5, %p661_p8 }
  0xb7   : > { %533 = dma.done.wait (!%p401_p6), %s312_s10, 64  }
  0xb8   : > { %535 = vsyncadd (!%p401_p6), %s312_s10, 4294967232  ;;  %s21_s25 = sadd.s32 1, %s566_s25   ;;  %s746_s19 = smov %s542_s20 }
  0xb9   : > { %p18_p7 = scmp.ge.s32.totalorder %s21_s25, 6   ;;  %s747_s20 = smov %s546_s21 }
  0xba   : > { %s748_s21 = smov %s670_s9  ;;  %s749_s22 = smov %s558_s24 }
  0xbb   : > { %s750_s23 = smov %s562_s1  ;;  %s751_s24 = smov %s754_s27 }
  0xbc   : > { %s752_s1 = smov %s758_s28  ;;  %20 = sbr.rel (!%p18_p7) target bundleno = 8 (0x8), region = 74 }
  0xc3   :  { %317 = vsyncpa [#allocation5], 1 }
  0xc4   :  { %319 = vsyncpa [#allocation5 + $0x1], 1 }

</bundles_post_ra>
